<compile_context>
chip_gen: v7x
topology: tpu7x:2x2x1
jax: 0.10.0
libtpu: 0.0.40
codegen_flags: <defaults>
</compile_context>

<pallas_src>
import jax
import jax.numpy as jnp
from jax.experimental import pallas as pl
from jax.experimental.pallas import tpu as pltpu


N_CHANNELS = 16
DILATIONS = (1, 2, 3)


def _round_up(v, m):
    return (v + m - 1) // m * m


def _regression_convnet_kernel(x_ref, cw0_ref, cw1_ref, cb_ref,
                               fc1w_ref, fc1b_ref, fc2w_ref, fc2b_ref,
                               fc3w_ref, fc3b_ref, fc4w_ref, fc4b_ref,
                               out_ref):
    x = x_ref[...]                                   # (TB, LP) f32, zero-padded past N

    # Left-shift x by each dilation (wrapped/out-of-range lanes only ever multiply the
    # zero-padded rows of fc1w, so they contribute nothing).
    shifted = [jnp.concatenate([x[:, d:], x[:, :d]], axis=1) for d in DILATIONS]

    # Lay the conv inputs for all (dilation, channel) pairs out along lanes:
    # segment (di, c) occupies lanes [(di*16 + c)*LP, (di*16 + c + 1)*LP).
    n_seg = len(DILATIONS) * N_CHANNELS
    big_x0 = jnp.concatenate([x] * n_seg, axis=1)                               # (TB, 48*LP)
    big_xd = jnp.concatenate([s for s in shifted for _ in range(N_CHANNELS)],
                             axis=1)                                            # (TB, 48*LP)

    # Dilated conv (kernel_size=2) + bias + ReLU for every channel at once (pure VPU).
    feat = jnp.maximum(big_x0 * cw0_ref[...] + big_xd * cw1_ref[...] + cb_ref[...],
                       0.0)                                                     # (TB, 48*LP)

    # fc1: one MXU contraction over the padded (dilation, channel, position) axis.
    h = jnp.maximum(jnp.dot(feat, fc1w_ref[...], preferred_element_type=jnp.float32)
                    + fc1b_ref[...], 0.0)                                       # (TB, 100)
    h = jnp.maximum(jnp.dot(h, fc2w_ref[...], preferred_element_type=jnp.float32)
                    + fc2b_ref[...], 0.0)                                       # (TB, 30)
    h = jnp.maximum(jnp.dot(h, fc3w_ref[...], preferred_element_type=jnp.float32)
                    + fc3b_ref[...], 0.0)                                       # (TB, 30)
    out_ref[...] = (jnp.dot(h, fc4w_ref[...], preferred_element_type=jnp.float32)
                    + fc4b_ref[...])                                            # (TB, 128)


def regression_convnet_forward(x, params, *, tile_b=128):
    """x: (B, N) float32 (the torch view(B, 1, N) with the channel squeezed) -> (B, 1)."""
    x = x.astype(jnp.float32)
    B, N = x.shape
    fc_size = (3 * N - 6) * N_CHANNELS
    LP = _round_up(N, 128)                      # per-(dilation,channel) lane-padded length
    K = len(DILATIONS) * N_CHANNELS * LP        # fused fc1 contraction size

    conv_w = params["conv_w"].astype(jnp.float32)   # (3, 16, 2)
    conv_b = params["conv_b"].astype(jnp.float32)   # (3, 16)
    W1 = params["W1"].astype(jnp.float32)           # (fc_size, 100) == torch fc1.weight.T
    b1 = params["b1"].astype(jnp.float32)
    W2 = params["W2"].astype(jnp.float32)
    b2 = params["b2"].astype(jnp.float32)
    W3 = params["W3"].astype(jnp.float32)
    b3 = params["b3"].astype(jnp.float32)
    W4 = params["W4"].astype(jnp.float32)           # (30, 1)
    b4 = params["b4"].astype(jnp.float32)           # (1,)
    assert W1.shape == (fc_size, 100)

    # Conv taps / bias broadcast into (1, K) rows matching the in-kernel feature layout.
    cw0_row = jnp.concatenate(
        [jnp.repeat(conv_w[di, :, 0], LP) for di in range(len(DILATIONS))]).reshape(1, K)
    cw1_row = jnp.concatenate(
        [jnp.repeat(conv_w[di, :, 1], LP) for di in range(len(DILATIONS))]).reshape(1, K)
    cb_row = jnp.concatenate(
        [jnp.repeat(conv_b[di], LP) for di in range(len(DILATIONS))]).reshape(1, K)

    # fc1 weight, zero-padded so row (di*16 + c)*LP + t maps to torch row off_di + c*L + t.
    chunks = []
    off = 0
    for d in DILATIONS:
        L = N - d
        c3 = W1[off:off + N_CHANNELS * L].reshape(N_CHANNELS, L, 100)
        c3 = jnp.pad(c3, ((0, 0), (0, LP - L), (0, 0)))
        chunks.append(c3.reshape(N_CHANNELS * LP, 100))
        off += N_CHANNELS * L
    W1_pad = jnp.concatenate(chunks, axis=0)        # (K, 100)

    # Lane-dense fc4: pad the width-1 output to 128 lanes.
    W4p = jnp.pad(W4, ((0, 0), (0, 127)))           # (30, 128)
    b4p = jnp.pad(b4.reshape(1, 1), ((0, 0), (0, 127)))   # (1, 128)

    # Batch grid.
    TB = min(tile_b, _round_up(B, 8))
    B_pad = _round_up(B, TB)
    x_pad = jnp.zeros((B_pad, LP), jnp.float32).at[:B, :N].set(x)

    weights = (cw0_row, cw1_row, cb_row,
               W1_pad, b1.reshape(1, 100),
               W2, b2.reshape(1, 30),
               W3, b3.reshape(1, 30),
               W4p, b4p)

    def full_spec(a):
        return pl.BlockSpec(a.shape, lambda i: (0, 0))

    out = pl.pallas_call(
        _regression_convnet_kernel,
        out_shape=jax.ShapeDtypeStruct((B_pad, 128), jnp.float32),
        grid=(B_pad // TB,),
        in_specs=[pl.BlockSpec((TB, LP), lambda i: (i, 0))]
                 + [full_spec(w) for w in weights],
        out_specs=pl.BlockSpec((TB, 128), lambda i: (i, 0)),
        compiler_params=pltpu.CompilerParams(
            dimension_semantics=("parallel",),
            vmem_limit_bytes=32 * 1024 * 1024),
    )(x_pad, *weights)

    return out[:B, :1]


def ref_forward(x, params):
    """Pure-JAX reference matching the PyTorch forward semantics."""
    B, N = x.shape
    feats = []
    for di, d in enumerate(DILATIONS):
        L = N - d
        w = params["conv_w"][di]      # (16, 2)
        b = params["conv_b"][di]      # (16,)
        x0 = x[:, :L]
        xd = x[:, d:d + L]
        out = (x0[:, None, :] * w[:, 0][None, :, None]
               + xd[:, None, :] * w[:, 1][None, :, None]
               + b[None, :, None])                     # (B, 16, L)
        feats.append(jnp.maximum(out, 0.0).reshape(B, N_CHANNELS * L))
    feat = jnp.concatenate(feats, axis=1)
    hp = jax.lax.Precision.HIGHEST
    h = jnp.maximum(jnp.dot(feat, params["W1"], precision=hp) + params["b1"], 0.0)
    h = jnp.maximum(jnp.dot(h, params["W2"], precision=hp) + params["b2"], 0.0)
    h = jnp.maximum(jnp.dot(h, params["W3"], precision=hp) + params["b3"], 0.0)
    return jnp.dot(h, params["W4"], precision=hp) + params["b4"]


def make_params(key, walk_length):
    fc_size = (3 * walk_length - 6) * N_CHANNELS
    ks = jax.random.split(key, 10)
    return {
        "conv_w": 0.30 * jax.random.normal(ks[0], (3, N_CHANNELS, 2), jnp.float32),
        "conv_b": 0.10 * jax.random.normal(ks[1], (3, N_CHANNELS), jnp.float32),
        "W1": 0.05 * jax.random.normal(ks[2], (fc_size, 100), jnp.float32),
        "b1": 0.10 * jax.random.normal(ks[3], (100,), jnp.float32),
        "W2": 0.10 * jax.random.normal(ks[4], (100, 30), jnp.float32),
        "b2": 0.10 * jax.random.normal(ks[5], (30,), jnp.float32),
        "W3": 0.10 * jax.random.normal(ks[6], (30, 30), jnp.float32),
        "b3": 0.10 * jax.random.normal(ks[7], (30,), jnp.float32),
        "W4": 0.10 * jax.random.normal(ks[8], (30, 1), jnp.float32),
        "b4": 0.10 * jax.random.normal(ks[9], (1,), jnp.float32),
    }


if __name__ == "__main__":
    walk_length = 16     # self.n
    batch_size = 8

    key = jax.random.PRNGKey(0)
    k_param, k_x = jax.random.split(key)
    params = make_params(k_param, walk_length)
    x = jax.random.normal(k_x, (batch_size, walk_length), jnp.float32)

    out = jax.block_until_ready(regression_convnet_forward(x, params))
    ref = jax.block_until_ready(ref_forward(x, params))

    assert out.shape == (batch_size, 1)
    assert jnp.allclose(out, ref, atol=1e-3, rtol=1e-3), (out, ref)

    print("KERNEL_OK")
</pallas_src>

<mosaic_0001>
module attributes {stable_mosaic.version = 11 : i64} {
  func.func @_regression_convnet_kernel(%arg0: i32, %arg1: memref<8x128xf32, #tpu.memory_space<vmem>>, %arg2: memref<1x6144xf32, #tpu.memory_space<vmem>>, %arg3: memref<1x6144xf32, #tpu.memory_space<vmem>>, %arg4: memref<1x6144xf32, #tpu.memory_space<vmem>>, %arg5: memref<6144x100xf32, #tpu.memory_space<vmem>>, %arg6: memref<1x100xf32, #tpu.memory_space<vmem>>, %arg7: memref<100x30xf32, #tpu.memory_space<vmem>>, %arg8: memref<1x30xf32, #tpu.memory_space<vmem>>, %arg9: memref<30x30xf32, #tpu.memory_space<vmem>>, %arg10: memref<1x30xf32, #tpu.memory_space<vmem>>, %arg11: memref<30x128xf32, #tpu.memory_space<vmem>>, %arg12: memref<1x128xf32, #tpu.memory_space<vmem>>, %arg13: memref<8x128xf32, #tpu.memory_space<vmem>>) attributes {dimension_semantics = [#tpu.dimension_semantics<parallel>], iteration_bounds = array<i64: 1>, scalar_prefetch = 0 : i64, scratch_operands = 0 : i64, tpu.core_type = #tpu.core_type<tc>, window_params = [{transform_indices = @transform_0, window_bounds = array<i64: 8, 128>}, {pipeline_mode = #tpu.pipeline_mode<synchronous>, transform_indices = @transform_1, window_bounds = array<i64: 1, 6144>}, {pipeline_mode = #tpu.pipeline_mode<synchronous>, transform_indices = @transform_2, window_bounds = array<i64: 1, 6144>}, {pipeline_mode = #tpu.pipeline_mode<synchronous>, transform_indices = @transform_3, window_bounds = array<i64: 1, 6144>}, {pipeline_mode = #tpu.pipeline_mode<synchronous>, transform_indices = @transform_4, window_bounds = array<i64: 6144, 100>}, {pipeline_mode = #tpu.pipeline_mode<synchronous>, transform_indices = @transform_5, window_bounds = array<i64: 1, 100>}, {pipeline_mode = #tpu.pipeline_mode<synchronous>, transform_indices = @transform_6, window_bounds = array<i64: 100, 30>}, {pipeline_mode = #tpu.pipeline_mode<synchronous>, transform_indices = @transform_7, window_bounds = array<i64: 1, 30>}, {pipeline_mode = #tpu.pipeline_mode<synchronous>, transform_indices = @transform_8, window_bounds = array<i64: 30, 30>}, {pipeline_mode = #tpu.pipeline_mode<synchronous>, transform_indices = @transform_9, window_bounds = array<i64: 1, 30>}, {pipeline_mode = #tpu.pipeline_mode<synchronous>, transform_indices = @transform_10, window_bounds = array<i64: 30, 128>}, {pipeline_mode = #tpu.pipeline_mode<synchronous>, transform_indices = @transform_11, window_bounds = array<i64: 1, 128>}, {transform_indices = @transform_12, window_bounds = array<i64: 8, 128>}]} {
    %c0 = arith.constant 0 : index
    %c0_0 = arith.constant 0 : index
    %0 = vector.load %arg1[%c0, %c0_0] : memref<8x128xf32, #tpu.memory_space<vmem>>, vector<8x128xf32>
    %1 = vector.extract_strided_slice %0 {offsets = [0, 1], sizes = [8, 127], strides = [1, 1]} : vector<8x128xf32> to vector<8x127xf32>
    %2 = vector.extract_strided_slice %0 {offsets = [0, 0], sizes = [8, 1], strides = [1, 1]} : vector<8x128xf32> to vector<8x1xf32>
    %3 = tpu.concatenate %1, %2 in 1 : vector<8x127xf32>, vector<8x1xf32> -> vector<8x128xf32>
    %4 = vector.extract_strided_slice %0 {offsets = [0, 2], sizes = [8, 126], strides = [1, 1]} : vector<8x128xf32> to vector<8x126xf32>
    %5 = vector.extract_strided_slice %0 {offsets = [0, 0], sizes = [8, 2], strides = [1, 1]} : vector<8x128xf32> to vector<8x2xf32>
    %6 = tpu.concatenate %4, %5 in 1 : vector<8x126xf32>, vector<8x2xf32> -> vector<8x128xf32>
    %7 = vector.extract_strided_slice %0 {offsets = [0, 3], sizes = [8, 125], strides = [1, 1]} : vector<8x128xf32> to vector<8x125xf32>
    %8 = vector.extract_strided_slice %0 {offsets = [0, 0], sizes = [8, 3], strides = [1, 1]} : vector<8x128xf32> to vector<8x3xf32>
    %9 = tpu.concatenate %7, %8 in 1 : vector<8x125xf32>, vector<8x3xf32> -> vector<8x128xf32>
    %10 = tpu.concatenate %0, %0, %0, %0, %0, %0, %0, %0, %0, %0, %0, %0, %0, %0, %0, %0 in 1 : vector<8x128xf32>, vector<8x128xf32>, vector<8x128xf32>, vector<8x128xf32>, vector<8x128xf32>, vector<8x128xf32>, vector<8x128xf32>, vector<8x128xf32>, vector<8x128xf32>, vector<8x128xf32>, vector<8x128xf32>, vector<8x128xf32>, vector<8x128xf32>, vector<8x128xf32>, vector<8x128xf32>, vector<8x128xf32> -> vector<8x2048xf32>
    %11 = tpu.concatenate %0, %0, %0, %0, %0, %0, %0, %0, %0, %0, %0, %0, %0, %0, %0, %0 in 1 : vector<8x128xf32>, vector<8x128xf32>, vector<8x128xf32>, vector<8x128xf32>, vector<8x128xf32>, vector<8x128xf32>, vector<8x128xf32>, vector<8x128xf32>, vector<8x128xf32>, vector<8x128xf32>, vector<8x128xf32>, vector<8x128xf32>, vector<8x128xf32>, vector<8x128xf32>, vector<8x128xf32>, vector<8x128xf32> -> vector<8x2048xf32>
    %12 = tpu.concatenate %0, %0, %0, %0, %0, %0, %0, %0, %0, %0, %0, %0, %0, %0, %0, %0 in 1 : vector<8x128xf32>, vector<8x128xf32>, vector<8x128xf32>, vector<8x128xf32>, vector<8x128xf32>, vector<8x128xf32>, vector<8x128xf32>, vector<8x128xf32>, vector<8x128xf32>, vector<8x128xf32>, vector<8x128xf32>, vector<8x128xf32>, vector<8x128xf32>, vector<8x128xf32>, vector<8x128xf32>, vector<8x128xf32> -> vector<8x2048xf32>
    %13 = tpu.concatenate %10, %11, %12 in 1 : vector<8x2048xf32>, vector<8x2048xf32>, vector<8x2048xf32> -> vector<8x6144xf32>
    %14 = tpu.concatenate %3, %3, %3, %3, %3, %3, %3, %3, %3, %3, %3, %3, %3, %3, %3, %3 in 1 : vector<8x128xf32>, vector<8x128xf32>, vector<8x128xf32>, vector<8x128xf32>, vector<8x128xf32>, vector<8x128xf32>, vector<8x128xf32>, vector<8x128xf32>, vector<8x128xf32>, vector<8x128xf32>, vector<8x128xf32>, vector<8x128xf32>, vector<8x128xf32>, vector<8x128xf32>, vector<8x128xf32>, vector<8x128xf32> -> vector<8x2048xf32>
    %15 = tpu.concatenate %6, %6, %6, %6, %6, %6, %6, %6, %6, %6, %6, %6, %6, %6, %6, %6 in 1 : vector<8x128xf32>, vector<8x128xf32>, vector<8x128xf32>, vector<8x128xf32>, vector<8x128xf32>, vector<8x128xf32>, vector<8x128xf32>, vector<8x128xf32>, vector<8x128xf32>, vector<8x128xf32>, vector<8x128xf32>, vector<8x128xf32>, vector<8x128xf32>, vector<8x128xf32>, vector<8x128xf32>, vector<8x128xf32> -> vector<8x2048xf32>
    %16 = tpu.concatenate %9, %9, %9, %9, %9, %9, %9, %9, %9, %9, %9, %9, %9, %9, %9, %9 in 1 : vector<8x128xf32>, vector<8x128xf32>, vector<8x128xf32>, vector<8x128xf32>, vector<8x128xf32>, vector<8x128xf32>, vector<8x128xf32>, vector<8x128xf32>, vector<8x128xf32>, vector<8x128xf32>, vector<8x128xf32>, vector<8x128xf32>, vector<8x128xf32>, vector<8x128xf32>, vector<8x128xf32>, vector<8x128xf32> -> vector<8x2048xf32>
    %17 = tpu.concatenate %14, %15, %16 in 1 : vector<8x2048xf32>, vector<8x2048xf32>, vector<8x2048xf32> -> vector<8x6144xf32>
    %c0_1 = arith.constant 0 : index
    %c0_2 = arith.constant 0 : index
    %18 = vector.load %arg2[%c0_1, %c0_2] : memref<1x6144xf32, #tpu.memory_space<vmem>>, vector<1x6144xf32>
    %19 = vector.broadcast %18 : vector<1x6144xf32> to vector<8x6144xf32>
    %20 = arith.mulf %13, %19 : vector<8x6144xf32>
    %c0_3 = arith.constant 0 : index
    %c0_4 = arith.constant 0 : index
    %21 = vector.load %arg3[%c0_3, %c0_4] : memref<1x6144xf32, #tpu.memory_space<vmem>>, vector<1x6144xf32>
    %22 = vector.broadcast %21 : vector<1x6144xf32> to vector<8x6144xf32>
    %23 = arith.mulf %17, %22 : vector<8x6144xf32>
    %24 = arith.addf %20, %23 : vector<8x6144xf32>
    %c0_5 = arith.constant 0 : index
    %c0_6 = arith.constant 0 : index
    %25 = vector.load %arg4[%c0_5, %c0_6] : memref<1x6144xf32, #tpu.memory_space<vmem>>, vector<1x6144xf32>
    %26 = vector.broadcast %25 : vector<1x6144xf32> to vector<8x6144xf32>
    %27 = arith.addf %24, %26 : vector<8x6144xf32>
    %cst = arith.constant 0.000000e+00 : f32
    %28 = vector.broadcast %cst : f32 to vector<8x6144xf32>
    %29 = arith.maximumf %27, %28 : vector<8x6144xf32>
    %c0_7 = arith.constant 0 : index
    %c0_8 = arith.constant 0 : index
    %30 = vector.load %arg5[%c0_7, %c0_8] : memref<6144x100xf32, #tpu.memory_space<vmem>>, vector<6144x100xf32>
    %cst_9 = arith.constant dense<0.000000e+00> : vector<8x100xf32>
    %31 = tpu.matmul %29, %30, %cst_9 {dimension_numbers = #tpu.dot_dimension_numbers<[1], [0], [0], [1], [0, 0, 1, 1], [], []>} : vector<8x6144xf32>, vector<6144x100xf32>, vector<8x100xf32> -> vector<8x100xf32>
    %c0_10 = arith.constant 0 : index
    %c0_11 = arith.constant 0 : index
    %32 = vector.load %arg6[%c0_10, %c0_11] : memref<1x100xf32, #tpu.memory_space<vmem>>, vector<1x100xf32>
    %33 = vector.broadcast %32 : vector<1x100xf32> to vector<8x100xf32>
    %34 = arith.addf %31, %33 : vector<8x100xf32>
    %cst_12 = arith.constant 0.000000e+00 : f32
    %35 = vector.broadcast %cst_12 : f32 to vector<8x100xf32>
    %36 = arith.maximumf %34, %35 : vector<8x100xf32>
    %c0_13 = arith.constant 0 : index
    %c0_14 = arith.constant 0 : index
    %37 = vector.load %arg7[%c0_13, %c0_14] : memref<100x30xf32, #tpu.memory_space<vmem>>, vector<100x30xf32>
    %cst_15 = arith.constant dense<0.000000e+00> : vector<8x30xf32>
    %38 = tpu.matmul %36, %37, %cst_15 {dimension_numbers = #tpu.dot_dimension_numbers<[1], [0], [0], [1], [0, 0, 1, 1], [], []>} : vector<8x100xf32>, vector<100x30xf32>, vector<8x30xf32> -> vector<8x30xf32>
    %c0_16 = arith.constant 0 : index
    %c0_17 = arith.constant 0 : index
    %39 = vector.load %arg8[%c0_16, %c0_17] : memref<1x30xf32, #tpu.memory_space<vmem>>, vector<1x30xf32>
    %40 = vector.broadcast %39 : vector<1x30xf32> to vector<8x30xf32>
    %41 = arith.addf %38, %40 : vector<8x30xf32>
    %cst_18 = arith.constant 0.000000e+00 : f32
    %42 = vector.broadcast %cst_18 : f32 to vector<8x30xf32>
    %43 = arith.maximumf %41, %42 : vector<8x30xf32>
    %c0_19 = arith.constant 0 : index
    %c0_20 = arith.constant 0 : index
    %44 = vector.load %arg9[%c0_19, %c0_20] : memref<30x30xf32, #tpu.memory_space<vmem>>, vector<30x30xf32>
    %cst_21 = arith.constant dense<0.000000e+00> : vector<8x30xf32>
    %45 = tpu.matmul %43, %44, %cst_21 {dimension_numbers = #tpu.dot_dimension_numbers<[1], [0], [0], [1], [0, 0, 1, 1], [], []>} : vector<8x30xf32>, vector<30x30xf32>, vector<8x30xf32> -> vector<8x30xf32>
    %c0_22 = arith.constant 0 : index
    %c0_23 = arith.constant 0 : index
    %46 = vector.load %arg10[%c0_22, %c0_23] : memref<1x30xf32, #tpu.memory_space<vmem>>, vector<1x30xf32>
    %47 = vector.broadcast %46 : vector<1x30xf32> to vector<8x30xf32>
    %48 = arith.addf %45, %47 : vector<8x30xf32>
    %cst_24 = arith.constant 0.000000e+00 : f32
    %49 = vector.broadcast %cst_24 : f32 to vector<8x30xf32>
    %50 = arith.maximumf %48, %49 : vector<8x30xf32>
    %c0_25 = arith.constant 0 : index
    %c0_26 = arith.constant 0 : index
    %51 = vector.load %arg11[%c0_25, %c0_26] : memref<30x128xf32, #tpu.memory_space<vmem>>, vector<30x128xf32>
    %cst_27 = arith.constant dense<0.000000e+00> : vector<8x128xf32>
    %52 = tpu.matmul %50, %51, %cst_27 {dimension_numbers = #tpu.dot_dimension_numbers<[1], [0], [0], [1], [0, 0, 1, 1], [], []>} : vector<8x30xf32>, vector<30x128xf32>, vector<8x128xf32> -> vector<8x128xf32>
    %c0_28 = arith.constant 0 : index
    %c0_29 = arith.constant 0 : index
    %53 = vector.load %arg12[%c0_28, %c0_29] : memref<1x128xf32, #tpu.memory_space<vmem>>, vector<1x128xf32>
    %54 = vector.broadcast %53 : vector<1x128xf32> to vector<8x128xf32>
    %55 = arith.addf %52, %54 : vector<8x128xf32>
    %c0_30 = arith.constant 0 : index
    %c0_31 = arith.constant 0 : index
    %56 = vector.load %arg13[%c0_30, %c0_31] : memref<8x128xf32, #tpu.memory_space<vmem>>, vector<8x128xf32>
    tpu.vector_store %arg13[%c0_30, %c0_31], %55 {strides = array<i32>} : memref<8x128xf32, #tpu.memory_space<vmem>>, vector<8x128xf32>,
    return
  }
  func.func @transform_0(%arg0: i32) -> (i32, i32) {
    %c0_i32 = arith.constant 0 : i32
    %c0_i32_0 = arith.constant 0 : i32
    return %arg0, %c0_i32 : i32, i32
  }
  func.func @transform_1(%arg0: i32) -> (i32, i32) {
    %c0_i32 = arith.constant 0 : i32
    %c0_i32_0 = arith.constant 0 : i32
    %c0_i32_1 = arith.constant 0 : i32
    return %c0_i32, %c0_i32_0 : i32, i32
  }
  func.func @transform_2(%arg0: i32) -> (i32, i32) {
    %c0_i32 = arith.constant 0 : i32
    %c0_i32_0 = arith.constant 0 : i32
    %c0_i32_1 = arith.constant 0 : i32
    return %c0_i32, %c0_i32_0 : i32, i32
  }
  func.func @transform_3(%arg0: i32) -> (i32, i32) {
    %c0_i32 = arith.constant 0 : i32
    %c0_i32_0 = arith.constant 0 : i32
    %c0_i32_1 = arith.constant 0 : i32
    return %c0_i32, %c0_i32_0 : i32, i32
  }
  func.func @transform_4(%arg0: i32) -> (i32, i32) {
    %c0_i32 = arith.constant 0 : i32
    %c0_i32_0 = arith.constant 0 : i32
    %c0_i32_1 = arith.constant 0 : i32
    return %c0_i32, %c0_i32_0 : i32, i32
  }
  func.func @transform_5(%arg0: i32) -> (i32, i32) {
    %c0_i32 = arith.constant 0 : i32
    %c0_i32_0 = arith.constant 0 : i32
    %c0_i32_1 = arith.constant 0 : i32
    return %c0_i32, %c0_i32_0 : i32, i32
  }
  func.func @transform_6(%arg0: i32) -> (i32, i32) {
    %c0_i32 = arith.constant 0 : i32
    %c0_i32_0 = arith.constant 0 : i32
    %c0_i32_1 = arith.constant 0 : i32
    return %c0_i32, %c0_i32_0 : i32, i32
  }
  func.func @transform_7(%arg0: i32) -> (i32, i32) {
    %c0_i32 = arith.constant 0 : i32
    %c0_i32_0 = arith.constant 0 : i32
    %c0_i32_1 = arith.constant 0 : i32
    return %c0_i32, %c0_i32_0 : i32, i32
  }
  func.func @transform_8(%arg0: i32) -> (i32, i32) {
    %c0_i32 = arith.constant 0 : i32
    %c0_i32_0 = arith.constant 0 : i32
    %c0_i32_1 = arith.constant 0 : i32
    return %c0_i32, %c0_i32_0 : i32, i32
  }
  func.func @transform_9(%arg0: i32) -> (i32, i32) {
    %c0_i32 = arith.constant 0 : i32
    %c0_i32_0 = arith.constant 0 : i32
    %c0_i32_1 = arith.constant 0 : i32
    return %c0_i32, %c0_i32_0 : i32, i32
  }
  func.func @transform_10(%arg0: i32) -> (i32, i32) {
    %c0_i32 = arith.constant 0 : i32
    %c0_i32_0 = arith.constant 0 : i32
    %c0_i32_1 = arith.constant 0 : i32
    return %c0_i32, %c0_i32_0 : i32, i32
  }
  func.func @transform_11(%arg0: i32) -> (i32, i32) {
    %c0_i32 = arith.constant 0 : i32
    %c0_i32_0 = arith.constant 0 : i32
    %c0_i32_1 = arith.constant 0 : i32
    return %c0_i32, %c0_i32_0 : i32, i32
  }
  func.func @transform_12(%arg0: i32) -> (i32, i32) {
    %c0_i32 = arith.constant 0 : i32
    %c0_i32_0 = arith.constant 0 : i32
    return %arg0, %c0_i32 : i32, i32
  }
}

</mosaic_0001>

<bundles_post_ra>
// kernel: tpu_custom_call.1
= control target key start
LH: loop header
LB: loop body
LE: loop exit
PB: predicated region body
PF: predicated region fallthrough
CT: control target
= control target key end

     0   :  { %s5556_s27 = smov 127   ;;  %s5557_s28 = smov 126   ;;  %s8591_s0 = inlined_call_operand.vmem [shape: f32[8,128], index: 0, kind: input, shape index: {}]   ;;  %s8592_s1 = inlined_call_operand.vmem [shape: f32[1,6144], index: 1, kind: input, shape index: {}]   ;;  %s8593_s2 = inlined_call_operand.vmem [shape: f32[1,6144], index: 2, kind: input, shape index: {}]   ;;  %s8594_s3 = inlined_call_operand.vmem [shape: f32[1,6144], index: 3, kind: input, shape index: {}]   ;;  %s8595_s4 = inlined_call_operand.vmem [shape: f32[6144,100], index: 4, kind: input, shape index: {}]   ;;  %s8596_s5 = inlined_call_operand.vmem [shape: f32[1,100], index: 5, kind: input, shape index: {}]   ;;  %s8597_s6 = inlined_call_operand.vmem [shape: f32[100,30], index: 6, kind: input, shape index: {}]   ;;  %s8598_s7 = inlined_call_operand.vmem [shape: f32[1,30], index: 7, kind: input, shape index: {}]   ;;  %s8599_s8 = inlined_call_operand.vmem [shape: f32[30,30], index: 8, kind: input, shape index: {}]   ;;  %s8600_s9 = inlined_call_operand.vmem [shape: f32[1,30], index: 9, kind: input, shape index: {}]   ;;  %s8601_s10 = inlined_call_operand.vmem [shape: f32[30,128], index: 10, kind: input, shape index: {}]   ;;  %s8602_s11 = inlined_call_operand.vmem [shape: f32[1,128], index: 11, kind: input, shape index: {}]   ;;  %s8603_s12 = inlined_call_operand.hbm [shape: f32[8,128], index: 12, kind: output, shape index: {}]  }
   0x1   :  { %v5632_v0 = vld [vmem:[%s8591_s0] sm:$0xff]  ;;  %v1066_v2 = vld [vmem:[%s8595_s4 + $0x88] sm:$0xff]  ;;  %v1067_v13 = vld [vmem:[%s8595_s4 + $0x90] sm:$0xff] }
   0x2   :  { %v1065_v1 = vld [vmem:[%s8595_s4 + $0x80] sm:$0xff]  ;;  %44 = vrot.lane.b32.xlu0 %v5632_v0, %s5556_s27  ;;  %v1098_v5 = vld [vmem:[%s8595_s4 + $0x188] sm:$0xff]  ;;  %v1068_v14 = vld [vmem:[%s8595_s4 + $0x98] sm:$0xff] }
   0x3   :  { %v4721_v3 = vpack.c.bf16 %v1066_v2, %v1065_v1  ;;  %v1097_v4 = vld [vmem:[%s8595_s4 + $0x180] sm:$0xff]  ;;  %v1050_v8 = vld [vmem:[%s8595_s4 + $0x8] sm:$0xff]  ;;  %v1099_v15 = vld [vmem:[%s8595_s4 + $0x190] sm:$0xff]  ;;  %v4725_v16 = vpack.c.bf16 %v1068_v14, %v1067_v13 }
   0x4   :  { %v1049_v6 = vld [vmem:[%s8595_s4] sm:$0xff]  ;;  %v4753_v7 = vpack.c.bf16 %v1098_v5, %v1097_v4  ;;  %v1082_v10 = vld [vmem:[%s8595_s4 + $0x108] sm:$0xff]  ;;  %v1100_v17 = vld [vmem:[%s8595_s4 + $0x198] sm:$0xff] }
   0x5   :  { %v1081_v9 = vld [vmem:[%s8595_s4 + $0x100] sm:$0xff]  ;;  %4722 = vmatprep.subr.bf16.mxu0 %v4721_v3  ;;  %v4723_v11 = vpack.c.bf16 %v1050_v8, %v1049_v6  ;;  %v1051_v18 = vld [vmem:[%s8595_s4 + $0x10] sm:$0xff]  ;;  %v1052_v19 = vld [vmem:[%s8595_s4 + $0x18] sm:$0xff]  ;;  %v4757_v20 = vpack.c.bf16 %v1100_v17, %v1099_v15 }
   0x6   :  { %v4755_v12 = vpack.c.bf16 %v1082_v10, %v1081_v9  ;;  %4754 = vmatprep.subr.bf16.mxu1 %v4753_v7  ;;  %v4727_v21 = vpack.c.bf16 %v1052_v19, %v1051_v18  ;;  %v1083_v22 = vld [vmem:[%s8595_s4 + $0x110] sm:$0xff]  ;;  %v1084_v23 = vld [vmem:[%s8595_s4 + $0x118] sm:$0xff]  ;;  %v1069_v24 = vld [vmem:[%s8595_s4 + $0xa0] sm:$0xff]  ;;  %47 = vrot.lane.b32.xlu0 %v5632_v0, %s5557_s28 }
   0x7   :  { %4724 = vmatpush3.bf16.msra.mxu0 %v4723_v11  ;;  %v4759_v25 = vpack.c.bf16 %v1084_v23, %v1083_v22  ;;  %v1070_v26 = vld [vmem:[%s8595_s4 + $0xa8] sm:$0xff]  ;;  %v1101_v27 = vld [vmem:[%s8595_s4 + $0x1a0] sm:$0xff]  ;;  %v1071_v35 = vld [vmem:[%s8595_s4 + $0xb0] sm:$0xff] }
   0x8   :  { %4756 = vmatpush3.bf16.msra.mxu1 %v4755_v12  ;;  %4726 = vmatprep.subr.bf16.mxu0 %v4725_v16  ;;  %v1102_v28 = vld [vmem:[%s8595_s4 + $0x1a8] sm:$0xff]  ;;  %v4729_v29 = vpack.c.bf16 %v1070_v26, %v1069_v24  ;;  %v1053_v31 = vld [vmem:[%s8595_s4 + $0x20] sm:$0xff]  ;;  %v1072_v36 = vld [vmem:[%s8595_s4 + $0xb8] sm:$0xff] }
   0x9   :  { %4758 = vmatprep.subr.bf16.mxu1 %v4757_v20  ;;  %v4761_v30 = vpack.c.bf16 %v1102_v28, %v1101_v27  ;;  %v1054_v32 = vld [vmem:[%s8595_s4 + $0x28] sm:$0xff]  ;;  %v1085_v33 = vld [vmem:[%s8595_s4 + $0x120] sm:$0xff]  ;;  %v1103_v39 = vld [vmem:[%s8595_s4 + $0x1b0] sm:$0xff]  ;;  %v4733_v42 = vpack.c.bf16 %v1072_v36, %v1071_v35 }
   0xa   :  { %v1086_v34 = vld [vmem:[%s8595_s4 + $0x128] sm:$0xff]  ;;  %v4731_v37 = vpack.c.bf16 %v1054_v32, %v1053_v31  ;;  %v1104_v40 = vld [vmem:[%s8595_s4 + $0x1b8] sm:$0xff]  ;;  %v1055_v41 = vld [vmem:[%s8595_s4 + $0x30] sm:$0xff] }
   0xb   :  { %4728 = vmatpush3.bf16.msra.mxu0 %v4727_v21  ;;  %v4763_v38 = vpack.c.bf16 %v1086_v34, %v1085_v33  ;;  %v4765_v43 = vpack.c.bf16 %v1104_v40, %v1103_v39  ;;  %v1056_v44 = vld [vmem:[%s8595_s4 + $0x38] sm:$0xff]  ;;  %v1087_v45 = vld [vmem:[%s8595_s4 + $0x130] sm:$0xff]  ;;  %v1073_v47 = vld [vmem:[%s8595_s4 + $0xc0] sm:$0xff] }
   0xc   :  { %4760 = vmatpush3.bf16.msra.mxu1 %v4759_v25  ;;  %4730 = vmatprep.subr.bf16.mxu0 %v4729_v29  ;;  %v1088_v46 = vld [vmem:[%s8595_s4 + $0x138] sm:$0xff]  ;;  %v1074_v48 = vld [vmem:[%s8595_s4 + $0xc8] sm:$0xff]  ;;  %v1105_v49 = vld [vmem:[%s8595_s4 + $0x1c0] sm:$0xff]  ;;  %v4735_v51 = vpack.c.bf16 %v1056_v44, %v1055_v41 }
   0xd   :  { %4762 = vmatprep.subr.bf16.mxu1 %v4761_v30  ;;  %v1106_v50 = vld [vmem:[%s8595_s4 + $0x1c8] sm:$0xff]  ;;  %v4767_v52 = vpack.c.bf16 %v1088_v46, %v1087_v45  ;;  %v1057_v53 = vld [vmem:[%s8595_s4 + $0x40] sm:$0xff]  ;;  %v4737_v55 = vpack.c.bf16 %v1074_v48, %v1073_v47  ;;  %v1075_v59 = vld [vmem:[%s8595_s4 + $0xd0] sm:$0xff] }
   0xe   :  { %v1058_v54 = vld [vmem:[%s8595_s4 + $0x48] sm:$0xff]  ;;  %v4769_v56 = vpack.c.bf16 %v1106_v50, %v1105_v49  ;;  %v1089_v57 = vld [vmem:[%s8595_s4 + $0x140] sm:$0xff]  ;;  %v1076_v60 = vld [vmem:[%s8595_s4 + $0xd8] sm:$0xff] }
   0xf   :  { %4732 = vmatpush3.bf16.msra.mxu0 %v4731_v37  ;;  %v1090_v58 = vld [vmem:[%s8595_s4 + $0x148] sm:$0xff]  ;;  %v1107_v61 = vld [vmem:[%s8595_s4 + $0x1d0] sm:$0xff]  ;;  %v1108_v62 = vld [vmem:[%s8595_s4 + $0x1d8] sm:$0xff]  ;;  %v4739_v63 = vpack.c.bf16 %v1058_v54, %v1057_v53  ;;  %v4741_v4 = vpack.c.bf16 %v1076_v60, %v1075_v59 }
  0x10   :  { %4764 = vmatpush3.bf16.msra.mxu1 %v4763_v38  ;;  %4734 = vmatprep.subr.bf16.mxu0 %v4733_v42  ;;  %v4771_v1 = vpack.c.bf16 %v1090_v58, %v1089_v57  ;;  %v1059_v2 = vld [vmem:[%s8595_s4 + $0x50] sm:$0xff]  ;;  %v1060_v3 = vld [vmem:[%s8595_s4 + $0x58] sm:$0xff]  ;;  %v4773_v5 = vpack.c.bf16 %v1108_v62, %v1107_v61  ;;  %v1077_v8 = vld [vmem:[%s8595_s4 + $0xe0] sm:$0xff] }
  0x11   :  { %4766 = vmatprep.subr.bf16.mxu1 %v4765_v43  ;;  %v1091_v6 = vld [vmem:[%s8595_s4 + $0x150] sm:$0xff]  ;;  %v1092_v7 = vld [vmem:[%s8595_s4 + $0x158] sm:$0xff]  ;;  %v1078_v9 = vld [vmem:[%s8595_s4 + $0xe8] sm:$0xff]  ;;  %v4743_v12 = vpack.c.bf16 %v1060_v3, %v1059_v2 }
  0x12   :  { %v1109_v10 = vld [vmem:[%s8595_s4 + $0x1e0] sm:$0xff]  ;;  %v1110_v11 = vld [vmem:[%s8595_s4 + $0x1e8] sm:$0xff]  ;;  %v4775_v13 = vpack.c.bf16 %v1092_v7, %v1091_v6  ;;  %v4745_v16 = vpack.c.bf16 %v1078_v9, %v1077_v8  ;;  %v1079_v20 = vld [vmem:[%s8595_s4 + $0xf0] sm:$0xff] }
  0x13   :  { %4736 = vmatpush3.bf16.msra.mxu0 %v4735_v51  ;;  %v1061_v14 = vld [vmem:[%s8595_s4 + $0x60] sm:$0xff]  ;;  %v1062_v15 = vld [vmem:[%s8595_s4 + $0x68] sm:$0xff]  ;;  %v4777_v17 = vpack.c.bf16 %v1110_v11, %v1109_v10  ;;  %v1080_v21 = vld [vmem:[%s8595_s4 + $0xf8] sm:$0xff] }
  0x14   :  { %4768 = vmatpush3.bf16.msra.mxu1 %v4767_v52  ;;  %4738 = vmatprep.subr.bf16.mxu0 %v4737_v55  ;;  %v1093_v18 = vld [vmem:[%s8595_s4 + $0x160] sm:$0xff]  ;;  %v1094_v19 = vld [vmem:[%s8595_s4 + $0x168] sm:$0xff]  ;;  %v1111_v22 = vld [vmem:[%s8595_s4 + $0x1f0] sm:$0xff]  ;;  %v4747_v24 = vpack.c.bf16 %v1062_v15, %v1061_v14  ;;  %v4749_v28 = vpack.c.bf16 %v1080_v21, %v1079_v20 }
  0x15   :  { %4770 = vmatprep.subr.bf16.mxu1 %v4769_v56  ;;  %v1112_v23 = vld [vmem:[%s8595_s4 + $0x1f8] sm:$0xff]  ;;  %v4779_v25 = vpack.c.bf16 %v1094_v19, %v1093_v18  ;;  %v1063_v26 = vld [vmem:[%s8595_s4 + $0x70] sm:$0xff]  ;;  %v1129_v32 = vld [vmem:[%s8595_s4 + $0x280] sm:$0xff] }
  0x16   :  { %v1064_v27 = vld [vmem:[%s8595_s4 + $0x78] sm:$0xff]  ;;  %v4781_v29 = vpack.c.bf16 %v1112_v23, %v1111_v22  ;;  %v1095_v30 = vld [vmem:[%s8595_s4 + $0x170] sm:$0xff]  ;;  %v1130_v33 = vld [vmem:[%s8595_s4 + $0x288] sm:$0xff] }
  0x17   :  { %4740 = vmatpush3.bf16.msra.mxu0 %v4739_v63  ;;  %v1096_v31 = vld [vmem:[%s8595_s4 + $0x178] sm:$0xff]  ;;  %v1161_v34 = vld [vmem:[%s8595_s4 + $0x380] sm:$0xff]  ;;  %v1162_v35 = vld [vmem:[%s8595_s4 + $0x388] sm:$0xff]  ;;  %v4751_v36 = vpack.c.bf16 %v1064_v27, %v1063_v26  ;;  %v4785_v38 = vpack.c.bf16 %v1130_v33, %v1129_v32 }
  0x18   :  { %4772 = vmatpush3.bf16.msra.mxu1 %v4771_v1  ;;  %4742 = vmatprep.subr.bf16.mxu0 %v4741_v4  ;;  %v4783_v37 = vpack.c.bf16 %v1096_v31, %v1095_v30  ;;  %v4817_v39 = vpack.c.bf16 %v1162_v35, %v1161_v34 }
  0x19   :  { %4774 = vmatprep.subr.bf16.mxu1 %v4773_v5 }
  0x1b   :  { %4744 = vmatpush3.bf16.msra.mxu0 %v4743_v12 }
  0x1c   :  { %4776 = vmatpush3.bf16.msra.mxu1 %v4775_v13  ;;  %4746 = vmatprep.subr.bf16.mxu0 %v4745_v16 }
  0x1d   :  { %4778 = vmatprep.subr.bf16.mxu1 %v4777_v17 }
  0x1f   :  { %4748 = vmatpush3.bf16.msra.mxu0 %v4747_v24 }
  0x20   :  { %4780 = vmatpush3.bf16.msra.mxu1 %v4779_v25  ;;  %4750 = vmatprep.subr.bf16.mxu0 %v4749_v28 }
  0x21   :  { %4782 = vmatprep.subr.bf16.mxu1 %v4781_v29 }
  0x23   :  { %4752 = vmatpush3.bf16.msra.mxu0 %v4751_v36 }
  0x24   :  { %4784 = vmatpush3.bf16.msra.mxu1 %v4783_v37  ;;  %4786 = vmatprep.subr.bf16.mxu0 %v4785_v38 }
  0x25   :  { %4818 = vmatprep.subr.bf16.mxu1 %v4817_v39 }
  0x26   :  { %17 = vsyncpa [#allocation3], 0  ;;  %v65_v40 = vlaneseq  ;;  %v5857_v46 = vld [vmem:[%s8592_s1] sm:$0xff]  ;;  %v1114_v24 = vld [vmem:[%s8595_s4 + $0x208] sm:$0xff]  ;;  %s5558_s23 = smov 125   ;;  %vm5560_vm0 = vmmov 0  }
  0x27   :  { %v5868_v49 = vld [vmem:[%s8593_s2] sm:$0xff]  ;;  %v1146_v26 = vld [vmem:[%s8595_s4 + $0x308] sm:$0xff]  ;;  %v1131_v34 = vld [vmem:[%s8595_s4 + $0x290] sm:$0xff]  ;;  %50 = vrot.lane.b32.xlu1 %v5632_v0, %s5558_s23  ;;  %vm3529_vm1 = vcmask 1043456   ;;  %vm3525_vm2 = vcmask 818176   ;;  %vm3619_vm3 = vcmask 1045504  }
  0x28   :  { %v5840_v41 = vshrl.u32 %v65_v40, 7  ;;  %v5875_v51 = vld [vmem:[%s8594_s3] sm:$0xff]  ;;  %v1132_v35 = vld [vmem:[%s8595_s4 + $0x298] sm:$0xff]  ;;  %v1163_v36 = vld [vmem:[%s8595_s4 + $0x390] sm:$0xff]  ;;  %vm5562_vm4 = vmmov 1   ;;  %vm3615_vm6 = vcmask 244736  }
  0x29   :  { %v1113_v15 = vld [vmem:[%s8595_s4 + $0x200] sm:$0xff]  ;;  %vm8544_vm5 = vmpackc.low %vm3619_vm3, %vm5562_vm4  ;;  %s5563_s15 = smov [#allocation2]  }
  0x2a   :  { %v5843_v42 = vsub.s32 1, %v5840_v41  ;;  %v5846_v43 = vsub.s32 3, %v5840_v41  ;;  %v5849_v44 = vsub.s32 0, %v5840_v41  ;;  %v5852_v45 = vsub.s32 2, %v5840_v41  ;;  %v1145_v25 = vld [vmem:[%s8595_s4 + $0x300] sm:$0xff] }
  0x2b   :  { %v5860_v47 = vsub.s32 5, %v5840_v41  ;;  %v5863_v48 = vsub.s32 7, %v5840_v41  ;;  %v5938_v29 = vsub.s32 6, %v5840_v41  ;;  %v4787_v37 = vpack.c.bf16 %v1114_v24, %v1113_v15 }
  0x2c   :  { %v72_v50 = vrot.slane %v5857_v46, %v5843_v42  ;;  %v80_v52 = vrot.slane %v5857_v46, %v5846_v43  ;;  %v68_v53 = vrot.slane %v5857_v46, %v5849_v44  ;;  %v76_v54 = vrot.slane %v5857_v46, %v5852_v45 }
  0x2d   :  { %v88_v55 = vrot.slane %v5857_v46, %v5860_v47  ;;  %v96_v56 = vrot.slane %v5857_v46, %v5863_v48  ;;  %v372_v57 = vrot.slane %v5868_v49, %v5843_v42  ;;  %v380_v58 = vrot.slane %v5868_v49, %v5846_v43 }
  0x2e   :  { %v368_v59 = vrot.slane %v5868_v49, %v5849_v44  ;;  %v376_v60 = vrot.slane %v5868_v49, %v5852_v45  ;;  %v720_v61 = vrot.slane %v5875_v51, %v5843_v42  ;;  %v728_v62 = vrot.slane %v5875_v51, %v5846_v43 }
  0x2f   :  { %v388_v63 = vrot.slane %v5868_v49, %v5860_v47  ;;  %v396_v1 = vrot.slane %v5868_v49, %v5863_v48  ;;  %v306_v2 = vmul.f32 %v72_v50, %v5632_v0  ;;  %v308_v3 = vmul.f32 %v80_v52, %v5632_v0  ;;  %v1164_v50 = vld [vmem:[%s8595_s4 + $0x398] sm:$0xff]  ;;  %v1115_v52 = vld [vmem:[%s8595_s4 + $0x210] sm:$0xff] }
  0x30   :  { %v305_v4 = vmul.f32 %v68_v53, %v5632_v0  ;;  %v307_v5 = vmul.f32 %v76_v54, %v5632_v0  ;;  %v716_v7 = vrot.slane %v5875_v51, %v5849_v44  ;;  %v724_v8 = vrot.slane %v5875_v51, %v5852_v45  ;;  %v5958_v53 = vld [vmem:[%s8592_s1 + $0x8] sm:$0xff] }
  0x31   :  { %v310_v9 = vmul.f32 %v88_v55, %v5632_v0  ;;  %v312_v10 = vmul.f32 %v96_v56, %v5632_v0  ;;  %v736_v17 = vrot.slane %v5875_v51, %v5860_v47  ;;  %v744_v19 = vrot.slane %v5875_v51, %v5863_v48 }
  0x32   :  { %v4819_v38 = vpack.c.bf16 %v1146_v26, %v1145_v25  ;;  %v1119_v26 = vld [vmem:[%s8595_s4 + $0x230] sm:$0xff] }
  0x74   :  { %v5907_v6 = vpop.permute.xlu0 %44 }
  0x75   :  { %v606_v11 = vmul.f32 %v372_v57, %v5907_v6  ;;  %v608_v12 = vmul.f32 %v380_v58, %v5907_v6  ;;  %v605_v13 = vmul.f32 %v368_v59, %v5907_v6  ;;  %v607_v14 = vmul.f32 %v376_v60, %v5907_v6  ;;  %v1116_v58 = vld [vmem:[%s8595_s4 + $0x218] sm:$0xff]  ;;  %v1147_v59 = vld [vmem:[%s8595_s4 + $0x310] sm:$0xff] }
  0x76   :  { %v610_v16 = vmul.f32 %v388_v63, %v5907_v6  ;;  %v612_v18 = vmul.f32 %v396_v1, %v5907_v6  ;;  %v1148_v60 = vld [vmem:[%s8595_s4 + $0x318] sm:$0xff]  ;;  %v4789_v63 = vpack.c.bf16 %v1132_v35, %v1131_v34  ;;  %v4821_v1 = vpack.c.bf16 %v1164_v50, %v1163_v36  ;;  %v1137_v35 = vld [vmem:[%s8595_s4 + $0x2c0] sm:$0xff]  ;;  %v1138_v36 = vld [vmem:[%s8595_s4 + $0x2c8] sm:$0xff] }
  0x77   :  { %v654_v20 = vadd.f32 %v606_v11, %v306_v2  ;;  %v656_v21 = vadd.f32 %v608_v12, %v308_v3  ;;  %v653_v22 = vadd.f32 %v605_v13, %v305_v4  ;;  %v655_v23 = vadd.f32 %v607_v14, %v307_v5  ;;  %v1134_v2 = vld [vmem:[%s8595_s4 + $0x2a8] sm:$0xff]  ;;  %v1165_v3 = vld [vmem:[%s8595_s4 + $0x3a0] sm:$0xff]  ;;  %v1152_v34 = vld [vmem:[%s8595_s4 + $0x338] sm:$0xff] }
  0x78   :  { %v658_v27 = vadd.f32 %v610_v16, %v310_v9  ;;  %v660_v28 = vadd.f32 %v612_v18, %v312_v10  ;;  %v1166_v4 = vld [vmem:[%s8595_s4 + $0x3a8] sm:$0xff]  ;;  %v124_v5 = vrot.slane %v5958_v53, %v5938_v29  ;;  %v4791_v9 = vpack.c.bf16 %v1116_v58, %v1115_v52  ;;  %v1117_v11 = vld [vmem:[%s8595_s4 + $0x220] sm:$0xff]  ;;  %v1135_v18 = vld [vmem:[%s8595_s4 + $0x2b0] sm:$0xff] }
  0x79   :  { %v954_v30 = vadd.f32 %v720_v61, %v654_v20  ;;  %v956_v31 = vadd.f32 %v728_v62, %v656_v21  ;;  %v953_v32 = vadd.f32 %v716_v7, %v653_v22  ;;  %v955_v33 = vadd.f32 %v724_v8, %v655_v23  ;;  %v1133_v61 = vld [vmem:[%s8595_s4 + $0x2a0] sm:$0xff]  ;;  %v5975_v62 = vld [vmem:[%s8593_s2 + $0x8] sm:$0xff]  ;;  %v1136_v20 = vld [vmem:[%s8595_s4 + $0x2b8] sm:$0xff] }
  0x7a   :  { %v958_v39 = vadd.f32 %v736_v17, %v658_v27  ;;  %v960_v40 = vadd.f32 %v744_v19, %v660_v28  ;;  %v4823_v10 = vpack.c.bf16 %v1148_v60, %v1147_v59  ;;  %v1118_v12 = vld [vmem:[%s8595_s4 + $0x228] sm:$0xff]  ;;  %v1149_v13 = vld [vmem:[%s8595_s4 + $0x320] sm:$0xff]  ;;  %v424_v14 = vrot.slane %v5975_v62, %v5938_v29  ;;  %v1167_v21 = vld [vmem:[%s8595_s4 + $0x3b0] sm:$0xff] }
  0x7b   :  { %v1002_v54 = vmax.f32 %v954_v30, 0.0  ;;  %v1004_v55 = vmax.f32 %v956_v31, 0.0  ;;  %v1001_v56 = vmax.f32 %v953_v32, 0.0  ;;  %v1003_v57 = vmax.f32 %v955_v33, 0.0  ;;  %v1150_v17 = vld [vmem:[%s8595_s4 + $0x328] sm:$0xff]  ;;  %v1168_v22 = vld [vmem:[%s8595_s4 + $0x3b8] sm:$0xff] }
  0x7c   :  { %v1006_v7 = vmax.f32 %v958_v39, 0.0  ;;  %v1008_v8 = vmax.f32 %v960_v40, 0.0  ;;  %v4793_v15 = vpack.c.bf16 %v1134_v2, %v1133_v61  ;;  %v4825_v16 = vpack.c.bf16 %v1166_v4, %v1165_v3  ;;  %v6008_v19 = vld [vmem:[%s8594_s3 + $0x8] sm:$0xff]  ;;  %v1120_v27 = vld [vmem:[%s8595_s4 + $0x238] sm:$0xff]  ;;  %v1151_v33 = vld [vmem:[%s8595_s4 + $0x330] sm:$0xff] }
  0x7d   :  { %1888 = vmatprep.mubr.f32.mxu0 %v1002_v54  ;;  %1958 = vmatprep.mubr.f32.mxu1 %v1004_v55  ;;  %v319_v23 = vmul.f32 %v124_v5, %v5632_v0  ;;  %v4795_v24 = vpack.c.bf16 %v1118_v12, %v1117_v11  ;;  %v4827_v25 = vpack.c.bf16 %v1150_v17, %v1149_v13  ;;  %v6049_v40 = vsub.s32 4, %v5840_v41  ;;  %v1121_v54 = vld [vmem:[%s8595_s4 + $0x240] sm:$0xff]  ;;  %v1122_v55 = vld [vmem:[%s8595_s4 + $0x248] sm:$0xff]  ;;  %v1139_v60 = vld [vmem:[%s8595_s4 + $0x2d0] sm:$0xff] }
  0x7e   :  { %1889 = vmatmul.mubr.f32.vlgmr.msra.gmra.mrb[0].mxu0 %v1001_v56  ;;  %1959 = vmatmul.mubr.f32.vlgmr.msra.gmra.mrb[0].mxu1 %v1003_v57  ;;  %v619_v28 = vmul.f32 %v424_v14, %v5907_v6  ;;  %v772_v30 = vrot.slane %v6008_v19, %v5938_v29  ;;  %v4797_v31 = vpack.c.bf16 %v1136_v20, %v1135_v18  ;;  %v1153_v41 = vld [vmem:[%s8595_s4 + $0x340] sm:$0xff]  ;;  %v1154_v59 = vld [vmem:[%s8595_s4 + $0x348] sm:$0xff]  ;;  %v1140_v61 = vld [vmem:[%s8595_s4 + $0x2d8] sm:$0xff] }
  0x7f   :  { %4788 = vmatpush3.bf16.msra.mxu0 %v4787_v37  ;;  %4820 = vmatpush3.bf16.msra.mxu1 %v4819_v38  ;;  %v4829_v32 = vpack.c.bf16 %v1168_v22, %v1167_v21  ;;  %v1169_v37 = vld [vmem:[%s8595_s4 + $0x3c0] sm:$0xff]  ;;  %v1170_v38 = vld [vmem:[%s8595_s4 + $0x3c8] sm:$0xff]  ;;  %v4799_v50 = vpack.c.bf16 %v1120_v27, %v1119_v26  ;;  %v4831_v52 = vpack.c.bf16 %v1152_v34, %v1151_v33  ;;  %v1156_v12 = vld [vmem:[%s8595_s4 + $0x358] sm:$0xff] }
  0x80   :  { %2028 = vmatprep.mubr.f32.mxu0 %v1006_v7  ;;  %2098 = vmatprep.mubr.f32.mxu1 %v1008_v8  ;;  %v667_v39 = vadd.f32 %v619_v28, %v319_v23  ;;  %v4801_v57 = vpack.c.bf16 %v1138_v36, %v1137_v35  ;;  %v4833_v58 = vpack.c.bf16 %v1170_v38, %v1169_v37  ;;  %v1123_v7 = vld [vmem:[%s8595_s4 + $0x250] sm:$0xff]  ;;  %v1124_v8 = vld [vmem:[%s8595_s4 + $0x258] sm:$0xff]  ;;  %v1141_v13 = vld [vmem:[%s8595_s4 + $0x2e0] sm:$0xff] }
  0x81   :  { %4790 = vmatprep.subr.bf16.mxu0 %v4789_v63  ;;  %4822 = vmatprep.subr.bf16.mxu1 %v4821_v1  ;;  %v1171_v63 = vld [vmem:[%s8595_s4 + $0x3d0] sm:$0xff]  ;;  %v1172_v1 = vld [vmem:[%s8595_s4 + $0x3d8] sm:$0xff]  ;;  %v84_v2 = vrot.slane %v5857_v46, %v6049_v40  ;;  %v92_v3 = vrot.slane %v5857_v46, %v5938_v29  ;;  %v4803_v4 = vpack.c.bf16 %v1122_v55, %v1121_v54  ;;  %v1142_v14 = vld [vmem:[%s8595_s4 + $0x2e8] sm:$0xff] }
  0x82   :  { %v6057_v56 = vadd.f32 %v772_v30, %v667_v39  ;;  %v4835_v5 = vpack.c.bf16 %v1154_v59, %v1153_v41  ;;  %v4805_v46 = vpack.c.bf16 %v1140_v61, %v1139_v60  ;;  %v4837_v11 = vpack.c.bf16 %v1172_v1, %v1171_v63  ;;  %v1174_v17 = vld [vmem:[%s8595_s4 + $0x3e8] sm:$0xff]  ;;  %v1125_v27 = vld [vmem:[%s8595_s4 + $0x260] sm:$0xff]  ;;  %v1143_v33 = vld [vmem:[%s8595_s4 + $0x2f0] sm:$0xff] }
  0x83   :  { %4792 = vmatpush3.bf16.msra.mxu0 %v4791_v9  ;;  %4824 = vmatpush3.bf16.msra.mxu1 %v4823_v10  ;;  %v1155_v9 = vld [vmem:[%s8595_s4 + $0x350] sm:$0xff]  ;;  %v384_v10 = vrot.slane %v5868_v49, %v6049_v40  ;;  %v104_v18 = vrot.slane %v5958_v53, %v5843_v42  ;;  %v404_v20 = vrot.slane %v5975_v62, %v5843_v42  ;;  %v1126_v28 = vld [vmem:[%s8595_s4 + $0x268] sm:$0xff]  ;;  %v1157_v30 = vld [vmem:[%s8595_s4 + $0x360] sm:$0xff] }
  0x84   :  { %4794 = vmatprep.subr.bf16.mxu0 %v4793_v15  ;;  %4826 = vmatprep.subr.bf16.mxu1 %v4825_v16  ;;  %v392_v15 = vrot.slane %v5868_v49, %v5938_v29  ;;  %v1173_v16 = vld [vmem:[%s8595_s4 + $0x3e0] sm:$0xff]  ;;  %v309_v21 = vmul.f32 %v84_v2, %v5632_v0  ;;  %v311_v22 = vmul.f32 %v92_v3, %v5632_v0  ;;  %v1144_v34 = vld [vmem:[%s8595_s4 + $0x2f8] sm:$0xff]  ;;  %v1175_v37 = vld [vmem:[%s8595_s4 + $0x3f0] sm:$0xff] }
  0x85   :  { %v112_v49 = vrot.slane %v5958_v53, %v5846_v43  ;;  %v412_v23 = vrot.slane %v5975_v62, %v5846_v43  ;;  %v4809_v26 = vpack.c.bf16 %v1142_v14, %v1141_v13  ;;  %v609_v35 = vmul.f32 %v384_v10, %v5907_v6  ;;  %v1176_v38 = vld [vmem:[%s8595_s4 + $0x3f8] sm:$0xff]  ;;  %v1127_v60 = vld [vmem:[%s8595_s4 + $0x270] sm:$0xff] }
  0x86   :  { %v611_v36 = vmul.f32 %v392_v15, %v5907_v6  ;;  %v314_v39 = vmul.f32 %v104_v18, %v5632_v0  ;;  %v740_v54 = vrot.slane %v5875_v51, %v5938_v29  ;;  %v4813_v59 = vpack.c.bf16 %v1144_v34, %v1143_v33  ;;  %v1128_v61 = vld [vmem:[%s8595_s4 + $0x278] sm:$0xff]  ;;  %v1177_v18 = vld [vmem:[%s8595_s4 + $0x400] sm:$0xff]  ;;  %v1179_v33 = vld [vmem:[%s8595_s4 + $0x410] sm:$0xff] }
  0x87   :  { %4796 = vmatpush3.bf16.msra.mxu0 %v4795_v24  ;;  %4828 = vmatpush3.bf16.msra.mxu1 %v4827_v25  ;;  %v4807_v24 = vpack.c.bf16 %v1124_v8, %v1123_v7  ;;  %v4839_v25 = vpack.c.bf16 %v1156_v12, %v1155_v9  ;;  %v316_v55 = vmul.f32 %v112_v49, %v5632_v0  ;;  %v1160_v1 = vld [vmem:[%s8595_s4 + $0x378] sm:$0xff]  ;;  %v1225_v7 = vld [vmem:[%s8595_s4 + $0x580] sm:$0xff]  ;;  %v1226_v8 = vld [vmem:[%s8595_s4 + $0x588] sm:$0xff] }
  0x88   :  { %4798 = vmatprep.subr.bf16.mxu0 %v4797_v31  ;;  %4830 = vmatprep.subr.bf16.mxu1 %v4829_v32  ;;  %v4841_v31 = vpack.c.bf16 %v1174_v17, %v1173_v16  ;;  %v1158_v32 = vld [vmem:[%s8595_s4 + $0x368] sm:$0xff]  ;;  %v4845_v63 = vpack.c.bf16 %v1176_v38, %v1175_v37  ;;  %v657_v2 = vadd.f32 %v609_v35, %v309_v21  ;;  %v1180_v34 = vld [vmem:[%s8595_s4 + $0x418] sm:$0xff]  ;;  %v1211_v35 = vld [vmem:[%s8595_s4 + $0x510] sm:$0xff] }
  0x89   :  { %v4843_v41 = vpack.c.bf16 %v1158_v32, %v1157_v30  ;;  %v659_v3 = vadd.f32 %v611_v36, %v311_v22  ;;  %v752_v10 = vrot.slane %v6008_v19, %v5843_v42  ;;  %v4815_v12 = vpack.c.bf16 %v1128_v61, %v1127_v60  ;;  %v1209_v22 = vld [vmem:[%s8595_s4 + $0x500] sm:$0xff]  ;;  %v1210_v49 = vld [vmem:[%s8595_s4 + $0x508] sm:$0xff] }
  0x8a   :  { %v4881_v17 = vpack.c.bf16 %v1226_v8, %v1225_v7  ;;  %v4883_v32 = vpack.c.bf16 %v1210_v49, %v1209_v22  ;;  %v1181_v60 = vld [vmem:[%s8595_s4 + $0x420] sm:$0xff]  ;;  %v1182_v61 = vld [vmem:[%s8595_s4 + $0x428] sm:$0xff] }
  0x8b   :  { %4800 = vmatpush3.bf16.msra.mxu0 %v4799_v50  ;;  %4832 = vmatpush3.bf16.msra.mxu1 %v4831_v52  ;;  %v614_v50 = vmul.f32 %v404_v20, %v5907_v6  ;;  %v732_v52 = vrot.slane %v5875_v51, %v6049_v40  ;;  %v1159_v51 = vld [vmem:[%s8595_s4 + $0x370] sm:$0xff]  ;;  %v959_v16 = vadd.f32 %v740_v54, %v659_v3  ;;  %v1178_v20 = vld [vmem:[%s8595_s4 + $0x408] sm:$0xff]  ;;  %v1200_v3 = vld [vmem:[%s8595_s4 + $0x4b8] sm:$0xff] }
  0x8c   :  { %4802 = vmatprep.subr.bf16.mxu0 %v4801_v57  ;;  %4834 = vmatprep.subr.bf16.mxu1 %v4833_v58  ;;  %v616_v57 = vmul.f32 %v412_v23, %v5907_v6  ;;  %v4811_v58 = vpack.c.bf16 %v1126_v28, %v1125_v27  ;;  %v4847_v13 = vpack.c.bf16 %v1160_v1, %v1159_v51  ;;  %v1195_v23 = vld [vmem:[%s8595_s4 + $0x490] sm:$0xff]  ;;  %v1228_v27 = vld [vmem:[%s8595_s4 + $0x598] sm:$0xff]  ;;  %v1213_v51 = vld [vmem:[%s8595_s4 + $0x520] sm:$0xff] }
  0x8d   :  { %v662_v9 = vadd.f32 %v614_v50, %v314_v39  ;;  %v957_v15 = vadd.f32 %v732_v52, %v657_v2  ;;  %v4851_v28 = vpack.c.bf16 %v1178_v20, %v1177_v18  ;;  %v1212_v39 = vld [vmem:[%s8595_s4 + $0x518] sm:$0xff]  ;;  %v1197_v50 = vld [vmem:[%s8595_s4 + $0x4a0] sm:$0xff]  ;;  %v1198_v52 = vld [vmem:[%s8595_s4 + $0x4a8] sm:$0xff]  ;;  %v4859_v7 = vpack.c.bf16 %v1182_v61, %v1181_v60 }
  0x8e   :  { %v1214_v1 = vld [vmem:[%s8595_s4 + $0x528] sm:$0xff]  ;;  %v1199_v2 = vld [vmem:[%s8595_s4 + $0x4b0] sm:$0xff]  ;;  %v1185_v22 = vld [vmem:[%s8595_s4 + $0x440] sm:$0xff]  ;;  %v420_v60 = vrot.slane %v5975_v62, %v5860_v47 }
  0x8f   :  { %4804 = vmatpush3.bf16.msra.mxu0 %v4803_v4  ;;  %4836 = vmatpush3.bf16.msra.mxu1 %v4835_v5  ;;  %v1193_v4 = vld [vmem:[%s8595_s4 + $0x480] sm:$0xff]  ;;  %v1194_v5 = vld [vmem:[%s8595_s4 + $0x488] sm:$0xff]  ;;  %v962_v21 = vadd.f32 %v752_v10, %v662_v9  ;;  %v1005_v30 = vmax.f32 %v957_v15, 0.0  ;;  %v4891_v8 = vpack.c.bf16 %v1214_v1, %v1213_v51  ;;  %v4861_v9 = vpack.c.bf16 %v1200_v3, %v1199_v2  ;;  %v1183_v10 = vld [vmem:[%s8595_s4 + $0x430] sm:$0xff] }
  0x90   :  { %4806 = vmatprep.subr.bf16.mxu0 %v4805_v46  ;;  %4838 = vmatprep.subr.bf16.mxu1 %v4837_v11  ;;  %v664_v46 = vadd.f32 %v616_v57, %v316_v55  ;;  %v760_v11 = vrot.slane %v6008_v19, %v5846_v43  ;;  %v4849_v14 = vpack.c.bf16 %v1194_v5, %v1193_v4  ;;  %v1229_v55 = vld [vmem:[%s8595_s4 + $0x5a0] sm:$0xff]  ;;  %v1230_v57 = vld [vmem:[%s8595_s4 + $0x5a8] sm:$0xff]  ;;  %v1231_v4 = vld [vmem:[%s8595_s4 + $0x5b0] sm:$0xff] }
  0x91   :  { %v1010_v36 = vmax.f32 %v962_v21, 0.0  ;;  %v1232_v5 = vld [vmem:[%s8595_s4 + $0x5b8] sm:$0xff]  ;;  %v1202_v15 = vld [vmem:[%s8595_s4 + $0x4c8] sm:$0xff]  ;;  %v428_v1 = vrot.slane %v5975_v62, %v5863_v48 }
  0x92   :  { %v1186_v49 = vld [vmem:[%s8595_s4 + $0x448] sm:$0xff] }
  0x93   :  { %4808 = vmatpush3.bf16.msra.mxu0 %v4807_v24  ;;  %4840 = vmatpush3.bf16.msra.mxu1 %v4839_v25  ;;  %v964_v24 = vadd.f32 %v760_v11, %v664_v46  ;;  %v1196_v25 = vld [vmem:[%s8595_s4 + $0x498] sm:$0xff]  ;;  %v1215_v11 = vld [vmem:[%s8595_s4 + $0x530] sm:$0xff] }
  0x94   :  { %4810 = vmatprep.subr.bf16.mxu0 %v4809_v26  ;;  %4842 = vmatprep.subr.bf16.mxu1 %v4841_v31  ;;  %v1227_v26 = vld [vmem:[%s8595_s4 + $0x590] sm:$0xff]  ;;  %v1007_v31 = vmax.f32 %v959_v16, 0.0  ;;  %v4853_v37 = vpack.c.bf16 %v1196_v25, %v1195_v23  ;;  %v1184_v46 = vld [vmem:[%s8595_s4 + $0x438] sm:$0xff]  ;;  %v1233_v16 = vld [vmem:[%s8595_s4 + $0x5c0] sm:$0xff] }
  0x95   :  { %v4885_v38 = vpack.c.bf16 %v1228_v27, %v1227_v26  ;;  %v1012_v54 = vmax.f32 %v964_v24, 0.0  ;;  %v4863_v18 = vpack.c.bf16 %v1184_v46, %v1183_v10  ;;  %v1217_v23 = vld [vmem:[%s8595_s4 + $0x540] sm:$0xff]  ;;  %v1218_v25 = vld [vmem:[%s8595_s4 + $0x548] sm:$0xff]  ;;  %v1203_v26 = vld [vmem:[%s8595_s4 + $0x4d0] sm:$0xff] }
  0x96   :  { %v1204_v27 = vld [vmem:[%s8595_s4 + $0x4d8] sm:$0xff]  ;;  %v1222_v10 = vld [vmem:[%s8595_s4 + $0x568] sm:$0xff]  ;;  %v1207_v46 = vld [vmem:[%s8595_s4 + $0x4f0] sm:$0xff] }
  0x97   :  { %4812 = vmatpush3.bf16.msra.mxu0 %v4811_v58  ;;  %4844 = vmatpush3.bf16.msra.mxu1 %v4843_v41  ;;  %v4855_v58 = vpack.c.bf16 %v1180_v34, %v1179_v33  ;;  %v4887_v41 = vpack.c.bf16 %v1212_v39, %v1211_v35  ;;  %v4899_v33 = vpack.c.bf16 %v1218_v25, %v1217_v23  ;;  %v1187_v35 = vld [vmem:[%s8595_s4 + $0x450] sm:$0xff]  ;;  %v1192_v25 = vld [vmem:[%s8595_s4 + $0x478] sm:$0xff] }
  0x98   :  { %4814 = vmatprep.subr.bf16.mxu0 %v4813_v59  ;;  %4846 = vmatprep.subr.bf16.mxu1 %v4845_v63  ;;  %v4857_v59 = vpack.c.bf16 %v1198_v52, %v1197_v50  ;;  %v4889_v63 = vpack.c.bf16 %v1230_v57, %v1229_v55  ;;  %v4869_v34 = vpack.c.bf16 %v1204_v27, %v1203_v26  ;;  %v1220_v50 = vld [vmem:[%s8595_s4 + $0x558] sm:$0xff]  ;;  %v1205_v52 = vld [vmem:[%s8595_s4 + $0x4e0] sm:$0xff]  ;;  %v1223_v26 = vld [vmem:[%s8595_s4 + $0x570] sm:$0xff] }
  0x99   :  { %v108_v55 = vrot.slane %v5958_v53, %v5852_v45  ;;  %v408_v57 = vrot.slane %v5975_v62, %v5852_v45 }
  0x9b   :  { %4816 = vmatpush3.bf16.msra.mxu0 %v4815_v12  ;;  %4848 = vmatpush3.bf16.msra.mxu1 %v4847_v13  ;;  %v4893_v12 = vpack.c.bf16 %v1232_v5, %v1231_v4  ;;  %v1216_v13 = vld [vmem:[%s8595_s4 + $0x538] sm:$0xff]  ;;  %v1189_v4 = vld [vmem:[%s8595_s4 + $0x460] sm:$0xff]  ;;  %v1190_v5 = vld [vmem:[%s8595_s4 + $0x468] sm:$0xff] }
  0x9c   :  { %4850 = vmatprep.subr.bf16.mxu0 %v4849_v14  ;;  %4882 = vmatprep.subr.bf16.mxu1 %v4881_v17  ;;  %v1201_v14 = vld [vmem:[%s8595_s4 + $0x4c0] sm:$0xff]  ;;  %v1234_v17 = vld [vmem:[%s8595_s4 + $0x5c8] sm:$0xff]  ;;  %v4895_v20 = vpack.c.bf16 %v1216_v13, %v1215_v11  ;;  %v1208_v11 = vld [vmem:[%s8595_s4 + $0x4f8] sm:$0xff]  ;;  %v615_v13 = vmul.f32 %v408_v57, %v5907_v6 }
  0x9d   :  { %v4865_v21 = vpack.c.bf16 %v1202_v15, %v1201_v14  ;;  %v4897_v24 = vpack.c.bf16 %v1234_v17, %v1233_v16  ;;  %v1239_v14 = vld [vmem:[%s8595_s4 + $0x5f0] sm:$0xff]  ;;  %v1240_v15 = vld [vmem:[%s8595_s4 + $0x5f8] sm:$0xff]  ;;  %v618_v17 = vmul.f32 %v420_v60, %v5907_v6  ;;  %v4877_v23 = vpack.c.bf16 %v1208_v11, %v1207_v46  ;;  %v1241_v57 = vld [vmem:[%s8595_s4 + $0x600] sm:$0xff] }
  0x9e   :  { %2029 = vmatmul.mubr.f32.vlgmr.msra.gmra.mrb[2].mxu0 %v1005_v30  ;;  %2099 = vmatmul.mubr.f32.vlgmr.msra.gmra.mrb[2].mxu1 %v1007_v31  ;;  %v1236_v30 = vld [vmem:[%s8595_s4 + $0x5d8] sm:$0xff]  ;;  %v4867_v31 = vpack.c.bf16 %v1186_v49, %v1185_v22  ;;  %v620_v22 = vmul.f32 %v428_v1, %v5907_v6  ;;  %v1273_v60 = vld [vmem:[%s8595_s4 + $0x700] sm:$0xff]  ;;  %v1275_v46 = vld [vmem:[%s8595_s4 + $0x710] sm:$0xff] }
  0x9f   :  { %4852 = vmatpush3.bf16.msra.mxu0 %v4851_v28  ;;  %2168 = vmatprep.mubr.f32.mxu0 %v1010_v36  ;;  %v1235_v28 = vld [vmem:[%s8595_s4 + $0x5d0] sm:$0xff]  ;;  %v1188_v36 = vld [vmem:[%s8595_s4 + $0x458] sm:$0xff] }
  0xa0   :  { %4884 = vmatpush3.bf16.msra.mxu1 %v4883_v32  ;;  %2238 = vmatprep.mubr.f32.mxu1 %v1012_v54  ;;  %v100_v32 = vrot.slane %v5958_v53, %v5849_v44  ;;  %v4901_v39 = vpack.c.bf16 %v1236_v30, %v1235_v28  ;;  %v1206_v54 = vld [vmem:[%s8595_s4 + $0x4e8] sm:$0xff]  ;;  %v4871_v61 = vpack.c.bf16 %v1188_v36, %v1187_v35  ;;  %v1224_v28 = vld [vmem:[%s8595_s4 + $0x578] sm:$0xff] }
  0xa1   :  { %4854 = vmatprep.subr.bf16.mxu0 %v4853_v37  ;;  %4886 = vmatprep.subr.bf16.mxu1 %v4885_v38  ;;  %v1219_v37 = vld [vmem:[%s8595_s4 + $0x550] sm:$0xff]  ;;  %v400_v38 = vrot.slane %v5975_v62, %v5849_v44  ;;  %v4873_v3 = vpack.c.bf16 %v1206_v54, %v1205_v52  ;;  %v1290_v35 = vld [vmem:[%s8595_s4 + $0x788] sm:$0xff]  ;;  %v4911_v52 = vpack.c.bf16 %v1224_v28, %v1223_v26  ;;  %v1260_v1 = vld [vmem:[%s8595_s4 + $0x698] sm:$0xff] }
  0xa2   :  { %v313_v51 = vmul.f32 %v100_v32, %v5632_v0  ;;  %v4903_v2 = vpack.c.bf16 %v1220_v50, %v1219_v37  ;;  %v1257_v32 = vld [vmem:[%s8595_s4 + $0x680] sm:$0xff]  ;;  %v768_v37 = vrot.slane %v6008_v19, %v5860_v47  ;;  %v776_v50 = vrot.slane %v6008_v19, %v5863_v48  ;;  %v1263_v28 = vld [vmem:[%s8595_s4 + $0x6b0] sm:$0xff] }
  0xa3   :  { %4856 = vmatpush3.bf16.msra.mxu0 %v4855_v58  ;;  %v1237_v58 = vld [vmem:[%s8595_s4 + $0x5e0] sm:$0xff] }
  0xa4   :  { %4888 = vmatpush3.bf16.msra.mxu1 %v4887_v41  ;;  %4858 = vmatprep.subr.bf16.mxu0 %v4857_v59  ;;  %v1238_v41 = vld [vmem:[%s8595_s4 + $0x5e8] sm:$0xff]  ;;  %v120_v59 = vrot.slane %v5958_v53, %v5860_v47  ;;  %v1277_v26 = vld [vmem:[%s8595_s4 + $0x720] sm:$0xff] }
  0xa5   :  { %4890 = vmatprep.subr.bf16.mxu1 %v4889_v63  ;;  %v128_v63 = vrot.slane %v5958_v53, %v5863_v48 }
  0xa6   :  { %v318_v16 = vmul.f32 %v120_v59, %v5632_v0 }
  0xa7   :  { %4860 = vmatpush3.bf16.msra.mxu0 %v4859_v7  ;;  %v1221_v7 = vld [vmem:[%s8595_s4 + $0x560] sm:$0xff] }
  0xa8   :  { %4892 = vmatpush3.bf16.msra.mxu1 %v4891_v8  ;;  %4862 = vmatprep.subr.bf16.mxu0 %v4861_v9  ;;  %v613_v8 = vmul.f32 %v400_v38, %v5907_v6  ;;  %v4905_v9 = vpack.c.bf16 %v1238_v41, %v1237_v58  ;;  %v4907_v49 = vpack.c.bf16 %v1222_v10, %v1221_v7  ;;  %v1242_v58 = vld [vmem:[%s8595_s4 + $0x608] sm:$0xff]  ;;  %v1244_v10 = vld [vmem:[%s8595_s4 + $0x618] sm:$0xff] }
  0xa9   :  { %4894 = vmatprep.subr.bf16.mxu1 %v4893_v12  ;;  %v315_v12 = vmul.f32 %v108_v55, %v5632_v0  ;;  %v666_v36 = vadd.f32 %v618_v17, %v318_v16 }
  0xaa   :  { %v661_v27 = vadd.f32 %v613_v8, %v313_v51 }
  0xab   :  { %4864 = vmatpush3.bf16.msra.mxu0 %v4863_v18  ;;  %v4875_v18 = vpack.c.bf16 %v1190_v5, %v1189_v4  ;;  %v663_v30 = vadd.f32 %v615_v13, %v315_v12  ;;  %v966_v51 = vadd.f32 %v768_v37, %v666_v36  ;;  %v1291_v4 = vld [vmem:[%s8595_s4 + $0x790] sm:$0xff]  ;;  %v1292_v5 = vld [vmem:[%s8595_s4 + $0x798] sm:$0xff] }
  0xac   :  { %4896 = vmatpush3.bf16.msra.mxu1 %v4895_v20  ;;  %4866 = vmatprep.subr.bf16.mxu0 %v4865_v21  ;;  %v748_v20 = vrot.slane %v6008_v19, %v5849_v44  ;;  %v320_v21 = vmul.f32 %v128_v63, %v5632_v0  ;;  %v4909_v0 = vpack.c.bf16 %v1240_v15, %v1239_v14  ;;  %v1259_v63 = vld [vmem:[%s8595_s4 + $0x690] sm:$0xff]  ;;  %v1276_v13 = vld [vmem:[%s8595_s4 + $0x718] sm:$0xff]  ;;  %v1261_v14 = vld [vmem:[%s8595_s4 + $0x6a0] sm:$0xff] }
  0xad   :  { %4898 = vmatprep.subr.bf16.mxu1 %v4897_v24  ;;  %v1191_v24 = vld [vmem:[%s8595_s4 + $0x470] sm:$0xff]  ;;  %v4917_v12 = vpack.c.bf16 %v1260_v1, %v1259_v63  ;;  %v1262_v15 = vld [vmem:[%s8595_s4 + $0x6a8] sm:$0xff]  ;;  %v1014_v16 = vmax.f32 %v966_v51, 0.0  ;;  %v4949_v17 = vpack.c.bf16 %v1292_v5, %v1291_v4  ;;  %v1248_v37 = vld [vmem:[%s8595_s4 + $0x638] sm:$0xff] }
  0xae   :  { %v4879_v38 = vpack.c.bf16 %v1192_v25, %v1191_v24  ;;  %v961_v54 = vadd.f32 %v748_v20, %v661_v27  ;;  %v1294_v20 = vld [vmem:[%s8595_s4 + $0x7a8] sm:$0xff]  ;;  %v1245_v24 = vld [vmem:[%s8595_s4 + $0x620] sm:$0xff]  ;;  %v1247_v36 = vld [vmem:[%s8595_s4 + $0x630] sm:$0xff] }
  0xaf   :  { %4868 = vmatpush3.bf16.msra.mxu0 %v4867_v31  ;;  %v756_v31 = vrot.slane %v6008_v19, %v5852_v45  ;;  %v1246_v25 = vld [vmem:[%s8595_s4 + $0x628] sm:$0xff]  ;;  %v1281_v51 = vld [vmem:[%s8595_s4 + $0x740] sm:$0xff]  ;;  %v1299_v4 = vld [vmem:[%s8595_s4 + $0x7d0] sm:$0xff] }
  0xb0   :  { %4900 = vmatpush3.bf16.msra.mxu1 %v4899_v33  ;;  %4870 = vmatprep.subr.bf16.mxu0 %v4869_v34  ;;  %v1258_v33 = vld [vmem:[%s8595_s4 + $0x688] sm:$0xff]  ;;  %v1289_v34 = vld [vmem:[%s8595_s4 + $0x780] sm:$0xff]  ;;  %v1009_v7 = vmax.f32 %v961_v54, 0.0  ;;  %v1300_v5 = vld [vmem:[%s8595_s4 + $0x7d8] sm:$0xff] }
  0xb1   :  { %4902 = vmatprep.subr.bf16.mxu1 %v4901_v39  ;;  %v668_v39 = vadd.f32 %v620_v22, %v320_v21  ;;  %v4913_v55 = vpack.c.bf16 %v1258_v33, %v1257_v32  ;;  %v963_v41 = vadd.f32 %v756_v31, %v663_v30  ;;  %v4945_v59 = vpack.c.bf16 %v1290_v35, %v1289_v34  ;;  %v1264_v30 = vld [vmem:[%s8595_s4 + $0x6b8] sm:$0xff]  ;;  %v1295_v31 = vld [vmem:[%s8595_s4 + $0x7b0] sm:$0xff]  ;;  %v1266_v54 = vld [vmem:[%s8595_s4 + $0x6c8] sm:$0xff] }
  0xb2   :  { %v1296_v32 = vld [vmem:[%s8595_s4 + $0x7b8] sm:$0xff]  ;;  %v4923_v33 = vpack.c.bf16 %v1246_v25, %v1245_v24  ;;  %v4925_v35 = vpack.c.bf16 %v1264_v30, %v1263_v28  ;;  %v1282_v63 = vld [vmem:[%s8595_s4 + $0x748] sm:$0xff]  ;;  %v1253_v30 = vld [vmem:[%s8595_s4 + $0x660] sm:$0xff] }
  0xb3   :  { %4872 = vmatpush3.bf16.msra.mxu0 %v4871_v61  ;;  %v1274_v61 = vld [vmem:[%s8595_s4 + $0x708] sm:$0xff]  ;;  %v1011_v11 = vmax.f32 %v963_v41, 0.0  ;;  %v1249_v41 = vld [vmem:[%s8595_s4 + $0x640] sm:$0xff] }
  0xb4   :  { %4904 = vmatpush3.bf16.msra.mxu1 %v4903_v2  ;;  %4874 = vmatprep.subr.bf16.mxu0 %v4873_v3  ;;  %v4915_v2 = vpack.c.bf16 %v1242_v58, %v1241_v57  ;;  %v968_v3 = vadd.f32 %v776_v50, %v668_v39  ;;  %v4947_v8 = vpack.c.bf16 %v1274_v61, %v1273_v60  ;;  %v1280_v50 = vld [vmem:[%s8595_s4 + $0x738] sm:$0xff]  ;;  %v1298_v57 = vld [vmem:[%s8595_s4 + $0x7c8] sm:$0xff] }
  0xb5   :  { %4906 = vmatprep.subr.bf16.mxu1 %v4905_v9  ;;  %v1243_v9 = vld [vmem:[%s8595_s4 + $0x610] sm:$0xff]  ;;  %v4957_v39 = vpack.c.bf16 %v1296_v32, %v1295_v31  ;;  %v4927_v58 = vpack.c.bf16 %v1248_v37, %v1247_v36  ;;  %v1250_v61 = vld [vmem:[%s8595_s4 + $0x648] sm:$0xff]  ;;  %v1285_v32 = vld [vmem:[%s8595_s4 + $0x760] sm:$0xff] }
  0xb6   :  { %v1016_v21 = vmax.f32 %v968_v3, 0.0  ;;  %v4919_v22 = vpack.c.bf16 %v1244_v10, %v1243_v9  ;;  %v1268_v3 = vld [vmem:[%s8595_s4 + $0x6d8] sm:$0xff]  ;;  %v4931_v9 = vpack.c.bf16 %v1250_v61, %v1249_v41  ;;  %v116_v10 = vrot.slane %v5958_v53, %v6049_v40  ;;  %v1254_v31 = vld [vmem:[%s8595_s4 + $0x668] sm:$0xff]  ;;  %v1271_v36 = vld [vmem:[%s8595_s4 + $0x6f0] sm:$0xff] }
  0xb7   :  { %4876 = vmatpush3.bf16.msra.mxu0 %v4875_v18  ;;  %v1293_v18 = vld [vmem:[%s8595_s4 + $0x7a0] sm:$0xff]  ;;  %v4965_v53 = vpack.c.bf16 %v1300_v5, %v1299_v4  ;;  %v1272_v37 = vld [vmem:[%s8595_s4 + $0x6f8] sm:$0xff] }
  0xb8   :  { %4908 = vmatpush3.bf16.msra.mxu1 %v4907_v49  ;;  %4878 = vmatprep.subr.bf16.mxu0 %v4877_v23  ;;  %v4951_v49 = vpack.c.bf16 %v1276_v13, %v1275_v46  ;;  %v4921_v23 = vpack.c.bf16 %v1262_v15, %v1261_v14  ;;  %v4953_v27 = vpack.c.bf16 %v1294_v20, %v1293_v18  ;;  %v1252_v13 = vld [vmem:[%s8595_s4 + $0x658] sm:$0xff]  ;;  %v1283_v14 = vld [vmem:[%s8595_s4 + $0x750] sm:$0xff]  ;;  %v1270_v18 = vld [vmem:[%s8595_s4 + $0x6e8] sm:$0xff] }
  0xb9   :  { %4910 = vmatprep.subr.bf16.mxu1 %v4909_v0  ;;  %v1278_v0 = vld [vmem:[%s8595_s4 + $0x728] sm:$0xff]  ;;  %v4963_v46 = vpack.c.bf16 %v1282_v63, %v1281_v51  ;;  %v416_v15 = vrot.slane %v5975_v62, %v6049_v40  ;;  %v1256_v61 = vld [vmem:[%s8595_s4 + $0x678] sm:$0xff]  ;;  %v1287_v51 = vld [vmem:[%s8595_s4 + $0x770] sm:$0xff] }
  0xba   :  { %v4955_v34 = vpack.c.bf16 %v1278_v0, %v1277_v26  ;;  %v6576_v26 = vld [vmem:[%s8591_s0] sm:$0xff] }
  0xbb   :  { %4880 = vmatpush3.bf16.msra.mxu0 %v4879_v38  ;;  %v1279_v38 = vld [vmem:[%s8595_s4 + $0x730] sm:$0xff] }
  0xbc   :  { %4912 = vmatpush3.bf16.msra.mxu1 %v4911_v52  ;;  %4914 = vmatprep.subr.bf16.mxu0 %v4913_v55  ;;  %v1265_v52 = vld [vmem:[%s8595_s4 + $0x6c0] sm:$0xff] }
  0xbd   :  { %4946 = vmatprep.subr.bf16.mxu1 %v4945_v59  ;;  %v1297_v55 = vld [vmem:[%s8595_s4 + $0x7c0] sm:$0xff]  ;;  %v4959_v59 = vpack.c.bf16 %v1280_v50, %v1279_v38  ;;  %v4929_v60 = vpack.c.bf16 %v1266_v54, %v1265_v52  ;;  %v1304_v50 = vld [vmem:[%s8595_s4 + $0x7f8] sm:$0xff]  ;;  %v6609_v52 = vld [vmem:[%s8594_s3 + $0x10] sm:$0xff] }
  0xbe   :  { %2169 = vmatmul.mubr.f32.vlgmr.msra.gmra.mrb[4].mxu0 %v1009_v7  ;;  %v4961_v1 = vpack.c.bf16 %v1298_v57, %v1297_v55  ;;  %v6528_v7 = vld [vmem:[%s8592_s1 + $0x10] sm:$0xff]  ;;  %v4939_v57 = vpack.c.bf16 %v1254_v31, %v1253_v30  ;;  %v784_v5 = vrot.slane %v6609_v52, %v5843_v42 }
  0xbf   :  { %2239 = vmatmul.mubr.f32.vlgmr.msra.gmra.mrb[4].mxu1 %v1011_v11  ;;  %4916 = vmatpush3.bf16.msra.mxu0 %v4915_v2  ;;  %v1267_v2 = vld [vmem:[%s8595_s4 + $0x6d0] sm:$0xff]  ;;  %v136_v20 = vrot.slane %v6528_v7, %v5843_v42 }
  0xc0   :  { %2308 = vmatprep.mubr.f32.mxu0 %v1014_v16  ;;  %4948 = vmatpush3.bf16.msra.mxu1 %v4947_v8  ;;  %v6533_v8 = vld [vmem:[%s8593_s2 + $0x10] sm:$0xff]  ;;  %v4933_v11 = vpack.c.bf16 %v1268_v3, %v1267_v2  ;;  %v1284_v16 = vld [vmem:[%s8595_s4 + $0x758] sm:$0xff]  ;;  %v1321_v2 = vld [vmem:[%s8595_s4 + $0x880] sm:$0xff] }
  0xc1   :  { %2378 = vmatprep.mubr.f32.mxu1 %v1016_v21  ;;  %4918 = vmatprep.subr.bf16.mxu0 %v4917_v12  ;;  %v1251_v12 = vld [vmem:[%s8595_s4 + $0x650] sm:$0xff]  ;;  %v436_v62 = vrot.slane %v6533_v8, %v5843_v42  ;;  %v1301_v21 = vld [vmem:[%s8595_s4 + $0x7e0] sm:$0xff]  ;;  %v444_v24 = vrot.slane %v6533_v8, %v5846_v43  ;;  %v4967_v0 = vpack.c.bf16 %v1284_v16, %v1283_v14  ;;  %v1322_v3 = vld [vmem:[%s8595_s4 + $0x888] sm:$0xff] }
  0xc2   :  { %4950 = vmatprep.subr.bf16.mxu1 %v4949_v17  ;;  %v1269_v17 = vld [vmem:[%s8595_s4 + $0x6e0] sm:$0xff]  ;;  %v4935_v25 = vpack.c.bf16 %v1252_v13, %v1251_v12  ;;  %v322_v38 = vmul.f32 %v6576_v26, %v136_v20  ;;  %v1306_v16 = vld [vmem:[%s8595_s4 + $0x808] sm:$0xff]  ;;  %v1307_v31 = vld [vmem:[%s8595_s4 + $0x810] sm:$0xff] }
  0xc3   :  { %4920 = vmatpush3.bf16.msra.mxu0 %v4919_v22  ;;  %v1302_v22 = vld [vmem:[%s8595_s4 + $0x7e8] sm:$0xff]  ;;  %v4937_v28 = vpack.c.bf16 %v1270_v18, %v1269_v17  ;;  %v1337_v17 = vld [vmem:[%s8595_s4 + $0x900] sm:$0xff] }
  0xc4   :  { %4952 = vmatpush3.bf16.msra.mxu1 %v4951_v49  ;;  %4922 = vmatprep.subr.bf16.mxu0 %v4921_v23  ;;  %v6567_v49 = vpop.permute.xlu0 %47  ;;  %v144_v23 = vrot.slane %v6528_v7, %v5846_v43  ;;  %v1338_v20 = vld [vmem:[%s8595_s4 + $0x908] sm:$0xff] }
  0xc5   :  { %4954 = vmatprep.subr.bf16.mxu1 %v4953_v27  ;;  %v317_v27 = vmul.f32 %v6576_v26, %v116_v10  ;;  %v624_v55 = vmul.f32 %v444_v24, %v6567_v49  ;;  %v1354_v10 = vld [vmem:[%s8595_s4 + $0x988] sm:$0xff]  ;;  %v1356_v24 = vld [vmem:[%s8595_s4 + $0x998] sm:$0xff] }
  0xc6   :  { %v324_v54 = vmul.f32 %v6576_v26, %v144_v23  ;;  %v1355_v23 = vld [vmem:[%s8595_s4 + $0x990] sm:$0xff] }
  0xc7   :  { %4924 = vmatpush3.bf16.msra.mxu0 %v4923_v33  ;;  %v617_v33 = vmul.f32 %v416_v15, %v5907_v6  ;;  %v1303_v6 = vld [vmem:[%s8595_s4 + $0x7f0] sm:$0xff]  ;;  %v4977_v15 = vpack.c.bf16 %v1322_v3, %v1321_v2 }
  0xc8   :  { %4956 = vmatpush3.bf16.msra.mxu1 %v4955_v34  ;;  %4926 = vmatprep.subr.bf16.mxu0 %v4925_v35  ;;  %v4969_v34 = vpack.c.bf16 %v1302_v22, %v1301_v21  ;;  %v1286_v35 = vld [vmem:[%s8595_s4 + $0x768] sm:$0xff]  ;;  %v1324_v21 = vld [vmem:[%s8595_s4 + $0x898] sm:$0xff] }
  0xc9   :  { %4958 = vmatprep.subr.bf16.mxu1 %v4957_v39  ;;  %v622_v39 = vmul.f32 %v436_v62, %v6567_v49  ;;  %v4971_v41 = vpack.c.bf16 %v1286_v35, %v1285_v32  ;;  %v665_v63 = vadd.f32 %v617_v33, %v317_v27  ;;  %v1323_v62 = vld [vmem:[%s8595_s4 + $0x890] sm:$0xff]  ;;  %v1308_v32 = vld [vmem:[%s8595_s4 + $0x818] sm:$0xff]  ;;  %v5013_v35 = vpack.c.bf16 %v1356_v24, %v1355_v23 }
  0xca   :  { %v4981_v30 = vpack.c.bf16 %v1324_v21, %v1323_v62  ;;  %v1339_v33 = vld [vmem:[%s8595_s4 + $0x910] sm:$0xff]  ;;  %v1345_v62 = vld [vmem:[%s8595_s4 + $0x940] sm:$0xff]  ;;  %v1346_v21 = vld [vmem:[%s8595_s4 + $0x948] sm:$0xff] }
  0xcb   :  { %4928 = vmatpush3.bf16.msra.mxu0 %v4927_v58  ;;  %v764_v58 = vrot.slane %v6008_v19, %v6049_v40  ;;  %v1288_v19 = vld [vmem:[%s8595_s4 + $0x778] sm:$0xff]  ;;  %v670_v4 = vadd.f32 %v622_v39, %v322_v38  ;;  %v1326_v38 = vld [vmem:[%s8595_s4 + $0x8a8] sm:$0xff]  ;;  %v1331_v23 = vld [vmem:[%s8595_s4 + $0x8d0] sm:$0xff] }
  0xcc   :  { %4960 = vmatpush3.bf16.msra.mxu1 %v4959_v59  ;;  %4930 = vmatprep.subr.bf16.mxu0 %v4929_v60  ;;  %v4941_v59 = vpack.c.bf16 %v1272_v37, %v1271_v36  ;;  %v1255_v60 = vld [vmem:[%s8595_s4 + $0x670] sm:$0xff]  ;;  %v4975_v13 = vpack.c.bf16 %v1288_v19, %v1287_v51  ;;  %v1340_v36 = vld [vmem:[%s8595_s4 + $0x918] sm:$0xff]  ;;  %v1325_v37 = vld [vmem:[%s8595_s4 + $0x8a0] sm:$0xff] }
  0xcd   :  { %4962 = vmatprep.subr.bf16.mxu1 %v4961_v1  ;;  %v4973_v1 = vpack.c.bf16 %v1304_v50, %v1303_v6  ;;  %v4943_v12 = vpack.c.bf16 %v1256_v61, %v1255_v60  ;;  %v965_v14 = vadd.f32 %v764_v58, %v665_v63  ;;  %v970_v22 = vadd.f32 %v784_v5, %v670_v4  ;;  %v1358_v6 = vld [vmem:[%s8595_s4 + $0x9a8] sm:$0xff]  ;;  %v1309_v58 = vld [vmem:[%s8595_s4 + $0x820] sm:$0xff]  ;;  %v1327_v51 = vld [vmem:[%s8595_s4 + $0x8b0] sm:$0xff] }
  0xce   :  { %v1342_v61 = vld [vmem:[%s8595_s4 + $0x928] sm:$0xff]  ;;  %v1328_v63 = vld [vmem:[%s8595_s4 + $0x8b8] sm:$0xff]  ;;  %v1311_v5 = vld [vmem:[%s8595_s4 + $0x830] sm:$0xff] }
  0xcf   :  { %4932 = vmatpush3.bf16.msra.mxu0 %v4931_v9  ;;  %v1353_v9 = vld [vmem:[%s8595_s4 + $0x980] sm:$0xff]  ;;  %v1018_v39 = vmax.f32 %v970_v22, 0.0  ;;  %v1360_v19 = vld [vmem:[%s8595_s4 + $0x9b8] sm:$0xff]  ;;  %v4989_v4 = vpack.c.bf16 %v1328_v63, %v1327_v51 }
  0xd0   :  { %4964 = vmatpush3.bf16.msra.mxu1 %v4963_v46  ;;  %4934 = vmatprep.subr.bf16.mxu0 %v4933_v11  ;;  %v672_v46 = vadd.f32 %v624_v55, %v324_v54  ;;  %v792_v11 = vrot.slane %v6609_v52, %v5846_v43  ;;  %v5009_v18 = vpack.c.bf16 %v1354_v10, %v1353_v9  ;;  %v1312_v9 = vld [vmem:[%s8595_s4 + $0x838] sm:$0xff]  ;;  %v1343_v10 = vld [vmem:[%s8595_s4 + $0x930] sm:$0xff]  ;;  %v1317_v63 = vld [vmem:[%s8595_s4 + $0x860] sm:$0xff] }
  0xd1   :  { %4966 = vmatprep.subr.bf16.mxu1 %v4965_v53  ;;  %v1305_v53 = vld [vmem:[%s8595_s4 + $0x800] sm:$0xff]  ;;  %v4983_v54 = vpack.c.bf16 %v1308_v32, %v1307_v31  ;;  %v5015_v55 = vpack.c.bf16 %v1340_v36, %v1339_v33  ;;  %v1332_v24 = vld [vmem:[%s8595_s4 + $0x8d8] sm:$0xff]  ;;  %v5027_v31 = vpack.c.bf16 %v1346_v21, %v1345_v62  ;;  %v1315_v32 = vld [vmem:[%s8595_s4 + $0x850] sm:$0xff]  ;;  %v140_v33 = vrot.slane %v6528_v7, %v5852_v45 }
  0xd2   :  { %v4979_v27 = vpack.c.bf16 %v1306_v16, %v1305_v53  ;;  %v4991_v53 = vpack.c.bf16 %v1312_v9, %v1311_v5  ;;  %v1313_v16 = vld [vmem:[%s8595_s4 + $0x840] sm:$0xff]  ;;  %v1316_v36 = vld [vmem:[%s8595_s4 + $0x858] sm:$0xff]  ;;  %v1350_v5 = vld [vmem:[%s8595_s4 + $0x968] sm:$0xff]  ;;  %v788_v21 = vrot.slane %v6609_v52, %v5852_v45 }
  0xd3   :  { %4936 = vmatpush3.bf16.msra.mxu0 %v4935_v25  ;;  %v972_v25 = vadd.f32 %v792_v11, %v672_v46  ;;  %v1344_v11 = vld [vmem:[%s8595_s4 + $0x938] sm:$0xff] }
  0xd4   :  { %4968 = vmatpush3.bf16.msra.mxu1 %v4967_v0  ;;  %4938 = vmatprep.subr.bf16.mxu0 %v4937_v28  ;;  %v1013_v0 = vmax.f32 %v965_v14, 0.0  ;;  %v5011_v28 = vpack.c.bf16 %v1338_v20, %v1337_v17  ;;  %v1361_v14 = vld [vmem:[%s8595_s4 + $0x9c0] sm:$0xff]  ;;  %v5023_v17 = vpack.c.bf16 %v1344_v11, %v1343_v10  ;;  %v1314_v20 = vld [vmem:[%s8595_s4 + $0x848] sm:$0xff]  ;;  %v1335_v11 = vld [vmem:[%s8595_s4 + $0x8f0] sm:$0xff] }
  0xd5   :  { %4970 = vmatprep.subr.bf16.mxu1 %v4969_v34  ;;  %v1015_v34 = vmax.f32 %v6057_v56, 0.0  ;;  %v1357_v56 = vld [vmem:[%s8595_s4 + $0x9a0] sm:$0xff]  ;;  %v1020_v50 = vmax.f32 %v972_v25, 0.0  ;;  %v1363_v25 = vld [vmem:[%s8595_s4 + $0x9d0] sm:$0xff] }
  0xd6   :  { %v5017_v60 = vpack.c.bf16 %v1358_v6, %v1357_v56  ;;  %v452_v56 = vrot.slane %v6533_v8, %v5860_v47 }
  0xd7   :  { %4940 = vmatpush3.bf16.msra.mxu0 %v4939_v57  ;;  %v4985_v57 = vpack.c.bf16 %v1326_v38, %v1325_v37  ;;  %v1347_v37 = vld [vmem:[%s8595_s4 + $0x950] sm:$0xff]  ;;  %v1348_v38 = vld [vmem:[%s8595_s4 + $0x958] sm:$0xff] }
  0xd8   :  { %4972 = vmatpush3.bf16.msra.mxu1 %v4971_v41  ;;  %4942 = vmatprep.subr.bf16.mxu0 %v4941_v59  ;;  %v1310_v41 = vld [vmem:[%s8595_s4 + $0x828] sm:$0xff]  ;;  %v1341_v59 = vld [vmem:[%s8595_s4 + $0x920] sm:$0xff]  ;;  %v5031_v51 = vpack.c.bf16 %v1348_v38, %v1347_v37  ;;  %v626_v10 = vmul.f32 %v452_v56, %v6567_v49 }
  0xd9   :  { %4974 = vmatprep.subr.bf16.mxu1 %v4973_v1  ;;  %v1359_v1 = vld [vmem:[%s8595_s4 + $0x9b0] sm:$0xff]  ;;  %v4987_v2 = vpack.c.bf16 %v1310_v41, %v1309_v58  ;;  %v5019_v3 = vpack.c.bf16 %v1342_v61, %v1341_v59  ;;  %v1365_v58 = vld [vmem:[%s8595_s4 + $0x9e0] sm:$0xff]  ;;  %v1366_v41 = vld [vmem:[%s8595_s4 + $0x9e8] sm:$0xff]  ;;  %v4999_v61 = vpack.c.bf16 %v1316_v36, %v1315_v32 }
  0xda   :  { %v5021_v46 = vpack.c.bf16 %v1360_v19, %v1359_v1  ;;  %v323_v1 = vmul.f32 %v6576_v26, %v140_v33  ;;  %v1386_v32 = vld [vmem:[%s8595_s4 + $0xa88] sm:$0xff]  ;;  %v1417_v36 = vld [vmem:[%s8595_s4 + $0xb80] sm:$0xff] }
  0xdb   :  { %4944 = vmatpush3.bf16.msra.mxu0 %v4943_v12  ;;  %v1329_v12 = vld [vmem:[%s8595_s4 + $0x8c0] sm:$0xff]  ;;  %v1418_v37 = vld [vmem:[%s8595_s4 + $0xb88] sm:$0xff] }
  0xdc   :  { %4976 = vmatpush3.bf16.msra.mxu1 %v4975_v13  ;;  %4978 = vmatprep.subr.bf16.mxu0 %v4977_v15  ;;  %v1330_v13 = vld [vmem:[%s8595_s4 + $0x8c8] sm:$0xff] }
  0xdd   :  { %5010 = vmatprep.subr.bf16.mxu1 %v5009_v18  ;;  %v1362_v15 = vld [vmem:[%s8595_s4 + $0x9c8] sm:$0xff]  ;;  %v4993_v18 = vpack.c.bf16 %v1330_v13, %v1329_v12  ;;  %v1336_v12 = vld [vmem:[%s8595_s4 + $0x8f8] sm:$0xff] }
  0xde   :  { %2309 = vmatmul.mubr.f32.vlgmr.msra.gmra.mrb[6].mxu0 %v1013_v0  ;;  %v5025_v22 = vpack.c.bf16 %v1362_v15, %v1361_v14  ;;  %v132_v0 = vrot.slane %v6528_v7, %v5849_v44  ;;  %v1367_v15 = vld [vmem:[%s8595_s4 + $0x9f0] sm:$0xff] }
  0xdf   :  { %2379 = vmatmul.mubr.f32.vlgmr.msra.gmra.mrb[6].mxu1 %v1015_v34  ;;  %4980 = vmatpush3.bf16.msra.mxu0 %v4979_v27  ;;  %v1364_v27 = vld [vmem:[%s8595_s4 + $0x9d8] sm:$0xff]  ;;  %v440_v34 = vrot.slane %v6533_v8, %v5852_v45 }
  0xe0   :  { %5012 = vmatpush3.bf16.msra.mxu1 %v5011_v28  ;;  %4982 = vmatprep.subr.bf16.mxu0 %v4981_v30  ;;  %v432_v28 = vrot.slane %v6533_v8, %v5849_v44  ;;  %v4995_v30 = vpack.c.bf16 %v1314_v20, %v1313_v16  ;;  %v5029_v6 = vpack.c.bf16 %v1364_v27, %v1363_v25  ;;  %v1351_v25 = vld [vmem:[%s8595_s4 + $0x970] sm:$0xff] }
  0xe1   :  { %5014 = vmatprep.subr.bf16.mxu1 %v5013_v35  ;;  %2448 = vmatprep.mubr.f32.mxu0 %v1018_v39  ;;  %v4997_v35 = vpack.c.bf16 %v1332_v24, %v1331_v23  ;;  %v152_v39 = vrot.slane %v6528_v7, %v5860_v47  ;;  %v321_v59 = vmul.f32 %v6576_v26, %v132_v0  ;;  %v1319_v23 = vld [vmem:[%s8595_s4 + $0x870] sm:$0xff]  ;;  %v1320_v24 = vld [vmem:[%s8595_s4 + $0x878] sm:$0xff] }
  0xe2   :  { %2518 = vmatprep.mubr.f32.mxu1 %v1020_v50  ;;  %v1333_v50 = vld [vmem:[%s8595_s4 + $0x8e0] sm:$0xff]  ;;  %v623_v19 = vmul.f32 %v440_v34, %v6567_v49  ;;  %v800_v0 = vrot.slane %v6609_v52, %v5860_v47  ;;  %v808_v34 = vrot.slane %v6609_v52, %v5863_v48  ;;  %v5007_v38 = vpack.c.bf16 %v1320_v24, %v1319_v23  ;;  %v1406_v24 = vld [vmem:[%s8595_s4 + $0xb28] sm:$0xff] }
  0xe3   :  { %4984 = vmatpush3.bf16.msra.mxu0 %v4983_v54  ;;  %v1334_v54 = vld [vmem:[%s8595_s4 + $0x8e8] sm:$0xff]  ;;  %v326_v9 = vmul.f32 %v6576_v26, %v152_v39 }
  0xe4   :  { %5016 = vmatpush3.bf16.msra.mxu1 %v5015_v55  ;;  %4986 = vmatprep.subr.bf16.mxu0 %v4985_v57  ;;  %v160_v55 = vrot.slane %v6528_v7, %v5863_v48  ;;  %v460_v57 = vrot.slane %v6533_v8, %v5863_v48  ;;  %v671_v62 = vadd.f32 %v623_v19, %v323_v1  ;;  %v1419_v19 = vld [vmem:[%s8595_s4 + $0xb90] sm:$0xff] }
  0xe5   :  { %5018 = vmatprep.subr.bf16.mxu1 %v5017_v60  ;;  %v621_v60 = vmul.f32 %v432_v28, %v6567_v49  ;;  %v674_v27 = vadd.f32 %v626_v10, %v326_v9  ;;  %v1372_v9 = vld [vmem:[%s8595_s4 + $0xa18] sm:$0xff]  ;;  %v1403_v10 = vld [vmem:[%s8595_s4 + $0xb10] sm:$0xff] }
  0xe6   :  { %v328_v13 = vmul.f32 %v6576_v26, %v160_v55  ;;  %v628_v14 = vmul.f32 %v460_v57, %v6567_v49  ;;  %v971_v39 = vadd.f32 %v788_v21, %v671_v62  ;;  %v5073_v57 = vpack.c.bf16 %v1418_v37, %v1417_v36  ;;  %v1373_v62 = vld [vmem:[%s8595_s4 + $0xa20] sm:$0xff]  ;;  %v1374_v21 = vld [vmem:[%s8595_s4 + $0xa28] sm:$0xff]  ;;  %v1408_v37 = vld [vmem:[%s8595_s4 + $0xb38] sm:$0xff] }
  0xe7   :  { %4988 = vmatpush3.bf16.msra.mxu0 %v4987_v2  ;;  %v5001_v2 = vpack.c.bf16 %v1334_v54, %v1333_v50  ;;  %v669_v16 = vadd.f32 %v621_v60, %v321_v59  ;;  %v1369_v50 = vld [vmem:[%s8595_s4 + $0xa00] sm:$0xff]  ;;  %v1370_v54 = vld [vmem:[%s8595_s4 + $0xa08] sm:$0xff]  ;;  %v974_v55 = vadd.f32 %v800_v0, %v674_v27  ;;  %v1392_v27 = vld [vmem:[%s8595_s4 + $0xab8] sm:$0xff] }
  0xe8   :  { %5020 = vmatpush3.bf16.msra.mxu1 %v5019_v3  ;;  %4990 = vmatprep.subr.bf16.mxu0 %v4989_v4  ;;  %v1318_v3 = vld [vmem:[%s8595_s4 + $0x868] sm:$0xff]  ;;  %v1349_v4 = vld [vmem:[%s8595_s4 + $0x960] sm:$0xff]  ;;  %v676_v33 = vadd.f32 %v628_v14, %v328_v13  ;;  %v5043_v1 = vpack.c.bf16 %v1370_v54, %v1369_v50  ;;  %v1423_v0 = vld [vmem:[%s8595_s4 + $0xbb0] sm:$0xff] }
  0xe9   :  { %5022 = vmatprep.subr.bf16.mxu1 %v5021_v46  ;;  %v5033_v46 = vpack.c.bf16 %v1366_v41, %v1365_v58  ;;  %v5035_v20 = vpack.c.bf16 %v1350_v5, %v1349_v4  ;;  %v1401_v58 = vld [vmem:[%s8595_s4 + $0xb00] sm:$0xff]  ;;  %v1402_v41 = vld [vmem:[%s8595_s4 + $0xb08] sm:$0xff]  ;;  %v1371_v5 = vld [vmem:[%s8595_s4 + $0xa10] sm:$0xff] }
  0xea   :  { %v976_v59 = vadd.f32 %v808_v34, %v676_v33  ;;  %v5075_v4 = vpack.c.bf16 %v1402_v41, %v1401_v58  ;;  %v1389_v13 = vld [vmem:[%s8595_s4 + $0xaa0] sm:$0xff]  ;;  %v1390_v14 = vld [vmem:[%s8595_s4 + $0xaa8] sm:$0xff]  ;;  %v1375_v33 = vld [vmem:[%s8595_s4 + $0xa30] sm:$0xff] }
  0xeb   :  { %4992 = vmatpush3.bf16.msra.mxu0 %v4991_v53  ;;  %v1368_v53 = vld [vmem:[%s8595_s4 + $0x9f8] sm:$0xff]  ;;  %v1377_v54 = vld [vmem:[%s8595_s4 + $0xa40] sm:$0xff]  ;;  %v1378_v58 = vld [vmem:[%s8595_s4 + $0xa48] sm:$0xff] }
  0xec   :  { %5024 = vmatpush3.bf16.msra.mxu1 %v5023_v17  ;;  %4994 = vmatprep.subr.bf16.mxu0 %v4993_v18  ;;  %v780_v17 = vrot.slane %v6609_v52, %v5849_v44  ;;  %v5003_v18 = vpack.c.bf16 %v1318_v3, %v1317_v63  ;;  %v5037_v28 = vpack.c.bf16 %v1368_v53, %v1367_v15  ;;  %v1019_v63 = vmax.f32 %v971_v39, 0.0  ;;  %v1421_v53 = vld [vmem:[%s8595_s4 + $0xba0] sm:$0xff]  ;;  %v1376_v34 = vld [vmem:[%s8595_s4 + $0xa38] sm:$0xff]  ;;  %v1394_v39 = vld [vmem:[%s8595_s4 + $0xac8] sm:$0xff] }
  0xed   :  { %5026 = vmatprep.subr.bf16.mxu1 %v5025_v22  ;;  %v5005_v22 = vpack.c.bf16 %v1336_v12, %v1335_v11  ;;  %v1022_v3 = vmax.f32 %v974_v55, 0.0  ;;  %v1404_v12 = vld [vmem:[%s8595_s4 + $0xb18] sm:$0xff]  ;;  %v5055_v50 = vpack.c.bf16 %v1376_v34, %v1375_v33  ;;  %v1409_v41 = vld [vmem:[%s8595_s4 + $0xb40] sm:$0xff]  ;;  %v1399_v33 = vld [vmem:[%s8595_s4 + $0xaf0] sm:$0xff] }
  0xee   :  { %v1400_v34 = vld [vmem:[%s8595_s4 + $0xaf8] sm:$0xff] }
  0xef   :  { %4996 = vmatpush3.bf16.msra.mxu0 %v4995_v30  ;;  %v1352_v30 = vld [vmem:[%s8595_s4 + $0x978] sm:$0xff] }
  0xf0   :  { %5028 = vmatpush3.bf16.msra.mxu1 %v5027_v31  ;;  %4998 = vmatprep.subr.bf16.mxu0 %v4997_v35  ;;  %v1385_v31 = vld [vmem:[%s8595_s4 + $0xa80] sm:$0xff]  ;;  %v969_v35 = vadd.f32 %v780_v17, %v669_v16  ;;  %v5039_v56 = vpack.c.bf16 %v1352_v30, %v1351_v25  ;;  %v1422_v16 = vld [vmem:[%s8595_s4 + $0xba8] sm:$0xff]  ;;  %v5047_v17 = vpack.c.bf16 %v1372_v9, %v1371_v5  ;;  %v1391_v25 = vld [vmem:[%s8595_s4 + $0xab0] sm:$0xff] }
  0xf1   :  { %5030 = vmatprep.subr.bf16.mxu1 %v5029_v6  ;;  %v5041_v6 = vpack.c.bf16 %v1386_v32, %v1385_v31  ;;  %v5081_v23 = vpack.c.bf16 %v1422_v16, %v1421_v53  ;;  %v5051_v30 = vpack.c.bf16 %v1374_v21, %v1373_v62  ;;  %v5053_v32 = vpack.c.bf16 %v1392_v27, %v1391_v25  ;;  %v6999_v5 = vld [vmem:[%s8593_s2 + $0x18] sm:$0xff]  ;;  %v1398_v53 = vld [vmem:[%s8595_s4 + $0xae8] sm:$0xff] }
  0xf2   :  { %v1017_v60 = vmax.f32 %v969_v35, 0.0  ;;  %v1407_v35 = vld [vmem:[%s8595_s4 + $0xb30] sm:$0xff]  ;;  %v156_v16 = vrot.slane %v6528_v7, %v5938_v29  ;;  %v468_v21 = vrot.slane %v6999_v5, %v5843_v42  ;;  %v1382_v27 = vld [vmem:[%s8595_s4 + $0xa68] sm:$0xff] }
  0xf3   :  { %5000 = vmatpush3.bf16.msra.mxu0 %v4999_v61  ;;  %v1387_v61 = vld [vmem:[%s8595_s4 + $0xa90] sm:$0xff]  ;;  %v5087_v55 = vpack.c.bf16 %v1408_v37, %v1407_v35 }
  0xf4   :  { %5032 = vmatpush3.bf16.msra.mxu1 %v5031_v51  ;;  %5002 = vmatprep.subr.bf16.mxu0 %v5001_v2  ;;  %v1388_v51 = vld [vmem:[%s8595_s4 + $0xa98] sm:$0xff]  ;;  %v327_v35 = vmul.f32 %v6576_v26, %v156_v16  ;;  %v1431_v37 = vld [vmem:[%s8595_s4 + $0xbf0] sm:$0xff] }
  0xf5   :  { %5034 = vmatprep.subr.bf16.mxu1 %v5033_v46  ;;  %v1420_v2 = vld [vmem:[%s8595_s4 + $0xb98] sm:$0xff]  ;;  %v1024_v46 = vmax.f32 %v976_v59, 0.0  ;;  %v5045_v11 = vpack.c.bf16 %v1388_v51, %v1387_v61  ;;  %v1410_v59 = vld [vmem:[%s8595_s4 + $0xb48] sm:$0xff]  ;;  %v1395_v61 = vld [vmem:[%s8595_s4 + $0xad0] sm:$0xff] }
  0xf6   :  { %v5077_v15 = vpack.c.bf16 %v1420_v2, %v1419_v19  ;;  %v1396_v51 = vld [vmem:[%s8595_s4 + $0xad8] sm:$0xff]  ;;  %v5059_v19 = vpack.c.bf16 %v1378_v58, %v1377_v54  ;;  %v5091_v2 = vpack.c.bf16 %v1410_v59, %v1409_v41  ;;  %v5069_v58 = vpack.c.bf16 %v1400_v34, %v1399_v33  ;;  %v1383_v41 = vld [vmem:[%s8595_s4 + $0xa70] sm:$0xff] }
  0xf7   :  { %5004 = vmatpush3.bf16.msra.mxu0 %v5003_v18  ;;  %v5079_v18 = vpack.c.bf16 %v1404_v12, %v1403_v10  ;;  %v5061_v9 = vpack.c.bf16 %v1396_v51, %v1395_v61  ;;  %v1380_v10 = vld [vmem:[%s8595_s4 + $0xa58] sm:$0xff]  ;;  %v148_v12 = vrot.slane %v6528_v7, %v6049_v40  ;;  %v796_v51 = vrot.slane %v6609_v52, %v6049_v40  ;;  %v1467_v33 = vld [vmem:[%s8595_s4 + $0xd10] sm:$0xff] }
  0xf8   :  { %5036 = vmatpush3.bf16.msra.mxu1 %v5035_v20  ;;  %5006 = vmatprep.subr.bf16.mxu0 %v5005_v22  ;;  %v5049_v20 = vpack.c.bf16 %v1390_v14, %v1389_v13  ;;  %v1405_v22 = vld [vmem:[%s8595_s4 + $0xb20] sm:$0xff]  ;;  %v448_v13 = vrot.slane %v6533_v8, %v6049_v40  ;;  %v7071_v54 = vld [vmem:[%s8594_s3 + $0x18] sm:$0xff] }
  0xf9   :  { %5038 = vmatprep.subr.bf16.mxu1 %v5037_v28  ;;  %v1424_v28 = vld [vmem:[%s8595_s4 + $0xbb8] sm:$0xff]  ;;  %v5083_v31 = vpack.c.bf16 %v1406_v24, %v1405_v22  ;;  %v476_v24 = vrot.slane %v6999_v5, %v5846_v43 }
  0xfa   :  { %v5085_v36 = vpack.c.bf16 %v1424_v28, %v1423_v0  ;;  %v1413_v0 = vld [vmem:[%s8595_s4 + $0xb60] sm:$0xff]  ;;  %v1414_v28 = vld [vmem:[%s8595_s4 + $0xb68] sm:$0xff]  ;;  %v1384_v59 = vld [vmem:[%s8595_s4 + $0xa78] sm:$0xff] }
  0xfb   :  { %5008 = vmatpush3.bf16.msra.mxu0 %v5007_v38  ;;  %v1393_v38 = vld [vmem:[%s8595_s4 + $0xac0] sm:$0xff] }
  0xfc   :  { %5040 = vmatpush3.bf16.msra.mxu1 %v5039_v56  ;;  %5042 = vmatprep.subr.bf16.mxu0 %v5041_v6  ;;  %v1425_v56 = vld [vmem:[%s8595_s4 + $0xbc0] sm:$0xff]  ;;  %v1426_v6 = vld [vmem:[%s8595_s4 + $0xbc8] sm:$0xff] }
  0xfd   :  { %5074 = vmatprep.subr.bf16.mxu1 %v5073_v57  ;;  %v5057_v57 = vpack.c.bf16 %v1394_v39, %v1393_v38  ;;  %v1432_v38 = vld [vmem:[%s8595_s4 + $0xbf8] sm:$0xff] }
  0xfe   :  { %2449 = vmatmul.mubr.f32.vlgmr.msra.gmra.mrb[8].mxu0 %v1017_v60  ;;  %v5089_v60 = vpack.c.bf16 %v1426_v6, %v1425_v56  ;;  %v630_v56 = vmul.f32 %v468_v21, %v6567_v49  ;;  %v1465_v21 = vld [vmem:[%s8595_s4 + $0xd00] sm:$0xff] }
  0xff   :  { %2519 = vmatmul.mubr.f32.vlgmr.msra.gmra.mrb[8].mxu1 %v1019_v63  ;;  %5044 = vmatpush3.bf16.msra.mxu0 %v5043_v1  ;;  %v1427_v63 = vld [vmem:[%s8595_s4 + $0xbd0] sm:$0xff]  ;;  %v1428_v1 = vld [vmem:[%s8595_s4 + $0xbd8] sm:$0xff] }
 0x100   :  { %2588 = vmatprep.mubr.f32.mxu0 %v1022_v3  ;;  %5076 = vmatpush3.bf16.msra.mxu1 %v5075_v4  ;;  %v1379_v3 = vld [vmem:[%s8595_s4 + $0xa50] sm:$0xff]  ;;  %v6994_v4 = vld [vmem:[%s8592_s1 + $0x18] sm:$0xff]  ;;  %v5093_v14 = vpack.c.bf16 %v1428_v1, %v1427_v63  ;;  %v5101_v63 = vpack.c.bf16 %v1432_v38, %v1431_v37  ;;  %v1453_v37 = vld [vmem:[%s8595_s4 + $0xca0] sm:$0xff] }
 0x101   :  { %2658 = vmatprep.mubr.f32.mxu1 %v1024_v46  ;;  %5046 = vmatprep.subr.bf16.mxu0 %v5045_v11  ;;  %v1411_v46 = vld [vmem:[%s8595_s4 + $0xb50] sm:$0xff]  ;;  %v1412_v11 = vld [vmem:[%s8595_s4 + $0xb58] sm:$0xff]  ;;  %v168_v62 = vrot.slane %v6994_v4, %v5843_v42  ;;  %v5063_v22 = vpack.c.bf16 %v1380_v10, %v1379_v3  ;;  %v1449_v3 = vld [vmem:[%s8595_s4 + $0xc80] sm:$0xff] }
 0x102   :  { %5078 = vmatprep.subr.bf16.mxu1 %v5077_v15  ;;  %v1397_v15 = vld [vmem:[%s8595_s4 + $0xae0] sm:$0xff]  ;;  %v5095_v7 = vpack.c.bf16 %v1412_v11, %v1411_v46  ;;  %v1416_v1 = vld [vmem:[%s8595_s4 + $0xb78] sm:$0xff]  ;;  %v1482_v46 = vld [vmem:[%s8595_s4 + $0xd88] sm:$0xff] }
 0x103   :  { %5048 = vmatpush3.bf16.msra.mxu0 %v5047_v17  ;;  %v456_v17 = vrot.slane %v6533_v8, %v5938_v29  ;;  %v1381_v8 = vld [vmem:[%s8595_s4 + $0xa60] sm:$0xff]  ;;  %v5065_v25 = vpack.c.bf16 %v1398_v53, %v1397_v15  ;;  %v330_v39 = vmul.f32 %v6576_v26, %v168_v62  ;;  %v1454_v38 = vld [vmem:[%s8595_s4 + $0xca8] sm:$0xff] }
 0x104   :  { %5080 = vmatpush3.bf16.msra.mxu1 %v5079_v18  ;;  %5050 = vmatprep.subr.bf16.mxu0 %v5049_v20  ;;  %v1429_v18 = vld [vmem:[%s8595_s4 + $0xbe0] sm:$0xff]  ;;  %v1430_v20 = vld [vmem:[%s8595_s4 + $0xbe8] sm:$0xff]  ;;  %v5067_v6 = vpack.c.bf16 %v1382_v27, %v1381_v8  ;;  %v1451_v8 = vld [vmem:[%s8595_s4 + $0xc90] sm:$0xff] }
 0x105   :  { %5082 = vmatprep.subr.bf16.mxu1 %v5081_v23  ;;  %v176_v23 = vrot.slane %v6994_v4, %v5846_v43  ;;  %v1481_v10 = vld [vmem:[%s8595_s4 + $0xd80] sm:$0xff]  ;;  %v678_v11 = vadd.f32 %v630_v56, %v330_v39  ;;  %v1483_v27 = vld [vmem:[%s8595_s4 + $0xd90] sm:$0xff] }
 0x106   :  { %v5137_v62 = vpack.c.bf16 %v1482_v46, %v1481_v10 }
 0x107   :  { %5052 = vmatpush3.bf16.msra.mxu0 %v5051_v30  ;;  %v325_v30 = vmul.f32 %v6576_v26, %v148_v12  ;;  %v5071_v12 = vpack.c.bf16 %v1384_v59, %v1383_v41  ;;  %v5113_v41 = vpack.c.bf16 %v1454_v38, %v1453_v37  ;;  %v1437_v59 = vld [vmem:[%s8595_s4 + $0xc20] sm:$0xff]  ;;  %v1476_v38 = vld [vmem:[%s8595_s4 + $0xd58] sm:$0xff] }
 0x108   :  { %5084 = vmatpush3.bf16.msra.mxu1 %v5083_v31  ;;  %5054 = vmatprep.subr.bf16.mxu0 %v5053_v32  ;;  %v625_v31 = vmul.f32 %v448_v13, %v6567_v49  ;;  %v5097_v32 = vpack.c.bf16 %v1430_v20, %v1429_v18  ;;  %v1434_v18 = vld [vmem:[%s8595_s4 + $0xc08] sm:$0xff] }
 0x109   :  { %5086 = vmatprep.subr.bf16.mxu1 %v5085_v36  ;;  %v627_v36 = vmul.f32 %v456_v17, %v6567_v49  ;;  %v1433_v17 = vld [vmem:[%s8595_s4 + $0xc00] sm:$0xff] }
 0x10a   :  { %v673_v61 = vadd.f32 %v625_v31, %v325_v30  ;;  %v1435_v31 = vld [vmem:[%s8595_s4 + $0xc10] sm:$0xff] }
 0x10b   :  { %5056 = vmatpush3.bf16.msra.mxu0 %v5055_v50  ;;  %v5099_v50 = vpack.c.bf16 %v1414_v28, %v1413_v0  ;;  %v1484_v0 = vld [vmem:[%s8595_s4 + $0xd98] sm:$0xff] }
 0x10c   :  { %5088 = vmatpush3.bf16.msra.mxu1 %v5087_v55  ;;  %5058 = vmatprep.subr.bf16.mxu0 %v5057_v57  ;;  %v332_v55 = vmul.f32 %v6576_v26, %v176_v23  ;;  %v632_v57 = vmul.f32 %v476_v24, %v6567_v49  ;;  %v973_v53 = vadd.f32 %v796_v51, %v673_v61  ;;  %v1452_v23 = vld [vmem:[%s8595_s4 + $0xc98] sm:$0xff]  ;;  %v1469_v61 = vld [vmem:[%s8595_s4 + $0xd20] sm:$0xff] }
 0x10d   :  { %5090 = vmatprep.subr.bf16.mxu1 %v5089_v60  ;;  %v1415_v60 = vld [vmem:[%s8595_s4 + $0xb70] sm:$0xff]  ;;  %v5107_v24 = vpack.c.bf16 %v1434_v18, %v1433_v17  ;;  %v5141_v56 = vpack.c.bf16 %v1484_v0, %v1483_v27  ;;  %v1490_v17 = vld [vmem:[%s8595_s4 + $0xdc8] sm:$0xff]  ;;  %v1492_v0 = vld [vmem:[%s8595_s4 + $0xdd8] sm:$0xff] }
 0x10e   :  { %v680_v13 = vadd.f32 %v632_v57, %v332_v55  ;;  %v5103_v15 = vpack.c.bf16 %v1416_v1, %v1415_v60  ;;  %v1021_v28 = vmax.f32 %v973_v53, 0.0  ;;  %v1438_v60 = vld [vmem:[%s8595_s4 + $0xc28] sm:$0xff]  ;;  %v1455_v1 = vld [vmem:[%s8595_s4 + $0xcb0] sm:$0xff] }
 0x10f   :  { %5060 = vmatpush3.bf16.msra.mxu0 %v5059_v19  ;;  %v675_v19 = vadd.f32 %v627_v36, %v327_v35  ;;  %v5109_v35 = vpack.c.bf16 %v1452_v23, %v1451_v8  ;;  %v1468_v36 = vld [vmem:[%s8595_s4 + $0xd18] sm:$0xff]  ;;  %v1458_v53 = vld [vmem:[%s8595_s4 + $0xcc8] sm:$0xff]  ;;  %v1491_v27 = vld [vmem:[%s8595_s4 + $0xdd0] sm:$0xff] }
 0x110   :  { %5092 = vmatpush3.bf16.msra.mxu1 %v5091_v2  ;;  %5062 = vmatprep.subr.bf16.mxu0 %v5061_v9  ;;  %v804_v2 = vrot.slane %v6609_v52, %v5938_v29  ;;  %v1450_v9 = vld [vmem:[%s8595_s4 + $0xc88] sm:$0xff]  ;;  %v816_v52 = vrot.slane %v7071_v54, %v5843_v42  ;;  %v5157_v37 = vpack.c.bf16 %v1492_v0, %v1491_v27  ;;  %v1480_v27 = vld [vmem:[%s8595_s4 + $0xd78] sm:$0xff] }
 0x111   :  { %5094 = vmatprep.subr.bf16.mxu1 %v5093_v14  ;;  %v824_v14 = vrot.slane %v7071_v54, %v5846_v43  ;;  %v5105_v16 = vpack.c.bf16 %v1450_v9, %v1449_v3  ;;  %v1488_v3 = vld [vmem:[%s8595_s4 + $0xdb8] sm:$0xff]  ;;  %v5115_v9 = vpack.c.bf16 %v1438_v60, %v1437_v59  ;;  %v1474_v23 = vld [vmem:[%s8595_s4 + $0xd48] sm:$0xff] }
 0x112   :  { %v975_v20 = vadd.f32 %v804_v2, %v675_v19  ;;  %v1456_v19 = vld [vmem:[%s8595_s4 + $0xcb8] sm:$0xff]  ;;  %v1487_v2 = vld [vmem:[%s8595_s4 + $0xdb0] sm:$0xff] }
 0x113   :  { %5064 = vmatpush3.bf16.msra.mxu0 %v5063_v22  ;;  %v1466_v22 = vld [vmem:[%s8595_s4 + $0xd08] sm:$0xff]  ;;  %v5117_v46 = vpack.c.bf16 %v1456_v19, %v1455_v1  ;;  %v1445_v19 = vld [vmem:[%s8595_s4 + $0xc60] sm:$0xff] }
 0x114   :  { %5096 = vmatpush3.bf16.msra.mxu1 %v5095_v7  ;;  %5066 = vmatprep.subr.bf16.mxu0 %v5065_v25  ;;  %v978_v7 = vadd.f32 %v816_v52, %v678_v11  ;;  %v980_v25 = vadd.f32 %v824_v14, %v680_v13  ;;  %v5139_v30 = vpack.c.bf16 %v1466_v22, %v1465_v21  ;;  %v1023_v34 = vmax.f32 %v975_v20, 0.0  ;;  %v1439_v11 = vld [vmem:[%s8595_s4 + $0xc30] sm:$0xff]  ;;  %v1440_v52 = vld [vmem:[%s8595_s4 + $0xc38] sm:$0xff]  ;;  %v1441_v21 = vld [vmem:[%s8595_s4 + $0xc40] sm:$0xff] }
 0x115   :  { %5098 = vmatprep.subr.bf16.mxu1 %v5097_v32  ;;  %v1436_v32 = vld [vmem:[%s8595_s4 + $0xc18] sm:$0xff]  ;;  %v5149_v13 = vpack.c.bf16 %v1488_v3, %v1487_v2  ;;  %v5119_v18 = vpack.c.bf16 %v1440_v52, %v1439_v11  ;;  %v1442_v22 = vld [vmem:[%s8595_s4 + $0xc48] sm:$0xff]  ;;  %v1477_v3 = vld [vmem:[%s8595_s4 + $0xd60] sm:$0xff] }
 0x116   :  { %v1026_v39 = vmax.f32 %v978_v7, 0.0  ;;  %v1028_v55 = vmax.f32 %v980_v25, 0.0  ;;  %v5111_v57 = vpack.c.bf16 %v1436_v32, %v1435_v31  ;;  %v1472_v14 = vld [vmem:[%s8595_s4 + $0xd38] sm:$0xff]  ;;  %v1473_v7 = vld [vmem:[%s8595_s4 + $0xd40] sm:$0xff]  ;;  %v1446_v2 = vld [vmem:[%s8595_s4 + $0xc68] sm:$0xff] }
 0x117   :  { %5068 = vmatpush3.bf16.msra.mxu0 %v5067_v6  ;;  %v1485_v6 = vld [vmem:[%s8595_s4 + $0xda0] sm:$0xff]  ;;  %v1460_v25 = vld [vmem:[%s8595_s4 + $0xcd8] sm:$0xff]  ;;  %v5155_v31 = vpack.c.bf16 %v1474_v23, %v1473_v7  ;;  %v1463_v11 = vld [vmem:[%s8595_s4 + $0xcf0] sm:$0xff] }
 0x118   :  { %5100 = vmatpush3.bf16.msra.mxu1 %v5099_v50  ;;  %5070 = vmatprep.subr.bf16.mxu0 %v5069_v58  ;;  %v1486_v50 = vld [vmem:[%s8595_s4 + $0xda8] sm:$0xff]  ;;  %v5143_v58 = vpack.c.bf16 %v1468_v36, %v1467_v33  ;;  %v1443_v33 = vld [vmem:[%s8595_s4 + $0xc50] sm:$0xff]  ;;  %v464_v36 = vrot.slane %v6999_v5, %v5849_v44  ;;  %v1464_v52 = vld [vmem:[%s8595_s4 + $0xcf8] sm:$0xff] }
 0x119   :  { %5102 = vmatprep.subr.bf16.mxu1 %v5101_v63  ;;  %v5145_v51 = vpack.c.bf16 %v1486_v50, %v1485_v6  ;;  %v1470_v63 = vld [vmem:[%s8595_s4 + $0xd28] sm:$0xff]  ;;  %v172_v6 = vrot.slane %v6994_v4, %v5852_v45  ;;  %v472_v50 = vrot.slane %v6999_v5, %v5852_v45  ;;  %v1447_v7 = vld [vmem:[%s8595_s4 + $0xc70] sm:$0xff] }
 0x11a   :  { %v5147_v10 = vpack.c.bf16 %v1470_v63, %v1469_v61  ;;  %v192_v61 = vrot.slane %v6994_v4, %v5863_v48  ;;  %v1479_v23 = vld [vmem:[%s8595_s4 + $0xd70] sm:$0xff] }
 0x11b   :  { %5072 = vmatpush3.bf16.msra.mxu0 %v5071_v12  ;;  %v1471_v12 = vld [vmem:[%s8595_s4 + $0xd30] sm:$0xff] }
 0x11c   :  { %5104 = vmatpush3.bf16.msra.mxu1 %v5103_v15  ;;  %5106 = vmatprep.subr.bf16.mxu0 %v5105_v16  ;;  %v1457_v15 = vld [vmem:[%s8595_s4 + $0xcc0] sm:$0xff]  ;;  %v5151_v20 = vpack.c.bf16 %v1472_v14, %v1471_v12  ;;  %v331_v12 = vmul.f32 %v6576_v26, %v172_v6  ;;  %v1495_v14 = vld [vmem:[%s8595_s4 + $0xdf0] sm:$0xff] }
 0x11d   :  { %5138 = vmatprep.subr.bf16.mxu1 %v5137_v62  ;;  %v1489_v16 = vld [vmem:[%s8595_s4 + $0xdc0] sm:$0xff]  ;;  %v5121_v62 = vpack.c.bf16 %v1458_v53, %v1457_v15  ;;  %v1496_v15 = vld [vmem:[%s8595_s4 + $0xdf8] sm:$0xff] }
 0x11e   :  { %2589 = vmatmul.mubr.f32.vlgmr.msra.gmra.mrb[10].mxu0 %v1021_v28  ;;  %v5153_v8 = vpack.c.bf16 %v1490_v17, %v1489_v16  ;;  %v5123_v28 = vpack.c.bf16 %v1442_v22, %v1441_v21  ;;  %v5131_v17 = vpack.c.bf16 %v1446_v2, %v1445_v19  ;;  %v1547_v19 = vld [vmem:[%s8595_s4 + $0xf90] sm:$0xff]  ;;  %v1548_v2 = vld [vmem:[%s8595_s4 + $0xf98] sm:$0xff] }
 0x11f   :  { %2659 = vmatmul.mubr.f32.vlgmr.msra.gmra.mrb[10].mxu1 %v1023_v34  ;;  %5108 = vmatpush3.bf16.msra.mxu0 %v5107_v24  ;;  %v1459_v24 = vld [vmem:[%s8595_s4 + $0xcd0] sm:$0xff]  ;;  %v1444_v34 = vld [vmem:[%s8595_s4 + $0xc58] sm:$0xff] }
 0x120   :  { %2728 = vmatprep.mubr.f32.mxu0 %v1026_v39  ;;  %5140 = vmatpush3.bf16.msra.mxu1 %v5139_v30  ;;  %v164_v30 = vrot.slane %v6994_v4, %v5849_v44  ;;  %v5125_v32 = vpack.c.bf16 %v1460_v25, %v1459_v24  ;;  %v1461_v39 = vld [vmem:[%s8595_s4 + $0xce0] sm:$0xff]  ;;  %v5127_v59 = vpack.c.bf16 %v1444_v34, %v1443_v33  ;;  %v1546_v33 = vld [vmem:[%s8595_s4 + $0xf88] sm:$0xff] }
 0x121   :  { %2798 = vmatprep.mubr.f32.mxu1 %v1028_v55  ;;  %5110 = vmatprep.subr.bf16.mxu0 %v5109_v35  ;;  %v1475_v35 = vld [vmem:[%s8595_s4 + $0xd50] sm:$0xff]  ;;  %v1493_v55 = vld [vmem:[%s8595_s4 + $0xde0] sm:$0xff]  ;;  %v5165_v25 = vpack.c.bf16 %v1496_v15, %v1495_v14  ;;  %v1518_v15 = vld [vmem:[%s8595_s4 + $0xea8] sm:$0xff] }
 0x122   :  { %5142 = vmatprep.subr.bf16.mxu1 %v5141_v56  ;;  %v1462_v56 = vld [vmem:[%s8595_s4 + $0xce8] sm:$0xff]  ;;  %v329_v60 = vmul.f32 %v6576_v26, %v164_v30  ;;  %v5159_v63 = vpack.c.bf16 %v1476_v38, %v1475_v35  ;;  %v1513_v30 = vld [vmem:[%s8595_s4 + $0xe80] sm:$0xff]  ;;  %v832_v35 = vrot.slane %v7071_v54, %v5860_v47  ;;  %v840_v38 = vrot.slane %v7071_v54, %v5863_v48 }
 0x123   :  { %5112 = vmatpush3.bf16.msra.mxu0 %v5111_v57  ;;  %v1494_v57 = vld [vmem:[%s8595_s4 + $0xde8] sm:$0xff]  ;;  %v5129_v1 = vpack.c.bf16 %v1462_v56, %v1461_v39  ;;  %v5167_v39 = vpack.c.bf16 %v1480_v27, %v1479_v23  ;;  %v1517_v14 = vld [vmem:[%s8595_s4 + $0xea0] sm:$0xff]  ;;  %v1519_v27 = vld [vmem:[%s8595_s4 + $0xeb0] sm:$0xff] }
 0x124   :  { %5144 = vmatpush3.bf16.msra.mxu1 %v5143_v58  ;;  %5114 = vmatprep.subr.bf16.mxu0 %v5113_v41  ;;  %v184_v58 = vrot.slane %v6994_v4, %v5860_v47  ;;  %v484_v41 = vrot.slane %v6999_v5, %v5860_v47  ;;  %v1533_v23 = vld [vmem:[%s8595_s4 + $0xf20] sm:$0xff] }
 0x125   :  { %5146 = vmatprep.subr.bf16.mxu1 %v5145_v51  ;;  %v492_v51 = vrot.slane %v6999_v5, %v5863_v48 }
 0x126   :  { %v334_v53 = vmul.f32 %v6576_v26, %v184_v58  ;;  %v634_v16 = vmul.f32 %v484_v41, %v6567_v49  ;;  %v5133_v26 = vpack.c.bf16 %v1464_v52, %v1463_v11  ;;  %v1529_v41 = vld [vmem:[%s8595_s4 + $0xf00] sm:$0xff]  ;;  %v1531_v11 = vld [vmem:[%s8595_s4 + $0xf10] sm:$0xff] }
 0x127   :  { %5116 = vmatpush3.bf16.msra.mxu0 %v5115_v9  ;;  %v629_v9 = vmul.f32 %v464_v36, %v6567_v49  ;;  %v636_v21 = vmul.f32 %v492_v51, %v6567_v49  ;;  %v1516_v51 = vld [vmem:[%s8595_s4 + $0xe98] sm:$0xff] }
 0x128   :  { %5148 = vmatpush3.bf16.msra.mxu1 %v5147_v10  ;;  %5118 = vmatprep.subr.bf16.mxu0 %v5117_v46  ;;  %v5161_v10 = vpack.c.bf16 %v1494_v57, %v1493_v55  ;;  %v1478_v46 = vld [vmem:[%s8595_s4 + $0xd68] sm:$0xff]  ;;  %v682_v34 = vadd.f32 %v634_v16, %v334_v53  ;;  %v5205_v16 = vpack.c.bf16 %v1548_v2, %v1547_v19  ;;  %v1555_v19 = vld [vmem:[%s8595_s4 + $0xfd0] sm:$0xff]  ;;  %v1556_v2 = vld [vmem:[%s8595_s4 + $0xfd8] sm:$0xff] }
 0x129   :  { %5150 = vmatprep.subr.bf16.mxu1 %v5149_v13  ;;  %v631_v13 = vmul.f32 %v472_v50, %v6567_v49  ;;  %v5163_v22 = vpack.c.bf16 %v1478_v46, %v1477_v3  ;;  %v677_v24 = vadd.f32 %v629_v9, %v329_v60  ;;  %v1497_v50 = vld [vmem:[%s8595_s4 + $0xe00] sm:$0xff]  ;;  %v1498_v55 = vld [vmem:[%s8595_s4 + $0xe08] sm:$0xff]  ;;  %v1500_v46 = vld [vmem:[%s8595_s4 + $0xe18] sm:$0xff] }
 0x12a   :  { %v982_v60 = vadd.f32 %v832_v35, %v682_v34  ;;  %v1503_v34 = vld [vmem:[%s8595_s4 + $0xe30] sm:$0xff]  ;;  %v1504_v35 = vld [vmem:[%s8595_s4 + $0xe38] sm:$0xff] }
 0x12b   :  { %5120 = vmatpush3.bf16.msra.mxu0 %v5119_v18  ;;  %v812_v18 = vrot.slane %v7071_v54, %v5849_v44  ;;  %v679_v0 = vadd.f32 %v631_v13, %v331_v12  ;;  %v1532_v13 = vld [vmem:[%s8595_s4 + $0xf18] sm:$0xff] }
 0x12c   :  { %5152 = vmatpush3.bf16.msra.mxu1 %v5151_v20  ;;  %5122 = vmatprep.subr.bf16.mxu0 %v5121_v62  ;;  %v7302_v20 = vld [vmem:[%s8591_s0] sm:$0xff]  ;;  %v1030_v53 = vmax.f32 %v982_v60, 0.0 }
 0x12d   :  { %5154 = vmatprep.subr.bf16.mxu1 %v5153_v8  ;;  %v336_v62 = vmul.f32 %v7302_v20, %v192_v61  ;;  %v1448_v8 = vld [vmem:[%s8595_s4 + $0xc78] sm:$0xff]  ;;  %v977_v56 = vadd.f32 %v812_v18, %v677_v24  ;;  %v1515_v61 = vld [vmem:[%s8595_s4 + $0xe90] sm:$0xff]  ;;  %v1550_v18 = vld [vmem:[%s8595_s4 + $0xfa8] sm:$0xff] }
 0x12e   :  { %v5135_v36 = vpack.c.bf16 %v1448_v8, %v1447_v7  ;;  %v5173_v12 = vpack.c.bf16 %v1516_v51, %v1515_v61  ;;  %v1501_v7 = vld [vmem:[%s8595_s4 + $0xe20] sm:$0xff]  ;;  %v1502_v8 = vld [vmem:[%s8595_s4 + $0xe28] sm:$0xff] }
 0x12f   :  { %5124 = vmatpush3.bf16.msra.mxu0 %v5123_v28  ;;  %v820_v28 = vrot.slane %v7071_v54, %v5852_v45  ;;  %v1025_v3 = vmax.f32 %v977_v56, 0.0  ;;  %v1522_v56 = vld [vmem:[%s8595_s4 + $0xec8] sm:$0xff]  ;;  %v1537_v60 = vld [vmem:[%s8595_s4 + $0xf40] sm:$0xff] }
 0x130   :  { %5156 = vmatpush3.bf16.msra.mxu1 %v5155_v31  ;;  %5126 = vmatprep.subr.bf16.mxu0 %v5125_v32  ;;  %v1514_v31 = vld [vmem:[%s8595_s4 + $0xe88] sm:$0xff]  ;;  %v1545_v32 = vld [vmem:[%s8595_s4 + $0xf80] sm:$0xff] }
 0x131   :  { %5158 = vmatprep.subr.bf16.mxu1 %v5157_v37  ;;  %v684_v37 = vadd.f32 %v636_v21, %v336_v62  ;;  %v5169_v6 = vpack.c.bf16 %v1514_v31, %v1513_v30  ;;  %v979_v57 = vadd.f32 %v820_v28, %v679_v0  ;;  %v5201_v58 = vpack.c.bf16 %v1546_v33, %v1545_v32  ;;  %v1520_v0 = vld [vmem:[%s8595_s4 + $0xeb8] sm:$0xff]  ;;  %v1551_v28 = vld [vmem:[%s8595_s4 + $0xfb0] sm:$0xff]  ;;  %v1538_v61 = vld [vmem:[%s8595_s4 + $0xf48] sm:$0xff] }
 0x132   :  { %v1552_v30 = vld [vmem:[%s8595_s4 + $0xfb8] sm:$0xff]  ;;  %v5179_v31 = vpack.c.bf16 %v1502_v8, %v1501_v7  ;;  %v5181_v33 = vpack.c.bf16 %v1520_v0, %v1519_v27  ;;  %v7502_v7 = vpop.permute.xlu1 %50 }
 0x133   :  { %5128 = vmatpush3.bf16.msra.mxu0 %v5127_v59  ;;  %v1530_v59 = vld [vmem:[%s8595_s4 + $0xf08] sm:$0xff]  ;;  %v1027_v52 = vmax.f32 %v979_v57, 0.0  ;;  %v1505_v57 = vld [vmem:[%s8595_s4 + $0xe40] sm:$0xff] }
 0x134   :  { %5160 = vmatpush3.bf16.msra.mxu1 %v5159_v63  ;;  %5130 = vmatprep.subr.bf16.mxu0 %v5129_v1  ;;  %v5171_v63 = vpack.c.bf16 %v1498_v55, %v1497_v50  ;;  %v984_v1 = vadd.f32 %v840_v38, %v684_v37  ;;  %v5203_v9 = vpack.c.bf16 %v1530_v59, %v1529_v41  ;;  %v1536_v38 = vld [vmem:[%s8595_s4 + $0xf38] sm:$0xff]  ;;  %v1554_v50 = vld [vmem:[%s8595_s4 + $0xfc8] sm:$0xff] }
 0x135   :  { %5162 = vmatprep.subr.bf16.mxu1 %v5161_v10  ;;  %v1499_v10 = vld [vmem:[%s8595_s4 + $0xe10] sm:$0xff]  ;;  %v5213_v37 = vpack.c.bf16 %v1552_v30, %v1551_v28  ;;  %v5183_v55 = vpack.c.bf16 %v1504_v35, %v1503_v34  ;;  %v1506_v59 = vld [vmem:[%s8595_s4 + $0xe48] sm:$0xff]  ;;  %v3796_v28 = vld [vmem:[%s8596_s5] ss:$0 sm:$0xff] }
 0x136   :  { %v1032_v62 = vmax.f32 %v984_v1, 0.0  ;;  %v5175_v21 = vpack.c.bf16 %v1500_v46, %v1499_v10  ;;  %v1524_v1 = vld [vmem:[%s8595_s4 + $0xed8] sm:$0xff]  ;;  %v5187_v10 = vpack.c.bf16 %v1506_v59, %v1505_v57  ;;  %v180_v46 = vrot.slane %v6994_v4, %v6049_v40  ;;  %v1541_v34 = vld [vmem:[%s8595_s4 + $0xf60] sm:$0xff] }
 0x137   :  { %5132 = vmatpush3.bf16.msra.mxu0 %v5131_v17  ;;  %v1549_v17 = vld [vmem:[%s8595_s4 + $0xfa0] sm:$0xff]  ;;  %v828_v59 = vrot.slane %v7071_v54, %v6049_v40 }
 0x138   :  { %5164 = vmatpush3.bf16.msra.mxu1 %v5163_v22  ;;  %5134 = vmatprep.subr.bf16.mxu0 %v5133_v26  ;;  %v5207_v22 = vpack.c.bf16 %v1532_v13, %v1531_v11  ;;  %v5177_v26 = vpack.c.bf16 %v1518_v15, %v1517_v14  ;;  %v5209_v24 = vpack.c.bf16 %v1550_v18, %v1549_v17  ;;  %v1507_v14 = vld [vmem:[%s8595_s4 + $0xe50] sm:$0xff]  ;;  %v1508_v15 = vld [vmem:[%s8595_s4 + $0xe58] sm:$0xff]  ;;  %v1525_v18 = vld [vmem:[%s8595_s4 + $0xee0] sm:$0xff] }
 0x139   :  { %5166 = vmatprep.subr.bf16.mxu1 %v5165_v25  ;;  %v1534_v25 = vld [vmem:[%s8595_s4 + $0xf28] sm:$0xff]  ;;  %v480_v11 = vrot.slane %v6999_v5, %v6049_v40  ;;  %v1540_v17 = vld [vmem:[%s8595_s4 + $0xf58] sm:$0xff] }
 0x13a   :  { %v5211_v32 = vpack.c.bf16 %v1534_v25, %v1533_v23  ;;  %v333_v25 = vmul.f32 %v7302_v20, %v180_v46 }
 0x13b   :  { %5136 = vmatpush3.bf16.msra.mxu0 %v5135_v36  ;;  %v1535_v36 = vld [vmem:[%s8595_s4 + $0xf30] sm:$0xff]  ;;  %v633_v27 = vmul.f32 %v480_v11, %v6567_v49 }
 0x13c   :  { %5168 = vmatpush3.bf16.msra.mxu1 %v5167_v39  ;;  %5170 = vmatprep.subr.bf16.mxu0 %v5169_v6  ;;  %v1521_v39 = vld [vmem:[%s8595_s4 + $0xec0] sm:$0xff] }
 0x13d   :  { %5202 = vmatprep.subr.bf16.mxu1 %v5201_v58  ;;  %v1553_v6 = vld [vmem:[%s8595_s4 + $0xfc0] sm:$0xff]  ;;  %v5215_v58 = vpack.c.bf16 %v1536_v38, %v1535_v36  ;;  %v5185_v41 = vpack.c.bf16 %v1522_v56, %v1521_v39  ;;  %v1542_v39 = vld [vmem:[%s8595_s4 + $0xf68] sm:$0xff]  ;;  %v1527_v56 = vld [vmem:[%s8595_s4 + $0xef0] sm:$0xff] }
 0x13e   :  { %2729 = vmatmul.mubr.f32.vlgmr.msra.gmra.mrb[12].mxu0 %v1025_v3  ;;  %v5217_v51 = vpack.c.bf16 %v1554_v50, %v1553_v6  ;;  %v7459_v3 = vld [vmem:[%s8592_s1 + $0x20] sm:$0xff]  ;;  %v1528_v6 = vld [vmem:[%s8595_s4 + $0xef8] sm:$0xff]  ;;  %v5227_v46 = vpack.c.bf16 %v1542_v39, %v1541_v34 }
 0x13f   :  { %2799 = vmatmul.mubr.f32.vlgmr.msra.gmra.mrb[12].mxu1 %v1027_v52  ;;  %5172 = vmatpush3.bf16.msra.mxu0 %v5171_v63  ;;  %v1523_v63 = vld [vmem:[%s8595_s4 + $0xed0] sm:$0xff]  ;;  %v188_v52 = vrot.slane %v6994_v4, %v5938_v29  ;;  %v5221_v4 = vpack.c.bf16 %v1556_v2, %v1555_v19  ;;  %v208_v8 = vrot.slane %v7459_v3, %v5846_v43  ;;  %v1580_v34 = vld [vmem:[%s8595_s4 + $0x1098] sm:$0xff] }
 0x140   :  { %2868 = vmatprep.mubr.f32.mxu0 %v1030_v53  ;;  %5204 = vmatpush3.bf16.msra.mxu1 %v5203_v9  ;;  %v7464_v9 = vld [vmem:[%s8593_s2 + $0x20] sm:$0xff]  ;;  %v5189_v13 = vpack.c.bf16 %v1524_v1, %v1523_v63  ;;  %v1539_v53 = vld [vmem:[%s8595_s4 + $0xf50] sm:$0xff]  ;;  %v5197_v11 = vpack.c.bf16 %v1528_v6, %v1527_v56 }
 0x141   :  { %2938 = vmatprep.mubr.f32.mxu1 %v1032_v62  ;;  %5174 = vmatprep.subr.bf16.mxu0 %v5173_v12  ;;  %v5219_v12 = vpack.c.bf16 %v1538_v61, %v1537_v60  ;;  %v1526_v62 = vld [vmem:[%s8595_s4 + $0xee8] sm:$0xff]  ;;  %v508_v23 = vrot.slane %v7464_v9, %v5846_v43  ;;  %v335_v0 = vmul.f32 %v7302_v20, %v188_v52  ;;  %v7548_v61 = vld [vmem:[%s8594_s3 + $0x20] sm:$0xff]  ;;  %v1512_v52 = vld [vmem:[%s8595_s4 + $0xe78] sm:$0xff] }
 0x142   :  { %5206 = vmatprep.subr.bf16.mxu1 %v5205_v16  ;;  %v488_v16 = vrot.slane %v6999_v5, %v5938_v29  ;;  %v500_v5 = vrot.slane %v7464_v9, %v5843_v42  ;;  %v5223_v30 = vpack.c.bf16 %v1540_v17, %v1539_v53  ;;  %v836_v60 = vrot.slane %v7071_v54, %v5938_v29  ;;  %v1511_v54 = vld [vmem:[%s8595_s4 + $0xe70] sm:$0xff]  ;;  %v1544_v53 = vld [vmem:[%s8595_s4 + $0xf78] sm:$0xff] }
 0x143   :  { %5176 = vmatpush3.bf16.msra.mxu0 %v5175_v21  ;;  %v200_v21 = vrot.slane %v7459_v3, %v5843_v42  ;;  %v640_v63 = vmul.f32 %v508_v23, %v7502_v7 }
 0x144   :  { %5208 = vmatpush3.bf16.msra.mxu1 %v5207_v22  ;;  %5178 = vmatprep.subr.bf16.mxu0 %v5177_v26  ;;  %v1557_v22 = vld [vmem:[%s8595_s4 + $0xfe0] sm:$0xff]  ;;  %v1558_v26 = vld [vmem:[%s8595_s4 + $0xfe8] sm:$0xff]  ;;  %v635_v35 = vmul.f32 %v488_v16, %v6567_v49  ;;  %v638_v49 = vmul.f32 %v500_v5, %v7502_v7 }
 0x145   :  { %5210 = vmatprep.subr.bf16.mxu1 %v5209_v24  ;;  %v5191_v24 = vpack.c.bf16 %v1508_v15, %v1507_v14  ;;  %v5225_v38 = vpack.c.bf16 %v1558_v26, %v1557_v22  ;;  %v338_v50 = vmul.f32 %v7302_v20, %v200_v21  ;;  %v1577_v16 = vld [vmem:[%s8595_s4 + $0x1080] sm:$0xff]  ;;  %v1610_v21 = vld [vmem:[%s8595_s4 + $0x1188] sm:$0xff]  ;;  %v856_v22 = vrot.slane %v7548_v61, %v5846_v43 }
 0x147   :  { %5180 = vmatpush3.bf16.msra.mxu0 %v5179_v31  ;;  %v5193_v31 = vpack.c.bf16 %v1526_v62, %v1525_v18  ;;  %v686_v17 = vadd.f32 %v638_v49, %v338_v50  ;;  %v848_v18 = vrot.slane %v7548_v61, %v5843_v42  ;;  %v1609_v62 = vld [vmem:[%s8595_s4 + $0x1180] sm:$0xff]  ;;  %v1563_v49 = vld [vmem:[%s8595_s4 + $0x1010] sm:$0xff] }
 0x148   :  { %5212 = vmatpush3.bf16.msra.mxu1 %v5211_v32  ;;  %5182 = vmatprep.subr.bf16.mxu0 %v5181_v33  ;;  %v1509_v32 = vld [vmem:[%s8595_s4 + $0xe60] sm:$0xff]  ;;  %v1510_v33 = vld [vmem:[%s8595_s4 + $0xe68] sm:$0xff] }
 0x149   :  { %5214 = vmatprep.subr.bf16.mxu1 %v5213_v37  ;;  %v5195_v2 = vpack.c.bf16 %v1510_v33, %v1509_v32  ;;  %v1594_v32 = vld [vmem:[%s8595_s4 + $0x1108] sm:$0xff]  ;;  %v1579_v33 = vld [vmem:[%s8595_s4 + $0x1090] sm:$0xff] }
 0x14a   :  { %v5237_v50 = vpack.c.bf16 %v1580_v34, %v1579_v33  ;;  %v1570_v33 = vld [vmem:[%s8595_s4 + $0x1048] sm:$0xff]  ;;  %v1601_v34 = vld [vmem:[%s8595_s4 + $0x1140] sm:$0xff] }
 0x14b   :  { %5184 = vmatpush3.bf16.msra.mxu0 %v5183_v55 }
 0x14c   :  { %5216 = vmatpush3.bf16.msra.mxu1 %v5215_v58  ;;  %5186 = vmatprep.subr.bf16.mxu0 %v5185_v41  ;;  %v1559_v58 = vld [vmem:[%s8595_s4 + $0xff0] sm:$0xff]  ;;  %v1560_v41 = vld [vmem:[%s8595_s4 + $0xff8] sm:$0xff] }
 0x14d   :  { %5218 = vmatprep.subr.bf16.mxu1 %v5217_v51  ;;  %v340_v51 = vmul.f32 %v7302_v20, %v208_v8  ;;  %v5229_v15 = vpack.c.bf16 %v1560_v41, %v1559_v58  ;;  %v5199_v8 = vpack.c.bf16 %v1512_v52, %v1511_v54  ;;  %v1565_v54 = vld [vmem:[%s8595_s4 + $0x1020] sm:$0xff]  ;;  %v1566_v52 = vld [vmem:[%s8595_s4 + $0x1028] sm:$0xff] }
 0x14f   :  { %5188 = vmatpush3.bf16.msra.mxu0 %v5187_v10  ;;  %v681_v10 = vadd.f32 %v633_v27, %v333_v25  ;;  %v688_v5 = vadd.f32 %v640_v63, %v340_v51  ;;  %v1561_v27 = vld [vmem:[%s8595_s4 + $0x1000] sm:$0xff]  ;;  %v1582_v51 = vld [vmem:[%s8595_s4 + $0x10a8] sm:$0xff] }
 0x150   :  { %5220 = vmatpush3.bf16.msra.mxu1 %v5219_v12  ;;  %5190 = vmatprep.subr.bf16.mxu0 %v5189_v13  ;;  %v1543_v12 = vld [vmem:[%s8595_s4 + $0xf70] sm:$0xff]  ;;  %v683_v13 = vadd.f32 %v635_v35, %v335_v0  ;;  %v1562_v0 = vld [vmem:[%s8595_s4 + $0x1008] sm:$0xff]  ;;  %v986_v35 = vadd.f32 %v848_v18, %v686_v17  ;;  %v5243_v17 = vpack.c.bf16 %v1566_v52, %v1565_v54  ;;  %v1621_v52 = vld [vmem:[%s8595_s4 + $0x11e0] sm:$0xff] }
 0x151   :  { %v3838_v36 = vpop.f32.mrb[0].mxu0  ;;  %v3873_v37 = vpop.f32.mrb[0].mxu1  ;;  %5222 = vmatprep.subr.bf16.mxu1 %v5221_v4  ;;  %v1578_v4 = vld [vmem:[%s8595_s4 + $0x1088] sm:$0xff]  ;;  %v5231_v23 = vpack.c.bf16 %v1544_v53, %v1543_v12  ;;  %v5235_v39 = vpack.c.bf16 %v1562_v0, %v1561_v27  ;;  %v1597_v12 = vld [vmem:[%s8595_s4 + $0x1120] sm:$0xff]  ;;  %v1584_v53 = vld [vmem:[%s8595_s4 + $0x10b8] sm:$0xff]  ;;  %v524_v54 = vrot.slane %v7464_v9, %v5863_v48 }
 0x152   :  { %v3839_v55 = vpop.f32.mrb[1].mxu0  ;;  %v3874_v57 = vpop.f32.mrb[1].mxu1  ;;  %v5233_v25 = vpack.c.bf16 %v1578_v4, %v1577_v16  ;;  %v1034_v63 = vmax.f32 %v986_v35, 0.0  ;;  %v1615_v16 = vld [vmem:[%s8595_s4 + $0x11b0] sm:$0xff]  ;;  %v1616_v4 = vld [vmem:[%s8595_s4 + $0x11b8] sm:$0xff]  ;;  %v1617_v27 = vld [vmem:[%s8595_s4 + $0x11c0] sm:$0xff] }
 0x153   :  { %v3840_v1 = vadd.f32 %v3839_v55, %v3838_v36  ;;  %v3875_v19 = vadd.f32 %v3874_v57, %v3873_v37  ;;  %5192 = vmatpush3.bf16.msra.mxu0 %v5191_v24  ;;  %v981_v24 = vadd.f32 %v828_v59, %v681_v10  ;;  %v1611_v36 = vld [vmem:[%s8595_s4 + $0x1190] sm:$0xff]  ;;  %v1612_v37 = vld [vmem:[%s8595_s4 + $0x1198] sm:$0xff]  ;;  %v1618_v0 = vld [vmem:[%s8595_s4 + $0x11c8] sm:$0xff] }
 0x154   :  { %5224 = vmatpush3.bf16.msra.mxu1 %v5223_v30  ;;  %5194 = vmatprep.subr.bf16.mxu0 %v5193_v31  ;;  %v983_v30 = vadd.f32 %v836_v60, %v683_v13  ;;  %v5265_v31 = vpack.c.bf16 %v1610_v21, %v1609_v62  ;;  %v1564_v55 = vld [vmem:[%s8595_s4 + $0x1018] sm:$0xff]  ;;  %v1595_v57 = vld [vmem:[%s8595_s4 + $0x1110] sm:$0xff]  ;;  %v5269_v41 = vpack.c.bf16 %v1612_v37, %v1611_v36  ;;  %v1581_v60 = vld [vmem:[%s8595_s4 + $0x10a0] sm:$0xff] }
 0x155   :  { %v1891_v14 = vadd.f32 %v3840_v1, %v3796_v28  ;;  %5226 = vmatprep.subr.bf16.mxu1 %v5225_v38  ;;  %v1593_v28 = vld [vmem:[%s8595_s4 + $0x1100] sm:$0xff]  ;;  %v988_v38 = vadd.f32 %v856_v22, %v688_v5  ;;  %v1029_v56 = vmax.f32 %v981_v24, 0.0  ;;  %v1596_v59 = vld [vmem:[%s8595_s4 + $0x1118] sm:$0xff]  ;;  %v5239_v10 = vpack.c.bf16 %v1564_v55, %v1563_v49  ;;  %v1567_v21 = vld [vmem:[%s8595_s4 + $0x1030] sm:$0xff] }
 0x156   :  { %v5267_v6 = vpack.c.bf16 %v1594_v32, %v1593_v28  ;;  %v1031_v58 = vmax.f32 %v983_v30, 0.0  ;;  %v1613_v1 = vld [vmem:[%s8595_s4 + $0x11a0] sm:$0xff]  ;;  %v1568_v5 = vld [vmem:[%s8595_s4 + $0x1038] sm:$0xff]  ;;  %v1599_v22 = vld [vmem:[%s8595_s4 + $0x1130] sm:$0xff]  ;;  %v5281_v36 = vpack.c.bf16 %v1618_v0, %v1617_v27 }
 0x157   :  { %v7580_v26 = vadd.f32 %v3875_v19, %v1891_v14  ;;  %5196 = vmatpush3.bf16.msra.mxu0 %v5195_v2  ;;  %v1614_v19 = vld [vmem:[%s8595_s4 + $0x11a8] sm:$0xff]  ;;  %v1036_v2 = vmax.f32 %v988_v38, 0.0  ;;  %v1585_v24 = vld [vmem:[%s8595_s4 + $0x10c0] sm:$0xff]  ;;  %v5247_v28 = vpack.c.bf16 %v1568_v5, %v1567_v21  ;;  %v1587_v37 = vld [vmem:[%s8595_s4 + $0x10d0] sm:$0xff] }
 0x158   :  { %5228 = vmatpush3.bf16.msra.mxu1 %v5227_v46  ;;  %5198 = vmatprep.subr.bf16.mxu0 %v5197_v11  ;;  %v5271_v46 = vpack.c.bf16 %v1596_v59, %v1595_v57  ;;  %v5241_v11 = vpack.c.bf16 %v1582_v51, %v1581_v60  ;;  %v5273_v13 = vpack.c.bf16 %v1614_v19, %v1613_v1  ;;  %v1598_v14 = vld [vmem:[%s8595_s4 + $0x1128] sm:$0xff]  ;;  %v1569_v30 = vld [vmem:[%s8595_s4 + $0x1040] sm:$0xff]  ;;  %v1588_v38 = vld [vmem:[%s8595_s4 + $0x10d8] sm:$0xff] }
 0x159   :  { %5230 = vmatprep.subr.bf16.mxu1 %v5229_v15  ;;  %v1583_v15 = vld [vmem:[%s8595_s4 + $0x10b0] sm:$0xff]  ;;  %v5275_v18 = vpack.c.bf16 %v1598_v14, %v1597_v12  ;;  %v1602_v35 = vld [vmem:[%s8595_s4 + $0x1148] sm:$0xff]  ;;  %v5251_v49 = vpack.c.bf16 %v1570_v33, %v1569_v30  ;;  %v5253_v59 = vpack.c.bf16 %v1588_v38, %v1587_v37  ;;  %v1572_v60 = vld [vmem:[%s8595_s4 + $0x1058] sm:$0xff]  ;;  %v216_v1 = vrot.slane %v7459_v3, %v5860_v47 }
 0x15a   :  { %v5245_v62 = vpack.c.bf16 %v1584_v53, %v1583_v15  ;;  %v5283_v55 = vpack.c.bf16 %v1602_v35, %v1601_v34  ;;  %v1571_v57 = vld [vmem:[%s8595_s4 + $0x1050] sm:$0xff]  ;;  %v516_v19 = vrot.slane %v7464_v9, %v5860_v47  ;;  %v1622_v12 = vld [vmem:[%s8595_s4 + $0x11e8] sm:$0xff]  ;;  %v1592_v0 = vld [vmem:[%s8595_s4 + $0x10f8] sm:$0xff]  ;;  %v644_v30 = vmul.f32 %v524_v54, %v7502_v7 }
 0x15b   :  { %5200 = vmatpush3.bf16.msra.mxu0 %v5199_v8  ;;  %v5277_v8 = vpack.c.bf16 %v1616_v4, %v1615_v16  ;;  %v1603_v51 = vld [vmem:[%s8595_s4 + $0x1150] sm:$0xff]  ;;  %v5255_v53 = vpack.c.bf16 %v1572_v60, %v1571_v57  ;;  %v1574_v4 = vld [vmem:[%s8595_s4 + $0x1068] sm:$0xff]  ;;  %v844_v38 = vrot.slane %v7548_v61, %v5849_v44  ;;  %v1576_v57 = vld [vmem:[%s8595_s4 + $0x1078] sm:$0xff] }
 0x15c   :  { %5232 = vmatpush3.bf16.msra.mxu1 %v5231_v23  ;;  %5234 = vmatprep.subr.bf16.mxu0 %v5233_v25  ;;  %v1600_v23 = vld [vmem:[%s8595_s4 + $0x1138] sm:$0xff]  ;;  %v1586_v25 = vld [vmem:[%s8595_s4 + $0x10c8] sm:$0xff]  ;;  %v1591_v27 = vld [vmem:[%s8595_s4 + $0x10f0] sm:$0xff] }
 0x15d   :  { %5266 = vmatprep.subr.bf16.mxu1 %v5265_v31  ;;  %v5279_v31 = vpack.c.bf16 %v1600_v23, %v1599_v22  ;;  %v5249_v32 = vpack.c.bf16 %v1586_v25, %v1585_v24  ;;  %v342_v22 = vmul.f32 %v7302_v20, %v216_v1  ;;  %v5289_v25 = vpack.c.bf16 %v1622_v12, %v1621_v52  ;;  %v1623_v35 = vld [vmem:[%s8595_s4 + $0x11f0] sm:$0xff]  ;;  %v1641_v1 = vld [vmem:[%s8595_s4 + $0x1280] sm:$0xff] }
 0x15e   :  { %2869 = vmatmul.mubr.f32.vlgmr.msra.gmra.mrb[14].mxu0 %v1029_v56  ;;  %v1620_v56 = vld [vmem:[%s8595_s4 + $0x11d8] sm:$0xff] }
 0x15f   :  { %2939 = vmatmul.mubr.f32.vlgmr.msra.gmra.mrb[14].mxu1 %v1031_v58  ;;  %5236 = vmatpush3.bf16.msra.mxu0 %v5235_v39  ;;  %v1619_v39 = vld [vmem:[%s8595_s4 + $0x11d0] sm:$0xff]  ;;  %v204_v58 = vrot.slane %v7459_v3, %v5852_v45 }
 0x160   :  { %5268 = vmatpush3.bf16.msra.mxu1 %v5267_v6  ;;  %5238 = vmatprep.subr.bf16.mxu0 %v5237_v50  ;;  %v196_v6 = vrot.slane %v7459_v3, %v5849_v44  ;;  %v496_v50 = vrot.slane %v7464_v9, %v5849_v44 }
 0x161   :  { %5270 = vmatprep.subr.bf16.mxu1 %v5269_v41  ;;  %3008 = vmatprep.mubr.f32.mxu0 %v1034_v63  ;;  %v504_v41 = vrot.slane %v7464_v9, %v5852_v45  ;;  %v1604_v63 = vld [vmem:[%s8595_s4 + $0x1158] sm:$0xff] }
 0x162   :  { %3078 = vmatprep.mubr.f32.mxu1 %v1036_v2  ;;  %v5285_v2 = vpack.c.bf16 %v1620_v56, %v1619_v39  ;;  %v337_v14 = vmul.f32 %v7302_v20, %v196_v6  ;;  %v637_v15 = vmul.f32 %v496_v50, %v7502_v7  ;;  %v5287_v16 = vpack.c.bf16 %v1604_v63, %v1603_v51  ;;  %v1608_v63 = vld [vmem:[%s8595_s4 + $0x1178] sm:$0xff] }
 0x163   :  { %5240 = vmatpush3.bf16.msra.mxu0 %v5239_v10  ;;  %v1589_v10 = vld [vmem:[%s8595_s4 + $0x10e0] sm:$0xff]  ;;  %v639_v21 = vmul.f32 %v504_v41, %v7502_v7  ;;  %v852_v50 = vrot.slane %v7548_v61, %v5852_v45 }
 0x164   :  { %5272 = vmatpush3.bf16.msra.mxu1 %v5271_v46  ;;  %5242 = vmatprep.subr.bf16.mxu0 %v5241_v11  ;;  %v1590_v46 = vld [vmem:[%s8595_s4 + $0x10e8] sm:$0xff]  ;;  %v224_v11 = vrot.slane %v7459_v3, %v5863_v48  ;;  %v685_v37 = vadd.f32 %v637_v15, %v337_v14  ;;  %v1625_v15 = vld [vmem:[%s8595_s4 + $0x1200] sm:$0xff] }
 0x165   :  { %5274 = vmatprep.subr.bf16.mxu1 %v5273_v13  ;;  %v1573_v13 = vld [vmem:[%s8595_s4 + $0x1060] sm:$0xff]  ;;  %v5257_v5 = vpack.c.bf16 %v1590_v46, %v1589_v10  ;;  %v872_v10 = vrot.slane %v7548_v61, %v5863_v48 }
 0x166   :  { %v5259_v33 = vpack.c.bf16 %v1574_v4, %v1573_v13  ;;  %v985_v46 = vadd.f32 %v844_v38, %v685_v37  ;;  %v1677_v38 = vld [vmem:[%s8595_s4 + $0x13a0] sm:$0xff] }
 0x167   :  { %5244 = vmatpush3.bf16.msra.mxu0 %v5243_v17  ;;  %v1605_v17 = vld [vmem:[%s8595_s4 + $0x1160] sm:$0xff] }
 0x168   :  { %5276 = vmatpush3.bf16.msra.mxu1 %v5275_v18  ;;  %5246 = vmatprep.subr.bf16.mxu0 %v5245_v62  ;;  %v1606_v18 = vld [vmem:[%s8595_s4 + $0x1168] sm:$0xff]  ;;  %v339_v62 = vmul.f32 %v7302_v20, %v204_v58  ;;  %v1607_v58 = vld [vmem:[%s8595_s4 + $0x1170] sm:$0xff] }
 0x169   :  { %5278 = vmatprep.subr.bf16.mxu1 %v5277_v8  ;;  %v642_v8 = vmul.f32 %v516_v19, %v7502_v7  ;;  %v5291_v34 = vpack.c.bf16 %v1606_v18, %v1605_v17  ;;  %v1642_v19 = vld [vmem:[%s8595_s4 + $0x1288] sm:$0xff]  ;;  %v5295_v13 = vpack.c.bf16 %v1608_v63, %v1607_v58  ;;  %v1657_v17 = vld [vmem:[%s8595_s4 + $0x1300] sm:$0xff]  ;;  %v1680_v63 = vld [vmem:[%s8595_s4 + $0x13b8] sm:$0xff] }
 0x16a   :  { %v687_v6 = vadd.f32 %v639_v21, %v339_v62  ;;  %v5297_v14 = vpack.c.bf16 %v1642_v19, %v1641_v1  ;;  %v1658_v18 = vld [vmem:[%s8595_s4 + $0x1308] sm:$0xff]  ;;  %v1033_v21 = vmax.f32 %v985_v46, 0.0  ;;  %v1632_v46 = vld [vmem:[%s8595_s4 + $0x1238] sm:$0xff] }
 0x16b   :  { %5248 = vmatpush3.bf16.msra.mxu0 %v5247_v28  ;;  %v344_v28 = vmul.f32 %v7302_v20, %v224_v11  ;;  %v690_v41 = vadd.f32 %v642_v8, %v342_v22  ;;  %v1674_v11 = vld [vmem:[%s8595_s4 + $0x1388] sm:$0xff]  ;;  %v1644_v22 = vld [vmem:[%s8595_s4 + $0x1298] sm:$0xff] }
 0x16c   :  { %5280 = vmatpush3.bf16.msra.mxu1 %v5279_v31  ;;  %5250 = vmatprep.subr.bf16.mxu0 %v5249_v32  ;;  %v987_v12 = vadd.f32 %v852_v50, %v687_v6 }
 0x16d   :  { %5282 = vmatprep.subr.bf16.mxu1 %v5281_v36  ;;  %v1624_v36 = vld [vmem:[%s8595_s4 + $0x11f8] sm:$0xff] }
 0x16e   :  { %v5293_v51 = vpack.c.bf16 %v1624_v36, %v1623_v35  ;;  %v1035_v8 = vmax.f32 %v987_v12, 0.0  ;;  %v1645_v35 = vld [vmem:[%s8595_s4 + $0x12a0] sm:$0xff]  ;;  %v1646_v36 = vld [vmem:[%s8595_s4 + $0x12a8] sm:$0xff] }
 0x16f   :  { %5252 = vmatpush3.bf16.msra.mxu0 %v5251_v49  ;;  %v5261_v49 = vpack.c.bf16 %v1592_v0, %v1591_v27  ;;  %v5331_v0 = vpack.c.bf16 %v1658_v18, %v1657_v17  ;;  %v5305_v50 = vpack.c.bf16 %v1646_v36, %v1645_v35  ;;  %v1649_v12 = vld [vmem:[%s8595_s4 + $0x12c0] sm:$0xff]  ;;  %v1634_v18 = vld [vmem:[%s8595_s4 + $0x1248] sm:$0xff]  ;;  %v1667_v35 = vld [vmem:[%s8595_s4 + $0x1350] sm:$0xff] }
 0x170   :  { %5284 = vmatpush3.bf16.msra.mxu1 %v5283_v55  ;;  %5254 = vmatprep.subr.bf16.mxu0 %v5253_v59  ;;  %v1575_v55 = vld [vmem:[%s8595_s4 + $0x1070] sm:$0xff]  ;;  %v864_v59 = vrot.slane %v7548_v61, %v5860_v47  ;;  %v1633_v17 = vld [vmem:[%s8595_s4 + $0x1240] sm:$0xff] }
 0x171   :  { %v3908_v23 = vpop.f32.mrb[2].mxu0  ;;  %v3943_v24 = vpop.f32.mrb[2].mxu1  ;;  %5286 = vmatprep.subr.bf16.mxu1 %v5285_v2  ;;  %v692_v2 = vadd.f32 %v644_v30, %v344_v28  ;;  %v5263_v52 = vpack.c.bf16 %v1576_v57, %v1575_v55  ;;  %v1627_v28 = vld [vmem:[%s8595_s4 + $0x1210] sm:$0xff]  ;;  %v1628_v30 = vld [vmem:[%s8595_s4 + $0x1218] sm:$0xff]  ;;  %v1630_v55 = vld [vmem:[%s8595_s4 + $0x1228] sm:$0xff] }
 0x172   :  { %v3909_v31 = vpop.f32.mrb[3].mxu0  ;;  %v3944_v32 = vpop.f32.mrb[3].mxu1  ;;  %v1661_v57 = vld [vmem:[%s8595_s4 + $0x1320] sm:$0xff] }
 0x173   :  { %v3910_v39 = vadd.f32 %v3909_v31, %v3908_v23  ;;  %v3945_v56 = vadd.f32 %v3944_v32, %v3943_v24  ;;  %5256 = vmatpush3.bf16.msra.mxu0 %v5255_v53  ;;  %v1626_v53 = vld [vmem:[%s8595_s4 + $0x1208] sm:$0xff]  ;;  %v992_v62 = vadd.f32 %v872_v10, %v692_v2  ;;  %v1675_v24 = vld [vmem:[%s8595_s4 + $0x1390] sm:$0xff] }
 0x174   :  { %5288 = vmatpush3.bf16.msra.mxu1 %v5287_v16  ;;  %5258 = vmatprep.subr.bf16.mxu0 %v5257_v5  ;;  %v990_v16 = vadd.f32 %v864_v59, %v690_v41  ;;  %v1643_v5 = vld [vmem:[%s8595_s4 + $0x1290] sm:$0xff]  ;;  %v5299_v23 = vpack.c.bf16 %v1626_v53, %v1625_v15  ;;  %v1662_v41 = vld [vmem:[%s8595_s4 + $0x1328] sm:$0xff] }
 0x175   :  { %v2031_v60 = vadd.f32 %v3910_v39, %v7580_v26  ;;  %5290 = vmatprep.subr.bf16.mxu1 %v5289_v25  ;;  %v1673_v26 = vld [vmem:[%s8595_s4 + $0x1380] sm:$0xff]  ;;  %v1676_v25 = vld [vmem:[%s8595_s4 + $0x1398] sm:$0xff]  ;;  %v1659_v31 = vld [vmem:[%s8595_s4 + $0x1310] sm:$0xff]  ;;  %v1040_v32 = vmax.f32 %v992_v62, 0.0  ;;  %v5339_v19 = vpack.c.bf16 %v1662_v41, %v1661_v57 }
 0x176   :  { %v5329_v4 = vpack.c.bf16 %v1674_v11, %v1673_v26  ;;  %v1038_v27 = vmax.f32 %v990_v16, 0.0  ;;  %v5333_v37 = vpack.c.bf16 %v1676_v25, %v1675_v24  ;;  %v1678_v39 = vld [vmem:[%s8595_s4 + $0x13a8] sm:$0xff]  ;;  %v1647_v59 = vld [vmem:[%s8595_s4 + $0x12b0] sm:$0xff]  ;;  %v1665_v62 = vld [vmem:[%s8595_s4 + $0x1340] sm:$0xff]  ;;  %v212_v25 = vrot.slane %v7459_v3, %v6049_v40 }
 0x177   :  { %v7807_v54 = vadd.f32 %v3945_v56, %v2031_v60  ;;  %5260 = vmatpush3.bf16.msra.mxu0 %v5259_v33  ;;  %v5301_v33 = vpack.c.bf16 %v1644_v22, %v1643_v5  ;;  %v5303_v56 = vpack.c.bf16 %v1628_v30, %v1627_v28  ;;  %v5337_v58 = vpack.c.bf16 %v1678_v39, %v1677_v38  ;;  %v1648_v60 = vld [vmem:[%s8595_s4 + $0x12b8] sm:$0xff]  ;;  %v1631_v10 = vld [vmem:[%s8595_s4 + $0x1230] sm:$0xff]  ;;  %v1682_v15 = vld [vmem:[%s8595_s4 + $0x13c8] sm:$0xff] }
 0x178   :  { %5292 = vmatpush3.bf16.msra.mxu1 %v5291_v34  ;;  %5262 = vmatprep.subr.bf16.mxu0 %v5261_v49  ;;  %v1660_v34 = vld [vmem:[%s8595_s4 + $0x1318] sm:$0xff]  ;;  %v1629_v49 = vld [vmem:[%s8595_s4 + $0x1220] sm:$0xff]  ;;  %v5309_v2 = vpack.c.bf16 %v1648_v60, %v1647_v59  ;;  %v1663_v26 = vld [vmem:[%s8595_s4 + $0x1330] sm:$0xff]  ;;  %v5311_v53 = vpack.c.bf16 %v1632_v46, %v1631_v10 }
 0x179   :  { %5294 = vmatprep.subr.bf16.mxu1 %v5293_v51  ;;  %v5335_v6 = vpack.c.bf16 %v1660_v34, %v1659_v31  ;;  %v1679_v51 = vld [vmem:[%s8595_s4 + $0x13b0] sm:$0xff]  ;;  %v5307_v1 = vpack.c.bf16 %v1630_v55, %v1629_v49  ;;  %v1666_v5 = vld [vmem:[%s8595_s4 + $0x1348] sm:$0xff]  ;;  %v1684_v24 = vld [vmem:[%s8595_s4 + $0x13d8] sm:$0xff]  ;;  %v341_v55 = vmul.f32 %v7302_v20, %v212_v25 }
 0x17a   :  { %v5341_v11 = vpack.c.bf16 %v1680_v63, %v1679_v51  ;;  %v1651_v22 = vld [vmem:[%s8595_s4 + $0x12d0] sm:$0xff]  ;;  %v7936_v28 = vld [vmem:[%s8592_s1 + $0x28] sm:$0xff]  ;;  %v5347_v31 = vpack.c.bf16 %v1666_v5, %v1665_v62  ;;  %v1636_v34 = vld [vmem:[%s8595_s4 + $0x1258] sm:$0xff] }
 0x17b   :  { %5264 = vmatpush3.bf16.msra.mxu0 %v5263_v52  ;;  %v1664_v52 = vld [vmem:[%s8595_s4 + $0x1338] sm:$0xff]  ;;  %v7941_v30 = vld [vmem:[%s8593_s2 + $0x28] sm:$0xff]  ;;  %v1653_v38 = vld [vmem:[%s8595_s4 + $0x12e0] sm:$0xff]  ;;  %v240_v41 = vrot.slane %v7936_v28, %v5846_v43 }
 0x17c   :  { %5296 = vmatpush3.bf16.msra.mxu1 %v5295_v13  ;;  %5298 = vmatprep.subr.bf16.mxu0 %v5297_v14  ;;  %v1650_v13 = vld [vmem:[%s8595_s4 + $0x12c8] sm:$0xff]  ;;  %v1681_v14 = vld [vmem:[%s8595_s4 + $0x13c0] sm:$0xff]  ;;  %v5343_v16 = vpack.c.bf16 %v1664_v52, %v1663_v26  ;;  %v540_v59 = vrot.slane %v7941_v30, %v5846_v43  ;;  %v1655_v26 = vld [vmem:[%s8595_s4 + $0x12f0] sm:$0xff] }
 0x17d   :  { %5330 = vmatprep.subr.bf16.mxu1 %v5329_v4  ;;  %v5313_v4 = vpack.c.bf16 %v1650_v13, %v1649_v12  ;;  %v1654_v39 = vld [vmem:[%s8595_s4 + $0x12e8] sm:$0xff]  ;;  %v1637_v63 = vld [vmem:[%s8595_s4 + $0x1260] sm:$0xff] }
 0x17e   :  { %3009 = vmatmul.mubr.f32.vlgmr.msra.gmra.mrb[16].mxu0 %v1033_v21  ;;  %v5345_v21 = vpack.c.bf16 %v1682_v15, %v1681_v14  ;;  %v1686_v49 = vld [vmem:[%s8595_s4 + $0x13e8] sm:$0xff]  ;;  %v5321_v51 = vpack.c.bf16 %v1654_v39, %v1653_v38  ;;  %v1687_v15 = vld [vmem:[%s8595_s4 + $0x13f0] sm:$0xff]  ;;  %v1705_v38 = vld [vmem:[%s8595_s4 + $0x1480] sm:$0xff] }
 0x17f   :  { %3079 = vmatmul.mubr.f32.vlgmr.msra.gmra.mrb[16].mxu1 %v1035_v8  ;;  %5300 = vmatpush3.bf16.msra.mxu0 %v5299_v23  ;;  %v1652_v8 = vld [vmem:[%s8595_s4 + $0x12d8] sm:$0xff]  ;;  %v1683_v23 = vld [vmem:[%s8595_s4 + $0x13d0] sm:$0xff]  ;;  %v1670_v46 = vld [vmem:[%s8595_s4 + $0x1368] sm:$0xff] }
 0x180   :  { %3148 = vmatprep.mubr.f32.mxu0 %v1038_v27  ;;  %5332 = vmatpush3.bf16.msra.mxu1 %v5331_v0  ;;  %v512_v27 = vrot.slane %v7464_v9, %v6049_v40  ;;  %v5315_v0 = vpack.c.bf16 %v1634_v18, %v1633_v17  ;;  %v5349_v36 = vpack.c.bf16 %v1684_v24, %v1683_v23  ;;  %v1706_v39 = vld [vmem:[%s8595_s4 + $0x1488] sm:$0xff] }
 0x181   :  { %3218 = vmatprep.mubr.f32.mxu1 %v1040_v32  ;;  %5302 = vmatprep.subr.bf16.mxu0 %v5301_v33  ;;  %v5317_v32 = vpack.c.bf16 %v1652_v8, %v1651_v22  ;;  %v1635_v33 = vld [vmem:[%s8595_s4 + $0x1250] sm:$0xff]  ;;  %v8019_v22 = vld [vmem:[%s8594_s3 + $0x28] sm:$0xff]  ;;  %v648_v23 = vmul.f32 %v540_v59, %v7502_v7 }
 0x182   :  { %5334 = vmatprep.subr.bf16.mxu1 %v5333_v37  ;;  %v1668_v37 = vld [vmem:[%s8595_s4 + $0x1358] sm:$0xff]  ;;  %v641_v57 = vmul.f32 %v512_v27, %v7502_v7 }
 0x183   :  { %5304 = vmatpush3.bf16.msra.mxu0 %v5303_v56  ;;  %v220_v56 = vrot.slane %v7459_v3, %v5938_v29  ;;  %v532_v3 = vrot.slane %v7941_v30, %v5843_v42  ;;  %v5351_v60 = vpack.c.bf16 %v1668_v37, %v1667_v35  ;;  %v1672_v35 = vld [vmem:[%s8595_s4 + $0x1378] sm:$0xff]  ;;  %v868_v37 = vrot.slane %v7548_v61, %v5938_v29 }
 0x184   :  { %5336 = vmatpush3.bf16.msra.mxu1 %v5335_v6  ;;  %5306 = vmatprep.subr.bf16.mxu0 %v5305_v50  ;;  %v520_v6 = vrot.slane %v7464_v9, %v5938_v29  ;;  %v1685_v50 = vld [vmem:[%s8595_s4 + $0x13e0] sm:$0xff]  ;;  %v5319_v9 = vpack.c.bf16 %v1636_v34, %v1635_v33 }
 0x185   :  { %5338 = vmatprep.subr.bf16.mxu1 %v5337_v58  ;;  %v232_v58 = vrot.slane %v7936_v28, %v5843_v42  ;;  %v5353_v10 = vpack.c.bf16 %v1686_v49, %v1685_v50  ;;  %v343_v52 = vmul.f32 %v7302_v20, %v220_v56  ;;  %v8012_v20 = vld [vmem:[%s8591_s0] sm:$0xff]  ;;  %v646_v18 = vmul.f32 %v532_v3, %v7502_v7  ;;  %v1738_v56 = vld [vmem:[%s8595_s4 + $0x1588] sm:$0xff] }
 0x186   :  { %v643_v12 = vmul.f32 %v520_v6, %v7502_v7  ;;  %v348_v8 = vmul.f32 %v8012_v20, %v240_v41  ;;  %v1689_v41 = vld [vmem:[%s8595_s4 + $0x1400] sm:$0xff] }
 0x187   :  { %5308 = vmatpush3.bf16.msra.mxu0 %v5307_v1  ;;  %v1638_v1 = vld [vmem:[%s8595_s4 + $0x1268] sm:$0xff]  ;;  %v346_v17 = vmul.f32 %v8012_v20, %v232_v58 }
 0x188   :  { %5340 = vmatpush3.bf16.msra.mxu1 %v5339_v19  ;;  %5310 = vmatprep.subr.bf16.mxu0 %v5309_v2  ;;  %v1669_v19 = vld [vmem:[%s8595_s4 + $0x1360] sm:$0xff]  ;;  %v5323_v5 = vpack.c.bf16 %v1638_v1, %v1637_v63  ;;  %v1707_v1 = vld [vmem:[%s8595_s4 + $0x1490] sm:$0xff] }
 0x189   :  { %5342 = vmatprep.subr.bf16.mxu1 %v5341_v11  ;;  %v1656_v11 = vld [vmem:[%s8595_s4 + $0x12f8] sm:$0xff]  ;;  %v5355_v25 = vpack.c.bf16 %v1670_v46, %v1669_v19  ;;  %v694_v6 = vadd.f32 %v646_v18, %v346_v17  ;;  %v1739_v46 = vld [vmem:[%s8595_s4 + $0x1590] sm:$0xff]  ;;  %v1710_v17 = vld [vmem:[%s8595_s4 + $0x14a8] sm:$0xff] }
 0x18a   :  { %v5325_v27 = vpack.c.bf16 %v1656_v11, %v1655_v26  ;;  %v1708_v19 = vld [vmem:[%s8595_s4 + $0x1498] sm:$0xff] }
 0x18b   :  { %5312 = vmatpush3.bf16.msra.mxu0 %v5311_v53  ;;  %v1688_v53 = vld [vmem:[%s8595_s4 + $0x13f8] sm:$0xff] }
 0x18c   :  { %5344 = vmatpush3.bf16.msra.mxu1 %v5343_v16  ;;  %5314 = vmatprep.subr.bf16.mxu0 %v5313_v4  ;;  %v689_v16 = vadd.f32 %v641_v57, %v341_v55  ;;  %v860_v4 = vrot.slane %v7548_v61, %v6049_v40  ;;  %v5357_v34 = vpack.c.bf16 %v1688_v53, %v1687_v15  ;;  %v1740_v26 = vld [vmem:[%s8595_s4 + $0x1598] sm:$0xff] }
 0x18d   :  { %5346 = vmatprep.subr.bf16.mxu1 %v5345_v21  ;;  %v880_v61 = vrot.slane %v8019_v22, %v5843_v42  ;;  %v696_v55 = vadd.f32 %v648_v23, %v348_v8  ;;  %v888_v57 = vrot.slane %v8019_v22, %v5846_v43  ;;  %v1690_v42 = vld [vmem:[%s8595_s4 + $0x1408] sm:$0xff]  ;;  %v1721_v43 = vld [vmem:[%s8595_s4 + $0x1500] sm:$0xff]  ;;  %v5365_v53 = vpack.c.bf16 %v1708_v19, %v1707_v1  ;;  %v1715_v19 = vld [vmem:[%s8595_s4 + $0x14d0] sm:$0xff] }
 0x18e   :  { %v989_v3 = vadd.f32 %v860_v4, %v689_v16  ;;  %v1724_v16 = vld [vmem:[%s8595_s4 + $0x1518] sm:$0xff]  ;;  %v1709_v4 = vld [vmem:[%s8595_s4 + $0x14a0] sm:$0xff]  ;;  %v1730_v1 = vld [vmem:[%s8595_s4 + $0x1548] sm:$0xff] }
 0x18f   :  { %5316 = vmatpush3.bf16.msra.mxu0 %v5315_v0  ;;  %v1639_v0 = vld [vmem:[%s8595_s4 + $0x1270] sm:$0xff]  ;;  %v994_v63 = vadd.f32 %v880_v61, %v694_v6  ;;  %v1696_v6 = vld [vmem:[%s8595_s4 + $0x1438] sm:$0xff] }
 0x190   :  { %5348 = vmatpush3.bf16.msra.mxu1 %v5347_v31  ;;  %5318 = vmatprep.subr.bf16.mxu0 %v5317_v32  ;;  %v1640_v31 = vld [vmem:[%s8595_s4 + $0x1278] sm:$0xff]  ;;  %v1671_v32 = vld [vmem:[%s8595_s4 + $0x1370] sm:$0xff]  ;;  %v1037_v11 = vmax.f32 %v989_v3, 0.0  ;;  %v1745_v3 = vld [vmem:[%s8595_s4 + $0x15c0] sm:$0xff] }
 0x191   :  { %v3978_v2 = vpop.f32.mrb[4].mxu0  ;;  %5350 = vmatprep.subr.bf16.mxu1 %v5349_v36  ;;  %v691_v36 = vadd.f32 %v643_v12, %v343_v52  ;;  %v5327_v49 = vpack.c.bf16 %v1640_v31, %v1639_v0  ;;  %v5359_v58 = vpack.c.bf16 %v1672_v35, %v1671_v32  ;;  %v1691_v12 = vld [vmem:[%s8595_s4 + $0x1410] sm:$0xff]  ;;  %v1042_v18 = vmax.f32 %v994_v63, 0.0  ;;  %v1694_v0 = vld [vmem:[%s8595_s4 + $0x1428] sm:$0xff]  ;;  %v1725_v31 = vld [vmem:[%s8595_s4 + $0x1520] sm:$0xff] }
 0x192   :  { %v4013_v13 = vpop.f32.mrb[4].mxu1  ;;  %v3979_v14 = vpop.f32.mrb[5].mxu0  ;;  %v1712_v35 = vld [vmem:[%s8595_s4 + $0x14b8] sm:$0xff]  ;;  %v1727_v61 = vld [vmem:[%s8595_s4 + $0x1530] sm:$0xff] }
 0x193   :  { %v3980_v62 = vadd.f32 %v3979_v14, %v3978_v2  ;;  %v4014_v21 = vpop.f32.mrb[5].mxu1  ;;  %5320 = vmatpush3.bf16.msra.mxu0 %v5319_v9  ;;  %v5361_v9 = vpack.c.bf16 %v1706_v39, %v1705_v38  ;;  %v991_v59 = vadd.f32 %v868_v37, %v691_v36  ;;  %v5363_v2 = vpack.c.bf16 %v1690_v42, %v1689_v41  ;;  %v1723_v14 = vld [vmem:[%s8595_s4 + $0x1510] sm:$0xff]  ;;  %v1744_v37 = vld [vmem:[%s8595_s4 + $0x15b8] sm:$0xff] }
 0x194   :  { %v4015_v24 = vadd.f32 %v4014_v21, %v4013_v13  ;;  %5352 = vmatpush3.bf16.msra.mxu1 %v5351_v60  ;;  %5322 = vmatprep.subr.bf16.mxu0 %v5321_v51  ;;  %v1722_v51 = vld [vmem:[%s8595_s4 + $0x1508] sm:$0xff]  ;;  %v1692_v13 = vld [vmem:[%s8595_s4 + $0x1418] sm:$0xff]  ;;  %v1741_v21 = vld [vmem:[%s8595_s4 + $0x15a0] sm:$0xff] }
 0x195   :  { %v2171_v33 = vadd.f32 %v3980_v62, %v7807_v54  ;;  %5354 = vmatprep.subr.bf16.mxu1 %v5353_v10  ;;  %v1737_v54 = vld [vmem:[%s8595_s4 + $0x1580] sm:$0xff]  ;;  %v996_v10 = vadd.f32 %v888_v57, %v696_v55  ;;  %v5395_v52 = vpack.c.bf16 %v1722_v51, %v1721_v43  ;;  %v1039_v15 = vmax.f32 %v991_v59, 0.0  ;;  %v1743_v36 = vld [vmem:[%s8595_s4 + $0x15b0] sm:$0xff]  ;;  %v1728_v55 = vld [vmem:[%s8595_s4 + $0x1538] sm:$0xff] }
 0x196   :  { %v5393_v60 = vpack.c.bf16 %v1738_v56, %v1737_v54  ;;  %v5397_v62 = vpack.c.bf16 %v1740_v26, %v1739_v46  ;;  %v5367_v23 = vpack.c.bf16 %v1692_v13, %v1691_v12  ;;  %v1695_v56 = vld [vmem:[%s8595_s4 + $0x1430] sm:$0xff]  ;;  %v1713_v57 = vld [vmem:[%s8595_s4 + $0x14c0] sm:$0xff]  ;;  %v5407_v42 = vpack.c.bf16 %v1728_v55, %v1727_v61  ;;  %v1698_v43 = vld [vmem:[%s8595_s4 + $0x1448] sm:$0xff] }
 0x197   :  { %v8052_v50 = vadd.f32 %v4015_v24, %v2171_v33  ;;  %5324 = vmatpush3.bf16.msra.mxu0 %v5323_v5  ;;  %v1742_v5 = vld [vmem:[%s8595_s4 + $0x15a8] sm:$0xff]  ;;  %v1044_v8 = vmax.f32 %v996_v10, 0.0  ;;  %v5399_v24 = vpack.c.bf16 %v1724_v16, %v1723_v14  ;;  %v5375_v41 = vpack.c.bf16 %v1696_v6, %v1695_v56  ;;  %v1729_v51 = vld [vmem:[%s8595_s4 + $0x1540] sm:$0xff]  ;;  %v1747_v10 = vld [vmem:[%s8595_s4 + $0x15d0] sm:$0xff] }
 0x198   :  { %5356 = vmatpush3.bf16.msra.mxu1 %v5355_v25  ;;  %5326 = vmatprep.subr.bf16.mxu0 %v5325_v27  ;;  %v5369_v25 = vpack.c.bf16 %v1710_v17, %v1709_v4  ;;  %v1693_v27 = vld [vmem:[%s8595_s4 + $0x1420] sm:$0xff]  ;;  %v5401_v32 = vpack.c.bf16 %v1742_v5, %v1741_v21  ;;  %v1726_v33 = vld [vmem:[%s8595_s4 + $0x1528] sm:$0xff]  ;;  %v1748_v46 = vld [vmem:[%s8595_s4 + $0x15d8] sm:$0xff]  ;;  %v228_v26 = vrot.slane %v7936_v28, %v5849_v44 }
 0x199   :  { %5358 = vmatprep.subr.bf16.mxu1 %v5357_v34  ;;  %v1711_v34 = vld [vmem:[%s8595_s4 + $0x14b0] sm:$0xff]  ;;  %v5371_v38 = vpack.c.bf16 %v1694_v0, %v1693_v27  ;;  %v5403_v39 = vpack.c.bf16 %v1726_v33, %v1725_v31  ;;  %v5411_v12 = vpack.c.bf16 %v1730_v1, %v1729_v51  ;;  %v5413_v16 = vpack.c.bf16 %v1748_v46, %v1747_v10  ;;  %v1732_v4 = vld [vmem:[%s8595_s4 + $0x1558] sm:$0xff]  ;;  %v1717_v17 = vld [vmem:[%s8595_s4 + $0x14e0] sm:$0xff] }
 0x19a   :  { %v5373_v54 = vpack.c.bf16 %v1712_v35, %v1711_v34  ;;  %v1699_v14 = vld [vmem:[%s8595_s4 + $0x1450] sm:$0xff]  ;;  %v536_v21 = vrot.slane %v7941_v30, %v5852_v45  ;;  %v1749_v5 = vld [vmem:[%s8595_s4 + $0x15e0] sm:$0xff]  ;;  %v548_v27 = vrot.slane %v7941_v30, %v5860_v47  ;;  %v256_v31 = vrot.slane %v7936_v28, %v5863_v48  ;;  %v1720_v6 = vld [vmem:[%s8595_s4 + $0x14f8] sm:$0xff] }
 0x19b   :  { %5328 = vmatpush3.bf16.msra.mxu0 %v5327_v49  ;;  %v5405_v49 = vpack.c.bf16 %v1744_v37, %v1743_v36  ;;  %v1701_v35 = vld [vmem:[%s8595_s4 + $0x1460] sm:$0xff]  ;;  %v1702_v36 = vld [vmem:[%s8595_s4 + $0x1468] sm:$0xff]  ;;  %v1719_v56 = vld [vmem:[%s8595_s4 + $0x14f0] sm:$0xff] }
 0x19c   :  { %5360 = vmatpush3.bf16.msra.mxu1 %v5359_v58  ;;  %5362 = vmatprep.subr.bf16.mxu0 %v5361_v9  ;;  %v1714_v58 = vld [vmem:[%s8595_s4 + $0x14c8] sm:$0xff]  ;;  %v1733_v37 = vld [vmem:[%s8595_s4 + $0x1560] sm:$0xff]  ;;  %v5387_v51 = vpack.c.bf16 %v1702_v36, %v1701_v35  ;;  %v5389_v10 = vpack.c.bf16 %v1720_v6, %v1719_v56  ;;  %v1704_v46 = vld [vmem:[%s8595_s4 + $0x1478] sm:$0xff] }
 0x19d   :  { %5394 = vmatprep.subr.bf16.mxu1 %v5393_v60  ;;  %v1746_v9 = vld [vmem:[%s8595_s4 + $0x15c8] sm:$0xff]  ;;  %v5377_v59 = vpack.c.bf16 %v1714_v58, %v1713_v57  ;;  %v1697_v60 = vld [vmem:[%s8595_s4 + $0x1440] sm:$0xff]  ;;  %v1751_v58 = vld [vmem:[%s8595_s4 + $0x15f0] sm:$0xff] }
 0x19e   :  { %3149 = vmatmul.mubr.f32.vlgmr.msra.gmra.mrb[18].mxu0 %v1037_v11  ;;  %v5409_v63 = vpack.c.bf16 %v1746_v9, %v1745_v3  ;;  %v528_v11 = vrot.slane %v7941_v30, %v5849_v44  ;;  %v1752_v3 = vld [vmem:[%s8595_s4 + $0x15f8] sm:$0xff]  ;;  %v1803_v36 = vld [vmem:[%s8595_s4 + $0x1790] sm:$0xff] }
 0x19f   :  { %3219 = vmatmul.mubr.f32.vlgmr.msra.gmra.mrb[18].mxu1 %v1039_v15  ;;  %5364 = vmatpush3.bf16.msra.mxu0 %v5363_v2  ;;  %v1716_v2 = vld [vmem:[%s8595_s4 + $0x14d8] sm:$0xff]  ;;  %v1787_v6 = vld [vmem:[%s8595_s4 + $0x1710] sm:$0xff] }
 0x1a0   :  { %3288 = vmatprep.mubr.f32.mxu0 %v1042_v18  ;;  %5396 = vmatpush3.bf16.msra.mxu1 %v5395_v52  ;;  %v5379_v52 = vpack.c.bf16 %v1698_v43, %v1697_v60  ;;  %v5381_v13 = vpack.c.bf16 %v1716_v2, %v1715_v19  ;;  %v1700_v15 = vld [vmem:[%s8595_s4 + $0x1458] sm:$0xff]  ;;  %v1718_v18 = vld [vmem:[%s8595_s4 + $0x14e8] sm:$0xff] }
 0x1a1   :  { %3358 = vmatprep.mubr.f32.mxu1 %v1044_v8  ;;  %5366 = vmatprep.subr.bf16.mxu0 %v5365_v53  ;;  %v1731_v53 = vld [vmem:[%s8595_s4 + $0x1550] sm:$0xff]  ;;  %v1750_v8 = vld [vmem:[%s8595_s4 + $0x15e8] sm:$0xff]  ;;  %v5383_v0 = vpack.c.bf16 %v1700_v15, %v1699_v14  ;;  %v5385_v34 = vpack.c.bf16 %v1718_v18, %v1717_v17  ;;  %v884_v14 = vrot.slane %v8019_v22, %v5852_v45  ;;  %v1769_v15 = vld [vmem:[%s8595_s4 + $0x1680] sm:$0xff] }
 0x1a2   :  { %5398 = vmatprep.subr.bf16.mxu1 %v5397_v62  ;;  %v236_v62 = vrot.slane %v7936_v28, %v5852_v45  ;;  %v5415_v33 = vpack.c.bf16 %v1732_v4, %v1731_v53  ;;  %v1770_v53 = vld [vmem:[%s8595_s4 + $0x1688] sm:$0xff]  ;;  %v896_v45 = vrot.slane %v8019_v22, %v5860_v47  ;;  %v1756_v56 = vld [vmem:[%s8595_s4 + $0x1618] sm:$0xff] }
 0x1a3   :  { %5368 = vmatpush3.bf16.msra.mxu0 %v5367_v23  ;;  %v345_v23 = vmul.f32 %v8012_v20, %v228_v26  ;;  %v1735_v26 = vld [vmem:[%s8595_s4 + $0x1570] sm:$0xff] }
 0x1a4   :  { %5400 = vmatpush3.bf16.msra.mxu1 %v5399_v24  ;;  %5370 = vmatprep.subr.bf16.mxu0 %v5369_v25  ;;  %v645_v24 = vmul.f32 %v528_v11, %v7502_v7  ;;  %v248_v25 = vrot.slane %v7936_v28, %v5860_v47  ;;  %v347_v61 = vmul.f32 %v8012_v20, %v236_v62  ;;  %v1754_v47 = vld [vmem:[%s8595_s4 + $0x1608] sm:$0xff] }
 0x1a5   :  { %5402 = vmatprep.subr.bf16.mxu1 %v5401_v32  ;;  %v556_v32 = vrot.slane %v7941_v30, %v5863_v48 }
 0x1a6   :  { %v693_v9 = vadd.f32 %v645_v24, %v345_v23  ;;  %v5425_v23 = vpack.c.bf16 %v1770_v53, %v1769_v15  ;;  %v1753_v24 = vld [vmem:[%s8595_s4 + $0x1600] sm:$0xff]  ;;  %v1760_v15 = vld [vmem:[%s8595_s4 + $0x1638] sm:$0xff]  ;;  %v1791_v53 = vld [vmem:[%s8595_s4 + $0x1730] sm:$0xff] }
 0x1a7   :  { %5372 = vmatpush3.bf16.msra.mxu0 %v5371_v38  ;;  %v652_v1 = vmul.f32 %v556_v32, %v7502_v7  ;;  %v1771_v32 = vld [vmem:[%s8595_s4 + $0x1690] sm:$0xff] }
 0x1a8   :  { %5404 = vmatpush3.bf16.msra.mxu1 %v5403_v39  ;;  %5374 = vmatprep.subr.bf16.mxu0 %v5373_v54  ;;  %v5417_v39 = vpack.c.bf16 %v1750_v8, %v1749_v5  ;;  %v1734_v54 = vld [vmem:[%s8595_s4 + $0x1568] sm:$0xff] }
 0x1a9   :  { %5406 = vmatprep.subr.bf16.mxu1 %v5405_v49  ;;  %v647_v49 = vmul.f32 %v536_v21, %v7502_v7  ;;  %v5419_v2 = vpack.c.bf16 %v1734_v54, %v1733_v37  ;;  %v904_v21 = vrot.slane %v8019_v22, %v5863_v48  ;;  %v1785_v48 = vld [vmem:[%s8595_s4 + $0x1700] sm:$0xff]  ;;  %v1804_v37 = vld [vmem:[%s8595_s4 + $0x1798] sm:$0xff]  ;;  %v1755_v54 = vld [vmem:[%s8595_s4 + $0x1610] sm:$0xff] }
 0x1ab   :  { %5376 = vmatpush3.bf16.msra.mxu0 %v5375_v41  ;;  %v876_v41 = vrot.slane %v8019_v22, %v5849_v44  ;;  %v1703_v44 = vld [vmem:[%s8595_s4 + $0x1470] sm:$0xff] }
 0x1ac   :  { %5408 = vmatpush3.bf16.msra.mxu1 %v5407_v42  ;;  %5378 = vmatprep.subr.bf16.mxu0 %v5377_v59  ;;  %v350_v42 = vmul.f32 %v8012_v20, %v248_v25  ;;  %v650_v59 = vmul.f32 %v548_v27, %v7502_v7  ;;  %v5391_v18 = vpack.c.bf16 %v1704_v46, %v1703_v44  ;;  %v1775_v44 = vld [vmem:[%s8595_s4 + $0x16b0] sm:$0xff]  ;;  %v1776_v46 = vld [vmem:[%s8595_s4 + $0x16b8] sm:$0xff] }
 0x1ad   :  { %5410 = vmatprep.subr.bf16.mxu1 %v5409_v63  ;;  %v352_v63 = vmul.f32 %v8012_v20, %v256_v31  ;;  %v993_v8 = vadd.f32 %v876_v41, %v693_v9  ;;  %v5461_v9 = vpack.c.bf16 %v1804_v37, %v1803_v36  ;;  %v1805_v41 = vld [vmem:[%s8595_s4 + $0x17a0] sm:$0xff] }
 0x1ae   :  { %v698_v4 = vadd.f32 %v650_v59, %v350_v42  ;;  %v1806_v42 = vld [vmem:[%s8595_s4 + $0x17a8] sm:$0xff] }
 0x1af   :  { %5380 = vmatpush3.bf16.msra.mxu0 %v5379_v52  ;;  %v5421_v52 = vpack.c.bf16 %v1752_v3, %v1751_v58  ;;  %v700_v62 = vadd.f32 %v652_v1, %v352_v63  ;;  %v1774_v58 = vld [vmem:[%s8595_s4 + $0x16a8] sm:$0xff]  ;;  %v1757_v63 = vld [vmem:[%s8595_s4 + $0x1620] sm:$0xff] }
 0x1b0   :  { %5412 = vmatpush3.bf16.msra.mxu1 %v5411_v12  ;;  %5382 = vmatprep.subr.bf16.mxu0 %v5381_v13  ;;  %v1736_v12 = vld [vmem:[%s8595_s4 + $0x1578] sm:$0xff]  ;;  %v695_v13 = vadd.f32 %v647_v49, %v347_v61  ;;  %v998_v31 = vadd.f32 %v896_v45, %v698_v4  ;;  %v1758_v1 = vld [vmem:[%s8595_s4 + $0x1628] sm:$0xff]  ;;  %v1777_v4 = vld [vmem:[%s8595_s4 + $0x16c0] sm:$0xff] }
 0x1b1   :  { %v4048_v38 = vpop.f32.mrb[6].mxu0  ;;  %5414 = vmatprep.subr.bf16.mxu1 %v5413_v16  ;;  %v1802_v16 = vld [vmem:[%s8595_s4 + $0x1788] sm:$0xff]  ;;  %v5423_v5 = vpack.c.bf16 %v1736_v12, %v1735_v26  ;;  %v1000_v35 = vadd.f32 %v904_v21, %v700_v62  ;;  %v1807_v26 = vld [vmem:[%s8595_s4 + $0x17b0] sm:$0xff] }
 0x1b2   :  { %v4083_v55 = vpop.f32.mrb[6].mxu1  ;;  %v4049_v57 = vpop.f32.mrb[7].mxu0  ;;  %v995_v25 = vadd.f32 %v884_v14, %v695_v13  ;;  %v1046_v3 = vmax.f32 %v998_v31, 0.0  ;;  %v5437_v13 = vpack.c.bf16 %v1776_v46, %v1775_v44  ;;  %v1759_v14 = vld [vmem:[%s8595_s4 + $0x1630] sm:$0xff]  ;;  %v1778_v45 = vld [vmem:[%s8595_s4 + $0x16c8] sm:$0xff] }
 0x1b3   :  { %v4050_v60 = vadd.f32 %v4049_v57, %v4048_v38  ;;  %v4084_v43 = vpop.f32.mrb[7].mxu1  ;;  %5384 = vmatpush3.bf16.msra.mxu0 %v5383_v0  ;;  %v1786_v0 = vld [vmem:[%s8595_s4 + $0x1708] sm:$0xff]  ;;  %v1041_v38 = vmax.f32 %v993_v8, 0.0  ;;  %v1773_v57 = vld [vmem:[%s8595_s4 + $0x16a0] sm:$0xff]  ;;  %v1048_v59 = vmax.f32 %v1000_v35, 0.0  ;;  %v5439_v21 = vpack.c.bf16 %v1760_v15, %v1759_v14  ;;  %v1811_v31 = vld [vmem:[%s8595_s4 + $0x17d0] sm:$0xff] }
 0x1b4   :  { %v4085_v19 = vadd.f32 %v4084_v43, %v4083_v55  ;;  %5416 = vmatpush3.bf16.msra.mxu1 %v5415_v33  ;;  %5386 = vmatprep.subr.bf16.mxu0 %v5385_v34  ;;  %v1772_v33 = vld [vmem:[%s8595_s4 + $0x1698] sm:$0xff]  ;;  %v5427_v34 = vpack.c.bf16 %v1754_v47, %v1753_v24  ;;  %v1043_v61 = vmax.f32 %v995_v25, 0.0  ;;  %v1810_v62 = vld [vmem:[%s8595_s4 + $0x17c8] sm:$0xff]  ;;  %v5441_v8 = vpack.c.bf16 %v1778_v45, %v1777_v4  ;;  %v1793_v47 = vld [vmem:[%s8595_s4 + $0x1740] sm:$0xff] }
 0x1b5   :  { %v2311_v11 = vadd.f32 %v4050_v60, %v8052_v50  ;;  %5418 = vmatprep.subr.bf16.mxu1 %v5417_v39  ;;  %v1801_v50 = vld [vmem:[%s8595_s4 + $0x1780] sm:$0xff]  ;;  %v5459_v39 = vpack.c.bf16 %v1786_v0, %v1785_v48  ;;  %v5429_v49 = vpack.c.bf16 %v1772_v33, %v1771_v32  ;;  %v1788_v55 = vld [vmem:[%s8595_s4 + $0x1718] sm:$0xff]  ;;  %v5431_v60 = vpack.c.bf16 %v1756_v56, %v1755_v54  ;;  %v1762_v24 = vld [vmem:[%s8595_s4 + $0x1648] sm:$0xff] }
 0x1b6   :  { %v5457_v27 = vpack.c.bf16 %v1802_v16, %v1801_v50  ;;  %v5463_v43 = vpack.c.bf16 %v1788_v55, %v1787_v6  ;;  %v1792_v16 = vld [vmem:[%s8595_s4 + $0x1738] sm:$0xff]  ;;  %v1779_v48 = vld [vmem:[%s8595_s4 + $0x16d0] sm:$0xff]  ;;  %v544_v35 = vrot.slane %v7941_v30, %v6049_v40  ;;  %v252_v55 = vrot.slane %v7936_v28, %v5938_v29 }
 0x1b7   :  { %v8279_v17 = vadd.f32 %v4085_v19, %v2311_v11  ;;  %5388 = vmatpush3.bf16.msra.mxu0 %v5387_v51  ;;  %v5433_v51 = vpack.c.bf16 %v1774_v58, %v1773_v57  ;;  %v1789_v19 = vld [vmem:[%s8595_s4 + $0x1720] sm:$0xff]  ;;  %v1808_v11 = vld [vmem:[%s8595_s4 + $0x17b8] sm:$0xff]  ;;  %v1795_v54 = vld [vmem:[%s8595_s4 + $0x1750] sm:$0xff]  ;;  %v552_v57 = vrot.slane %v7941_v30, %v5938_v29 }
 0x1b8   :  { %5420 = vmatpush3.bf16.msra.mxu1 %v5419_v2  ;;  %5390 = vmatprep.subr.bf16.mxu0 %v5389_v10  ;;  %v5465_v2 = vpack.c.bf16 %v1806_v42, %v1805_v41  ;;  %v1790_v10 = vld [vmem:[%s8595_s4 + $0x1728] sm:$0xff]  ;;  %v5469_v50 = vpack.c.bf16 %v1808_v11, %v1807_v26  ;;  %v1780_v0 = vld [vmem:[%s8595_s4 + $0x16d8] sm:$0xff]  ;;  %v1813_v58 = vld [vmem:[%s8595_s4 + $0x17e0] sm:$0xff]  ;;  %v649_v42 = vmul.f32 %v544_v35, %v7502_v7 }
 0x1b9   :  { %5422 = vmatprep.subr.bf16.mxu1 %v5421_v52  ;;  %v5435_v52 = vpack.c.bf16 %v1758_v1, %v1757_v63  ;;  %v5467_v12 = vpack.c.bf16 %v1790_v10, %v1789_v19  ;;  %v1812_v32 = vld [vmem:[%s8595_s4 + $0x17d8] sm:$0xff]  ;;  %v5445_v37 = vpack.c.bf16 %v1780_v0, %v1779_v48  ;;  %v1765_v30 = vld [vmem:[%s8595_s4 + $0x1660] sm:$0xff]  ;;  %v1798_v1 = vld [vmem:[%s8595_s4 + $0x1768] sm:$0xff]  ;;  %v351_v10 = vmul.f32 %v8012_v20, %v252_v55 }
 0x1ba   :  { %v5477_v56 = vpack.c.bf16 %v1812_v32, %v1811_v31  ;;  %v1796_v6 = vld [vmem:[%s8595_s4 + $0x1758] sm:$0xff]  ;;  %v1783_v19 = vld [vmem:[%s8595_s4 + $0x16f0] sm:$0xff]  ;;  %v651_v44 = vmul.f32 %v552_v57, %v7502_v7  ;;  %v5559_v57 = vmov 0.0|0.0  }
 0x1bb   :  { %5392 = vmatpush3.bf16.msra.mxu0 %v5391_v18  ;;  %v1809_v18 = vld [vmem:[%s8595_s4 + $0x17c0] sm:$0xff]  ;;  %v1815_v11 = vld [vmem:[%s8595_s4 + $0x17f0] sm:$0xff]  ;;  %v1768_v4 = vld [vmem:[%s8595_s4 + $0x1678] sm:$0xff] }
 0x1bc   :  { %5424 = vmatpush3.bf16.msra.mxu1 %v5423_v5  ;;  %5426 = vmatprep.subr.bf16.mxu0 %v5425_v23  ;;  %v5471_v5 = vpack.c.bf16 %v1792_v16, %v1791_v53  ;;  %v1761_v23 = vld [vmem:[%s8595_s4 + $0x1640] sm:$0xff]  ;;  %v5473_v25 = vpack.c.bf16 %v1810_v62, %v1809_v18  ;;  %v1767_v16 = vld [vmem:[%s8595_s4 + $0x1670] sm:$0xff]  ;;  %v1800_v62 = vld [vmem:[%s8595_s4 + $0x1778] sm:$0xff] }
 0x1bd   :  { %5458 = vmatprep.subr.bf16.mxu1 %v5457_v27  ;;  %v1794_v27 = vld [vmem:[%s8595_s4 + $0x1748] sm:$0xff]  ;;  %v5443_v33 = vpack.c.bf16 %v1762_v24, %v1761_v23  ;;  %v5455_v23 = vpack.c.bf16 %v1768_v4, %v1767_v16  ;;  %v3507_v55 = vld [vmem:[%s8597_s6 + $0x10] sm:$0xff] }
 0x1be   :  { %3289 = vmatmul.mubr.f32.vlgmr.msra.gmra.mrb[20].mxu0 %v1041_v38  ;;  %v5475_v36 = vpack.c.bf16 %v1794_v27, %v1793_v47  ;;  %v1763_v38 = vld [vmem:[%s8595_s4 + $0x1650] sm:$0xff] }
 0x1bf   :  { %3359 = vmatmul.mubr.f32.vlgmr.msra.gmra.mrb[20].mxu1 %v1043_v61  ;;  %5428 = vmatpush3.bf16.msra.mxu0 %v5427_v34  ;;  %v244_v34 = vrot.slane %v7936_v28, %v6049_v40  ;;  %v1781_v61 = vld [vmem:[%s8595_s4 + $0x16e0] sm:$0xff]  ;;  %v5479_v28 = vpack.c.bf16 %v1796_v6, %v1795_v54 }
 0x1c0   :  { %3428 = vmatprep.mubr.f32.mxu0 %v1046_v3  ;;  %5460 = vmatpush3.bf16.msra.mxu1 %v5459_v39  ;;  %v1764_v39 = vld [vmem:[%s8595_s4 + $0x1658] sm:$0xff]  ;;  %v1814_v3 = vld [vmem:[%s8595_s4 + $0x17e8] sm:$0xff] }
 0x1c1   :  { %3498 = vmatprep.mubr.f32.mxu1 %v1048_v59  ;;  %5430 = vmatprep.subr.bf16.mxu0 %v5429_v49  ;;  %v1782_v49 = vld [vmem:[%s8595_s4 + $0x16e8] sm:$0xff]  ;;  %v349_v41 = vmul.f32 %v8012_v20, %v244_v34  ;;  %v5481_v63 = vpack.c.bf16 %v1814_v3, %v1813_v58  ;;  %v892_v20 = vrot.slane %v8019_v22, %v6049_v40  ;;  %v1799_v40 = vld [vmem:[%s8595_s4 + $0x1770] sm:$0xff]  ;;  %v3508_v3 = vld [vmem:[%s8597_s6 + $0x18] sm:$0xff] }
 0x1c2   :  { %5462 = vmatprep.subr.bf16.mxu1 %v5461_v9  ;;  %v5447_v9 = vpack.c.bf16 %v1764_v39, %v1763_v38  ;;  %v5449_v59 = vpack.c.bf16 %v1782_v49, %v1781_v61  ;;  %v3505_v61 = vld [vmem:[%s8597_s6] sm:$0xff]  ;;  %v3506_v49 = vld [vmem:[%s8597_s6 + $0x8] sm:$0xff] }
 0x1c3   :  { %5432 = vmatpush3.bf16.msra.mxu0 %v5431_v60  ;;  %v1766_v60 = vld [vmem:[%s8595_s4 + $0x1668] sm:$0xff]  ;;  %v697_v15 = vadd.f32 %v649_v42, %v349_v41  ;;  %v5490_v58 = vpack.c.bf16 %v3506_v49, %v3505_v61  ;;  %v3509_v41 = vld [vmem:[%s8597_s6 + $0x20] sm:$0xff]  ;;  %v3606_v49 = vld [vmem:[%s8599_s8 + $0x10] sm:$0xff] }
 0x1c4   :  { %5464 = vmatpush3.bf16.msra.mxu1 %v5463_v43  ;;  %5434 = vmatprep.subr.bf16.mxu0 %v5433_v51  ;;  %v1797_v43 = vld [vmem:[%s8595_s4 + $0x1760] sm:$0xff]  ;;  %v5451_v14 = vpack.c.bf16 %v1766_v60, %v1765_v30  ;;  %v3510_v42 = vld [vmem:[%s8597_s6 + $0x28] sm:$0xff]  ;;  %v3512_v30 = vld [vmem:[%s8597_s6 + $0x38] sm:$0xff] }
 0x1c5   :  { %5466 = vmatprep.subr.bf16.mxu1 %v5465_v2  ;;  %v1784_v2 = vld [vmem:[%s8595_s4 + $0x16f8] sm:$0xff]  ;;  %v5483_v7 = vpack.c.bf16 %v1798_v1, %v1797_v43  ;;  %v997_v24 = vadd.f32 %v892_v20, %v697_v15  ;;  %v3605_v15 = vld [vmem:[%s8599_s8 + $0x8] sm:$0xff] }
 0x1c7   :  { %5436 = vmatpush3.bf16.msra.mxu0 %v5435_v52  ;;  %v1816_v52 = vld [vmem:[%s8595_s4 + $0x17f8] sm:$0xff] }
 0x1c8   :  { %5468 = vmatpush3.bf16.msra.mxu1 %v5467_v12  ;;  %5438 = vmatprep.subr.bf16.mxu0 %v5437_v13  ;;  %v5485_v18 = vpack.c.bf16 %v1816_v52, %v1815_v11  ;;  %v3515_v11 = vld [vmem:[%s8597_s6 + $0x50] sm:$0xff] }
 0x1c9   :  { %5470 = vmatprep.subr.bf16.mxu1 %v5469_v50  ;;  %v5453_v50 = vpack.c.bf16 %v1784_v2, %v1783_v19 }
 0x1cb   :  { %5440 = vmatpush3.bf16.msra.mxu0 %v5439_v21  ;;  %v699_v21 = vadd.f32 %v651_v44, %v351_v10 }
 0x1cc   :  { %5472 = vmatpush3.bf16.msra.mxu1 %v5471_v5  ;;  %5442 = vmatprep.subr.bf16.mxu0 %v5441_v8  ;;  %v900_v5 = vrot.slane %v8019_v22, %v5938_v29 }
 0x1cd   :  { %5474 = vmatprep.subr.bf16.mxu1 %v5473_v25  ;;  %v1045_v25 = vmax.f32 %v997_v24, 0.0 }
 0x1ce   :  { %v999_v47 = vadd.f32 %v900_v5, %v699_v21 }
 0x1cf   :  { %5444 = vmatpush3.bf16.msra.mxu0 %v5443_v33 }
 0x1d0   :  { %5476 = vmatpush3.bf16.msra.mxu1 %v5475_v36  ;;  %5446 = vmatprep.subr.bf16.mxu0 %v5445_v37  ;;  %v1047_v27 = vmax.f32 %v999_v47, 0.0 }
 0x1d1   :  { %v4118_v51 = vpop.f32.mrb[8].mxu0  ;;  %5478 = vmatprep.subr.bf16.mxu1 %v5477_v56 }
 0x1d2   :  { %v4153_v46 = vpop.f32.mrb[8].mxu1  ;;  %v4119_v26 = vpop.f32.mrb[9].mxu0 }
 0x1d3   :  { %v4120_v12 = vadd.f32 %v4119_v26, %v4118_v51  ;;  %v4154_v13 = vpop.f32.mrb[9].mxu1  ;;  %5448 = vmatpush3.bf16.msra.mxu0 %v5447_v9  ;;  %v5493_v9 = vpack.c.bf16 %v3508_v3, %v3507_v55  ;;  %v3514_v26 = vld [vmem:[%s8597_s6 + $0x48] sm:$0xff]  ;;  %v3607_v55 = vld [vmem:[%s8599_s8 + $0x18] sm:$0x3f] }
 0x1d4   :  { %v4155_v53 = vadd.f32 %v4154_v13, %v4153_v46  ;;  %5480 = vmatpush3.bf16.msra.mxu1 %v5479_v28  ;;  %5450 = vmatprep.subr.bf16.mxu0 %v5449_v59  ;;  %v5496_v28 = vpack.c.bf16 %v3510_v42, %v3509_v41  ;;  %v3511_v59 = vld [vmem:[%s8597_s6 + $0x30] sm:$0xff]  ;;  %v3513_v46 = vld [vmem:[%s8597_s6 + $0x40] sm:$0xff]  ;;  %v5561_v13 = vmov 0.0   ;;  %v3695_v42 = vld [vmem:[%s8601_s10 + $0x8] sm:$0xff] }
 0x1d5   :  { %v2451_v45 = vadd.f32 %v4120_v12, %v8279_v17  ;;  %5482 = vmatprep.subr.bf16.mxu1 %v5481_v63  ;;  %v5487_v17 = vpack.c.bf16 %v1800_v62, %v1799_v40  ;;  %v5499_v60 = vpack.c.bf16 %v3512_v30, %v3511_v59  ;;  %v5502_v52 = vpack.c.bf16 %v3514_v26, %v3513_v46  ;;  %v3516_v12 = vld [vmem:[%s8597_s6 + $0x58] sm:$0xff]  ;;  %v3694_v41 = vld [vmem:[%s8601_s10] sm:$0xff] }
 0x1d6   :  { %v5505_v20 = vpack.c.bf16 %v3516_v12, %v3515_v11  ;;  %v3803_v46 = vld [vmem:[%s8602_s11] ss:$0 sm:$0xff] }
 0x1d7   :  { %v2521_v8 = vadd.f32 %v4155_v53, %v2451_v45  ;;  %5452 = vmatpush3.bf16.msra.mxu0 %v5451_v14  ;;  %v3604_v14 = vld [vmem:[%s8599_s8] sm:$0xff] }
 0x1d8   :  { %5484 = vmatpush3.bf16.msra.mxu1 %v5483_v7  ;;  %5454 = vmatprep.subr.bf16.mxu0 %v5453_v50  ;;  %v5508_v53 = vpack.c.bf16 %v3605_v15, %v3604_v14  ;;  %v3517_v7 = vld [vmem:[%s8597_s6 + $0x60] sm:$0xf] }
 0x1d9   :  { %5486 = vmatprep.subr.bf16.mxu1 %v5485_v18 }
 0x1db   :  { %5456 = vmatpush3.bf16.msra.mxu0 %v5455_v23 }
 0x1dc   :  { %5488 = vmatpush3.bf16.msra.mxu1 %v5487_v17  ;;  %5489 = vmatprep.subr.bf16.mxu0 %v5559_v57 }
 0x1dd   :  { %5507 = vmatprep.subr.bf16.mxu1 %v5559_v57 }
 0x1de   :  { %3429 = vmatmul.mubr.f32.vlgmr.msra.gmra.mrb[22].mxu0 %v1045_v25 }
 0x1df   :  { %3499 = vmatmul.mubr.f32.vlgmr.msra.gmra.mrb[22].mxu1 %v1047_v27  ;;  %5491 = vmatpush3.bf16.msra.mxu0 %v5490_v58  ;;  %v5511_v58 = vpack.c.bf16 %v3607_v55, %v3606_v49 }
 0x1e0   :  { %5492 = vmatprep.subr.bf16.mxu0 %v5559_v57  ;;  %4696 = vmatprep.mubr.msk.f32.mxu0 %vm5560_vm0, %v5561_v13 }
 0x1e1   :  { %4707 = vmatprep.mubr.msk.f32.mxu1 %vm5560_vm0, %v5561_v13  ;;  %5509 = vmatpush3.bf16.msra.mxu1 %v5508_v53 }
 0x1e2   :  { %5510 = vmatprep.subr.bf16.mxu1 %v5559_v57 }
 0x1e3   :  { %5494 = vmatpush3.bf16.msra.mxu0 %v5493_v9  ;;  %v3797_v9 = vld [vmem:[%s8598_s7] ss:$0 sm:$0xff] }
 0x1e4   :  { %5495 = vmatprep.subr.bf16.mxu0 %v5559_v57 }
 0x1e5   :  { %5513 = vmatpush3.bf16.msk.msra.mxu1 %vm8544_vm5, %v5511_v58 }
 0x1e6   :  { %5514 = vmatprep.subr.bf16.mxu1 %v5559_v57 }
 0x1e7   :  { %5497 = vmatpush3.bf16.msra.mxu0 %v5496_v28 }
 0x1e8   :  { %5498 = vmatprep.subr.bf16.mxu0 %v5559_v57 }
 0x1eb   :  { %5500 = vmatpush3.bf16.msra.mxu0 %v5499_v60  ;;  %v5515_v60 = vpack.c.bf16 %v3695_v42, %v3694_v41 }
 0x1ec   :  { %5501 = vmatprep.subr.bf16.mxu0 %v5559_v57 }
 0x1ef   :  { %5503 = vmatpush3.bf16.msra.mxu0 %v5502_v52 }
 0x1f0   :  { %5504 = vmatprep.subr.bf16.mxu0 %v5559_v57 }
 0x1f1   :  { %v4188_v48 = vpop.f32.mrb[10].mxu0 }
 0x1f2   :  { %v4223_v0 = vpop.f32.mrb[10].mxu1  ;;  %v4189_v31 = vpop.f32.mrb[11].mxu0 }
 0x1f3   :  { %v4190_v32 = vadd.f32 %v4189_v31, %v4188_v48  ;;  %v4224_v29 = vpop.f32.mrb[11].mxu1  ;;  %5506 = vmatpush3.bf16.msra.mxu0 %v5505_v20 }
 0x1f4   :  { %v4225_v22 = vadd.f32 %v4224_v29, %v4223_v0  ;;  %4694 = vmatprep.subr.mxu0 %v5561_v13 }
 0x1f5   :  { %v2591_v33 = vadd.f32 %v4190_v32, %v2521_v8 }
 0x1f7   :  { %v2661_v34 = vadd.f32 %v4225_v22, %v2591_v33  ;;  %4695 = vmatpush3.msk.msra.mxu0 %vm3529_vm1, %v3517_v7 }
 0x211   :  { %v4258_v35 = vpop.f32.mrb[12].mxu0 }
 0x212   :  { %v4293_v36 = vpop.f32.mrb[12].mxu1  ;;  %v4259_v37 = vpop.f32.mrb[13].mxu0 }
 0x213   :  { %v4260_v38 = vadd.f32 %v4259_v37, %v4258_v35  ;;  %v4294_v39 = vpop.f32.mrb[13].mxu1 }
 0x214   :  { %v4295_v54 = vadd.f32 %v4294_v39, %v4293_v36 }
 0x215   :  { %v2731_v56 = vadd.f32 %v4260_v38, %v2661_v34 }
 0x217   :  { %v2801_v6 = vadd.f32 %v4295_v54, %v2731_v56 }
 0x231   :  { %v4328_v43 = vpop.f32.mrb[14].mxu0 }
 0x232   :  { %v4363_v51 = vpop.f32.mrb[14].mxu1  ;;  %v4329_v63 = vpop.f32.mrb[15].mxu0 }
 0x233   :  { %v4330_v1 = vadd.f32 %v4329_v63, %v4328_v43  ;;  %v4364_v19 = vpop.f32.mrb[15].mxu1  ;;  %v3697_v63 = vld [vmem:[%s8601_s10 + $0x18] sm:$0x3f] }
 0x234   :  { %v4365_v2 = vadd.f32 %v4364_v19, %v4363_v51  ;;  %v3696_v51 = vld [vmem:[%s8601_s10 + $0x10] sm:$0xff]  ;;  %v3800_v19 = vld [vmem:[%s8600_s9] ss:$0 sm:$0xff]  ;;  %s3788_s10 = sshll.u32 %s5563_s15, 4  ;;  %s3789_s10 = int_to_ptr.vmem [resolvable:$true] %s3788_s10 }
 0x235   :  { %v2871_v10 = vadd.f32 %v4330_v1, %v2801_v6  ;;  %v5518_v1 = vpack.c.bf16 %v3697_v63, %v3696_v51  ;;  %s5532_s16 = scalar_lea.vmem %s3789_s10, 128  ;;  %p5537_p1 = scmp.lt.s32.totalorder %s3789_s10, %s3789_s10 }
 0x236   :  { %p5533_p0 = scmp.ne.s32.totalorder %s3789_s10, %s5532_s16  ;;  %p5538_p2 = scmp.lt.s32.totalorder %s5532_s16, %s5532_s16 }
 0x237   :  { %v2941_v44 = vadd.f32 %v4365_v2, %v2871_v10 }
 0x238   :  { %p5539_p3 = por %p5538_p2, %p5537_p1 }
 0x23a   :  { %p5540_p4 = pnand %p5539_p3, %p5533_p0 }
 0x251   :  { %v4398_v50 = vpop.f32.mrb[16].mxu0 }
 0x252   :  { %v4433_v16 = vpop.f32.mrb[16].mxu1  ;;  %v4399_v4 = vpop.f32.mrb[17].mxu0 }
 0x253   :  { %v4400_v45 = vadd.f32 %v4399_v4, %v4398_v50  ;;  %v4434_v18 = vpop.f32.mrb[17].mxu1 }
 0x254   :  { %v4435_v40 = vadd.f32 %v4434_v18, %v4433_v16 }
 0x255   :  { %v3011_v62 = vadd.f32 %v4400_v45, %v2941_v44 }
 0x257   :  { %v3081_v21 = vadd.f32 %v4435_v40, %v3011_v62 }
 0x271   :  { %v4468_v5 = vpop.f32.mrb[18].mxu0 }
 0x272   :  { %v4503_v8 = vpop.f32.mrb[18].mxu1  ;;  %v4469_v23 = vpop.f32.mrb[19].mxu0 }
 0x273   :  { %v4470_v17 = vadd.f32 %v4469_v23, %v4468_v5  ;;  %v4504_v24 = vpop.f32.mrb[19].mxu1 }
 0x274   :  { %v4505_v47 = vadd.f32 %v4504_v24, %v4503_v8 }
 0x275   :  { %v3151_v25 = vadd.f32 %v4470_v17, %v3081_v21 }
 0x277   :  { %v3221_v27 = vadd.f32 %v4505_v47, %v3151_v25 }
 0x291   :  { %v4538_v48 = vpop.f32.mrb[20].mxu0 }
 0x292   :  { %v4573_v0 = vpop.f32.mrb[20].mxu1  ;;  %v4539_v31 = vpop.f32.mrb[21].mxu0 }
 0x293   :  { %v4540_v32 = vadd.f32 %v4539_v31, %v4538_v48  ;;  %v4574_v29 = vpop.f32.mrb[21].mxu1 }
 0x294   :  { %v4575_v22 = vadd.f32 %v4574_v29, %v4573_v0 }
 0x295   :  { %v3291_v33 = vadd.f32 %v4540_v32, %v3221_v27 }
 0x297   :  { %v3361_v34 = vadd.f32 %v4575_v22, %v3291_v33 }
 0x2b1   :  { %v4608_v35 = vpop.f32.mrb[22].mxu0 }
 0x2b2   :  { %v4643_v36 = vpop.f32.mrb[22].mxu1  ;;  %v4609_v37 = vpop.f32.mrb[23].mxu0 }
 0x2b3   :  { %v4610_v38 = vadd.f32 %v4609_v37, %v4608_v35  ;;  %v4644_v39 = vpop.f32.mrb[23].mxu1 }
 0x2b4   :  { %v4645_v54 = vadd.f32 %v4644_v39, %v4643_v36 }
 0x2b5   :  { %v3431_v56 = vadd.f32 %v4610_v38, %v3361_v34 }
 0x2b7   :  { %v3501_v6 = vadd.f32 %v4645_v54, %v3431_v56 }
 0x2b9   :  { %v3504_v61 = vmax.f32 %v3501_v6, 0.0 }
 0x2bb   :  { %4697 = vmatmul.mubr.msk.f32.vlgmr.msra.gmra.mrb[24].mxu0 %vm3525_vm2, %v3504_v61 }
 0x38e   :  { %v3599_v28 = vpop.f32.mrb[24].mxu0 }
 0x38f   :  { %v3600_v59 = vadd.f32 %v3797_v9, %v3599_v28  ;;  %v4698_v30 = vpop.f32.mrb[25].mxu0 }
 0x391   :  { %v3603_v43 = vmax.f32 %v3600_v59, 0.0 }
 0x393   :  { %4708 = vmatmul.mubr.msk.f32.vlgmr.msra.gmra.mrb[24].mxu1 %vm3615_vm6, %v3603_v43 }
 0x394   :  { %5516 = vmatpush3.bf16.msra.mxu1 %v5515_v60  ;;  %4718 = vmatprep.mubr.msk.f32.mxu1 %vm5560_vm0, %v5561_v13 }
 0x395   :  { %5517 = vmatprep.subr.bf16.mxu1 %v5559_v57 }
 0x398   :  { %5520 = vmatpush3.bf16.msk.msra.mxu1 %vm8544_vm5, %v5518_v1 }
 0x466   :  { %v3689_v2 = vpop.f32.mrb[24].mxu1 }
 0x467   :  { %v3690_v10 = vadd.f32 %v3800_v19, %v3689_v2  ;;  %v4709_v44 = vpop.f32.mrb[25].mxu1 }
 0x469   :  { %v3693_v57 = vmax.f32 %v3690_v10, 0.0 }
 0x46b   :  { %4719 = vmatmul.mubr.msk.f32.vlgmr.msra.gmra.mrb[26].mxu1 %vm3615_vm6, %v3693_v57 }
 0x53e   :  { %v3777_v26 = vpop.f32.mrb[26].mxu1 }
 0x53f   :  { %v3778_v11 = vadd.f32 %v3803_v46, %v3777_v26  ;;  %v4720_v52 = vpop.f32.mrb[27].mxu1 }
 0x541   :  { %3781 = vst [vmem:[#allocation2] sm:$0xff] %v3778_v11 }
 0x542   :  { %5543 = shalt.err (!%p5540_p4)
}
 0x543   :  { %s5544_s4 = scalar_lea.hbm %s8603_s12, 128 }
 0x544   :  { %p5545_p5 = scmp.ne.s32.totalorder %s8603_s12, %s5544_s4  ;;  %p5548_p6 = scmp.lt.u32.totalorder %s5544_s4, %s8603_s12 }
 0x546   :  { %p5550_p7 = pnand %p5548_p6, %p5545_p5 }
 0x548   :  { %5553 = shalt.err (!%p5550_p7)
}
 0x549   :  { %3791 = dma.vmem_to_hbm [thread:$0]  %s3789_s10, 128, %s8603_s12, [#allocation3]  }
 0x54a   :  { %5554 = dma.done.wait [#allocation3], 128  }
 0x54b   :  { %5555 = vsyncadd [#allocation3], 4294967168 }
 0x54c   :  { %3795 = vsyncpa [#allocation3], 1 }

</bundles_post_ra>
